<compile_context>
chip_gen: v7x
topology: tpu7x:2x2x1
jax: 0.10.0
libtpu: 0.0.40
codegen_flags: <defaults>
</compile_context>

<pallas_src>
import functools
import math

import jax
import jax.numpy as jnp
from jax.experimental import pallas as pl
from jax.experimental.pallas import tpu as pltpu


# --------------------------------- tiling ------------------------------------

def _largest_tile(length, cap):
    """Largest multiple of 128 that divides `length` and is <= cap, else full."""
    best = 0
    t = 128
    while t <= min(cap, length):
        if length % t == 0:
            best = t
        t += 128
    return best if best > 0 else length


def _query_tile_cap():
    # v5 MXU is 128x128: tq=256 buys nothing on the matmul side but doubles the
    # f32 (tq, tk) score temporaries under the smaller scoped-VMEM default.
    try:
        kind = jax.devices()[0].device_kind.lower()
        if "v5" in kind:
            return 128
    except Exception:
        pass
    return 256


# --------------------------- fused q/k/v projection ---------------------------

def _qkv_proj_kernel(x_ref, w_ref, b_ref, q_ref, k_ref, v_ref, *, c8):
    # (2*C8 + C, C) @ (C, tl) + bias; bf16 operands, f32 accumulation.
    x = x_ref[0].astype(jnp.bfloat16)                               # (C, tl)
    acc = jnp.dot(w_ref[...], x, preferred_element_type=jnp.float32)
    acc = acc + b_ref[...]                                          # (Cout,1) bcast
    # q is written token-major (tl, C8) so the attention q @ k matmul is a
    # plain (M, K) x (K, N); k / v stay channel-major and lane-dense.
    q_ref[0] = jnp.transpose(acc[:c8]).astype(q_ref.dtype)          # (tl, C8)
    k_ref[0] = acc[c8:2 * c8].astype(k_ref.dtype)                   # (C8, tl)
    v_ref[0] = acc[2 * c8:].astype(v_ref.dtype)                     # (C, tl)


def qkv_projection(x_cl, w_cat, b_cat, c8, *, tile_cap=1024):
    """Fused 1x1-conv q/k/v projection of x (N, C, L) -> bf16 q, k, v."""
    N, C, L = x_cl.shape
    cout = w_cat.shape[0]
    assert cout == 2 * c8 + C
    tl = _largest_tile(L, tile_cap)
    return pl.pallas_call(
        functools.partial(_qkv_proj_kernel, c8=c8),
        out_shape=(jax.ShapeDtypeStruct((N, L, c8), jnp.bfloat16),   # q
                   jax.ShapeDtypeStruct((N, c8, L), jnp.bfloat16),   # k
                   jax.ShapeDtypeStruct((N, C, L), jnp.bfloat16)),   # v
        grid=(N, L // tl),
        in_specs=[pl.BlockSpec((1, C, tl), lambda b, i: (b, 0, i)),   # x tile
                  pl.BlockSpec((cout, C), lambda b, i: (0, 0)),       # weights
                  pl.BlockSpec((cout, 1), lambda b, i: (0, 0))],      # bias
        out_specs=(pl.BlockSpec((1, tl, c8), lambda b, i: (b, i, 0)),
                   pl.BlockSpec((1, c8, tl), lambda b, i: (b, 0, i)),
                   pl.BlockSpec((1, C, tl), lambda b, i: (b, 0, i))),
        compiler_params=pltpu.CompilerParams(
            dimension_semantics=("parallel", "parallel")),
    )(x_cl, w_cat, b_cat)


# ------------------------------ attention kernel ------------------------------

def _attn_kernel(gamma_ref, q_ref, k_ref, v_ref, x_ref, o_ref,
                 m_sc, l_sc, acc_sc):
    kv = pl.program_id(2)

    @pl.when(kv == 0)
    def _():
        m_sc[...] = jnp.full(m_sc.shape, -jnp.inf, jnp.float32)
        l_sc[...] = jnp.zeros(l_sc.shape, jnp.float32)
        acc_sc[...] = jnp.zeros(acc_sc.shape, jnp.float32)

    q = q_ref[0]                                             # (tq, C8) bf16
    k = k_ref[0]                                             # (C8, tk) bf16
    # 1/sqrt(C8) is already folded into the query weights/bias.
    s = jnp.dot(q, k, preferred_element_type=jnp.float32)    # (tq, tk) f32

    m_prev = m_sc[...]
    m_new = jnp.maximum(m_prev, jnp.max(s, axis=-1, keepdims=True))
    alpha = jnp.exp(m_prev - m_new)                          # (tq, 1)
    p = jnp.exp(s - m_new)                                   # (tq, tk)
    l_sc[...] = alpha * l_sc[...] + jnp.sum(p, axis=-1, keepdims=True)

    v = v_ref[0]                                             # (C, tk) bf16
    # pv[i, c] = sum_j p[i, j] * v[c, j]  (rhs contracted on its lane dim)
    pv = jax.lax.dot_general(p.astype(jnp.bfloat16), v,
                             (((1,), (1,)), ((), ())),
                             preferred_element_type=jnp.float32)     # (tq, C)
    acc_sc[...] = alpha * acc_sc[...] + pv
    m_sc[...] = m_new

    @pl.when(kv == pl.num_programs(2) - 1)
    def _():
        inv_l = pl.reciprocal(l_sc[...], approx=False)       # exact normalize
        out = acc_sc[...] * inv_l                            # (tq, C) f32
        # One f32 transpose per query block -> lane-dense (C, tq) store fused
        # with the gamma * out + x residual blend (gamma lives in SMEM).
        o_ref[0] = (gamma_ref[0] * out.T + x_ref[0]).astype(o_ref.dtype)


def _attn_vmem_limit(tq, tk, C, c8):
    bf, f4 = 2, 4
    per_step = ((tq * c8 + c8 * tk + C * tk) * bf            # q, k, v blocks
                + C * tq * f4                                # x block
                + C * tq * f4)                               # out block
    scratch = (tq * C + 2 * tq * 128) * f4                   # acc + padded m, l
    need = 2 * per_step + scratch                            # double-buffered
    return int(min(max(4 * need, 32 * 1024 * 1024), 64 * 1024 * 1024))


def attention_blend(q, k, v, x_cl, gamma):
    """out (N,C,L) = gamma * softmax(q k) @ v + x, flash-style over the kv axis."""
    N, L, c8 = q.shape
    C = v.shape[1]
    tq = _largest_tile(L, _query_tile_cap())
    tk = _largest_tile(L, 512)
    return pl.pallas_call(
        _attn_kernel,
        out_shape=jax.ShapeDtypeStruct((N, C, L), jnp.float32),
        grid=(N, L // tq, L // tk),
        in_specs=[pl.BlockSpec(memory_space=pltpu.MemorySpace.SMEM),        # gamma
                  pl.BlockSpec((1, tq, c8), lambda b, qi, kj: (b, qi, 0)),  # q
                  pl.BlockSpec((1, c8, tk), lambda b, qi, kj: (b, 0, kj)),  # k
                  pl.BlockSpec((1, C, tk), lambda b, qi, kj: (b, 0, kj)),   # v
                  pl.BlockSpec((1, C, tq), lambda b, qi, kj: (b, 0, qi))],  # x
        out_specs=pl.BlockSpec((1, C, tq), lambda b, qi, kj: (b, 0, qi)),
        scratch_shapes=[pltpu.VMEM((tq, 1), jnp.float32),    # running max
                        pltpu.VMEM((tq, 1), jnp.float32),    # running denom
                        pltpu.VMEM((tq, C), jnp.float32)],   # running numerator
        compiler_params=pltpu.CompilerParams(
            dimension_semantics=("parallel", "parallel", "arbitrary"),
            vmem_limit_bytes=_attn_vmem_limit(tq, tk, C, c8)),
    )(gamma, q, k, v, x_cl)


# ------------------------------- module wrapper -------------------------------

def init_self_attention(key, channels):
    def conv1x1_params(k, cout, cin):
        k1, k2 = jax.random.split(k)
        bound = 1.0 / math.sqrt(cin)                      # nn.Conv2d default init
        return {'w': jax.random.uniform(k1, (cout, cin, 1, 1), jnp.float32,
                                        -bound, bound),
                'b': jax.random.uniform(k2, (cout,), jnp.float32, -bound, bound)}
    kq, kk, kv = jax.random.split(key, 3)
    c8 = channels // 8
    return {'q': conv1x1_params(kq, c8, channels),
            'k': conv1x1_params(kk, c8, channels),
            'v': conv1x1_params(kv, channels, channels),
            'gamma': jnp.zeros((1,), jnp.float32)}        # nn.Parameter(torch.zeros(1))


def self_attention_forward(p, x):
    N, C, H, W = x.shape
    c8, L = C // 8, H * W
    x_cl = x.reshape(N, C, L)                  # free: NCHW is already channel-major
    # Fold softmax 1/sqrt(C8) into the query weights AND bias; concatenate the
    # three 1x1-conv weights; pre-cast to bf16 once at trace time.
    scale = 1.0 / math.sqrt(c8)
    w_cat = jnp.concatenate([p['q']['w'].reshape(c8, C) * scale,
                             p['k']['w'].reshape(c8, C),
                             p['v']['w'].reshape(C, C)], axis=0).astype(jnp.bfloat16)
    b_cat = jnp.concatenate([p['q']['b'] * scale,
                             p['k']['b'],
                             p['v']['b']])[:, None]                     # (2*C8+C, 1)
    q, k, v = qkv_projection(x_cl, w_cat, b_cat, c8)                    # bf16
    out_cl = attention_blend(q, k, v, x_cl, p['gamma'])                 # (N, C, L)
    return out_cl.reshape(N, C, H, W)


# ------------------------------ pure-JAX reference ----------------------------

def self_attention_reference(p, x):
    N, C, H, W = x.shape
    c8, L = C // 8, H * W

    def conv1x1(xx, w, b):
        y = jnp.einsum('nchw,oc->nohw', xx, w.reshape(w.shape[0], w.shape[1]))
        return y + b[None, :, None, None]

    q = conv1x1(x, p['q']['w'], p['q']['b']).reshape(N, c8, L).transpose(0, 2, 1)
    k = conv1x1(x, p['k']['w'], p['k']['b']).reshape(N, c8, L)
    v = conv1x1(x, p['v']['w'], p['v']['b']).reshape(N, C, L)
    attn = jnp.einsum('nlc,ncm->nlm', q, k) / jnp.sqrt(jnp.float32(c8))
    attn = jax.nn.softmax(attn, axis=-1)
    out = jnp.einsum('ncj,nij->nci', v, attn).reshape(N, C, H, W)
    return p['gamma'][0] * out + x


# ------------------------------------ main ------------------------------------

if __name__ == "__main__":
    key = jax.random.PRNGKey(0)
    pkey, xkey = jax.random.split(key)
    N, C, H, W = 2, 64, 16, 16            # channels % 8 == 0; L = 256
    params = init_self_attention(pkey, C)
    # The PyTorch module initializes gamma to 0; use a nonzero value here so the
    # numerical check actually exercises the attention path (semantics unchanged).
    params['gamma'] = jnp.full((1,), 0.5, jnp.float32)
    x = jax.random.normal(xkey, (N, C, H, W), jnp.float32)

    fwd = jax.jit(lambda inp: self_attention_forward(params, inp))
    y = jax.block_until_ready(fwd(x))

    y_ref = self_attention_reference(params, x)
    assert y.shape == x.shape
    assert bool(jnp.all(jnp.isfinite(y)))
    max_err = float(jnp.max(jnp.abs(y - y_ref)))
    assert max_err < 5e-2, f"max abs err {max_err}"    # bf16-operand tolerance
    print("KERNEL_OK")
</pallas_src>

<mosaic_0001>
module attributes {stable_mosaic.version = 11 : i64} {
  func.func @_attn_kernel(%arg0: i32, %arg1: i32, %arg2: i32, %arg3: memref<1xf32, #tpu.memory_space<smem>>, %arg4: memref<1x256x8xbf16, #tpu.memory_space<vmem>>, %arg5: memref<1x8x256xbf16, #tpu.memory_space<vmem>>, %arg6: memref<1x64x256xbf16, #tpu.memory_space<vmem>>, %arg7: memref<1x64x256xf32, #tpu.memory_space<vmem>>, %arg8: memref<1x64x256xf32, #tpu.memory_space<vmem>>, %arg9: memref<256x1xf32, #tpu.memory_space<vmem>>, %arg10: memref<256x1xf32, #tpu.memory_space<vmem>>, %arg11: memref<256x64xf32, #tpu.memory_space<vmem>>) attributes {dimension_semantics = [#tpu.dimension_semantics<parallel>, #tpu.dimension_semantics<parallel>, #tpu.dimension_semantics<arbitrary>], iteration_bounds = array<i64: 2, 1, 1>, scalar_prefetch = 0 : i64, scratch_operands = 3 : i64, tpu.core_type = #tpu.core_type<tc>, window_params = [{transform_indices = @transform_0, window_bounds = array<i64: 1>}, {transform_indices = @transform_1, window_bounds = array<i64: 1, 256, 8>}, {transform_indices = @transform_2, window_bounds = array<i64: 1, 8, 256>}, {transform_indices = @transform_3, window_bounds = array<i64: 1, 64, 256>}, {transform_indices = @transform_4, window_bounds = array<i64: 1, 64, 256>}, {transform_indices = @transform_5, window_bounds = array<i64: 1, 64, 256>}]} {
    %c0_i32 = arith.constant 0 : i32
    %0 = arith.cmpi eq, %arg2, %c0_i32 : i32
    %1 = arith.extui %0 : i1 to i32
    %c0_i32_0 = arith.constant 0 : i32
    %2 = arith.cmpi ne, %1, %c0_i32_0 : i32
    scf.if %2 {
      %cst_26 = arith.constant 0xFF800000 : f32
      %36 = vector.broadcast %cst_26 : f32 to vector<256x1xf32>
      %c0_27 = arith.constant 0 : index
      %c0_28 = arith.constant 0 : index
      %37 = vector.load %arg9[%c0_27, %c0_28] : memref<256x1xf32, #tpu.memory_space<vmem>>, vector<256x1xf32>
      tpu.vector_store %arg9[%c0_27, %c0_28], %36 {strides = array<i32>} : memref<256x1xf32, #tpu.memory_space<vmem>>, vector<256x1xf32>,
      %cst_29 = arith.constant 0.000000e+00 : f32
      %38 = vector.broadcast %cst_29 : f32 to vector<256x1xf32>
      %c0_30 = arith.constant 0 : index
      %c0_31 = arith.constant 0 : index
      %39 = vector.load %arg10[%c0_30, %c0_31] : memref<256x1xf32, #tpu.memory_space<vmem>>, vector<256x1xf32>
      tpu.vector_store %arg10[%c0_30, %c0_31], %38 {strides = array<i32>} : memref<256x1xf32, #tpu.memory_space<vmem>>, vector<256x1xf32>,
      %cst_32 = arith.constant 0.000000e+00 : f32
      %40 = vector.broadcast %cst_32 : f32 to vector<256x64xf32>
      %c0_33 = arith.constant 0 : index
      %c0_34 = arith.constant 0 : index
      %41 = vector.load %arg11[%c0_33, %c0_34] : memref<256x64xf32, #tpu.memory_space<vmem>>, vector<256x64xf32>
      tpu.vector_store %arg11[%c0_33, %c0_34], %40 {strides = array<i32>} : memref<256x64xf32, #tpu.memory_space<vmem>>, vector<256x64xf32>,
    } else {
    }
    %c0 = arith.constant 0 : index
    %c0_1 = arith.constant 0 : index
    %c0_2 = arith.constant 0 : index
    %3 = vector.load %arg4[%c0, %c0_1, %c0_2] : memref<1x256x8xbf16, #tpu.memory_space<vmem>>, vector<1x256x8xbf16>
    %4 = vector.shape_cast %3 : vector<1x256x8xbf16> to vector<256x8xbf16>
    %c0_3 = arith.constant 0 : index
    %c0_4 = arith.constant 0 : index
    %c0_5 = arith.constant 0 : index
    %5 = vector.load %arg5[%c0_3, %c0_4, %c0_5] : memref<1x8x256xbf16, #tpu.memory_space<vmem>>, vector<1x8x256xbf16>
    %6 = vector.shape_cast %5 : vector<1x8x256xbf16> to vector<8x256xbf16>
    %cst = arith.constant dense<0.000000e+00> : vector<256x256xf32>
    %7 = tpu.matmul %4, %6, %cst {dimension_numbers = #tpu.dot_dimension_numbers<[1], [0], [0], [1], [0, 0, 1, 1], [], []>} : vector<256x8xbf16>, vector<8x256xbf16>, vector<256x256xf32> -> vector<256x256xf32>
    %c0_6 = arith.constant 0 : index
    %c0_7 = arith.constant 0 : index
    %8 = vector.load %arg9[%c0_6, %c0_7] : memref<256x1xf32, #tpu.memory_space<vmem>>, vector<256x1xf32>
    %cst_8 = arith.constant dense<0xFF800000> : vector<256xf32>
    %9 = vector.multi_reduction <maximumf>, %7, %cst_8 [1] : vector<256x256xf32> to vector<256xf32>
    %10 = vector.shape_cast %9 : vector<256xf32> to vector<256x1xf32>
    %11 = arith.maximumf %8, %10 : vector<256x1xf32>
    %12 = arith.subf %8, %11 : vector<256x1xf32>
    %13 = math.exp %12 : vector<256x1xf32>
    %14 = vector.broadcast %11 : vector<256x1xf32> to vector<256x256xf32>
    %15 = arith.subf %7, %14 : vector<256x256xf32>
    %16 = math.exp %15 : vector<256x256xf32>
    %c0_9 = arith.constant 0 : index
    %c0_10 = arith.constant 0 : index
    %17 = vector.load %arg10[%c0_9, %c0_10] : memref<256x1xf32, #tpu.memory_space<vmem>>, vector<256x1xf32>
    %18 = arith.mulf %13, %17 : vector<256x1xf32>
    %cst_11 = arith.constant dense<0.000000e+00> : vector<256xf32>
    %19 = vector.multi_reduction <add>, %16, %cst_11 [1] : vector<256x256xf32> to vector<256xf32>
    %20 = vector.shape_cast %19 : vector<256xf32> to vector<256x1xf32>
    %21 = arith.addf %18, %20 : vector<256x1xf32>
    %c0_12 = arith.constant 0 : index
    %c0_13 = arith.constant 0 : index
    %22 = vector.load %arg10[%c0_12, %c0_13] : memref<256x1xf32, #tpu.memory_space<vmem>>, vector<256x1xf32>
    tpu.vector_store %arg10[%c0_12, %c0_13], %21 {strides = array<i32>} : memref<256x1xf32, #tpu.memory_space<vmem>>, vector<256x1xf32>,
    %c0_14 = arith.constant 0 : index
    %c0_15 = arith.constant 0 : index
    %c0_16 = arith.constant 0 : index
    %23 = vector.load %arg6[%c0_14, %c0_15, %c0_16] : memref<1x64x256xbf16, #tpu.memory_space<vmem>>, vector<1x64x256xbf16>
    %24 = vector.shape_cast %23 : vector<1x64x256xbf16> to vector<64x256xbf16>
    %25 = arith.truncf %16 : vector<256x256xf32> to vector<256x256xbf16>
    %cst_17 = arith.constant dense<0.000000e+00> : vector<256x64xf32>
    %26 = tpu.matmul %25, %24, %cst_17 {dimension_numbers = #tpu.dot_dimension_numbers<[1], [1], [0], [0], [0, 0, 1, 0], [], []>} : vector<256x256xbf16>, vector<64x256xbf16>, vector<256x64xf32> -> vector<256x64xf32>
    %c0_18 = arith.constant 0 : index
    %c0_19 = arith.constant 0 : index
    %27 = vector.load %arg11[%c0_18, %c0_19] : memref<256x64xf32, #tpu.memory_space<vmem>>, vector<256x64xf32>
    %28 = vector.broadcast %13 : vector<256x1xf32> to vector<256x64xf32>
    %29 = arith.mulf %28, %27 : vector<256x64xf32>
    %30 = arith.addf %29, %26 : vector<256x64xf32>
    %c0_20 = arith.constant 0 : index
    %c0_21 = arith.constant 0 : index
    %31 = vector.load %arg11[%c0_20, %c0_21] : memref<256x64xf32, #tpu.memory_space<vmem>>, vector<256x64xf32>
    tpu.vector_store %arg11[%c0_20, %c0_21], %30 {strides = array<i32>} : memref<256x64xf32, #tpu.memory_space<vmem>>, vector<256x64xf32>,
    %c0_22 = arith.constant 0 : index
    %c0_23 = arith.constant 0 : index
    %32 = vector.load %arg9[%c0_22, %c0_23] : memref<256x1xf32, #tpu.memory_space<vmem>>, vector<256x1xf32>
    tpu.vector_store %arg9[%c0_22, %c0_23], %11 {strides = array<i32>} : memref<256x1xf32, #tpu.memory_space<vmem>>, vector<256x1xf32>,
    %c0_i32_24 = arith.constant 0 : i32
    %33 = arith.cmpi eq, %arg2, %c0_i32_24 : i32
    %34 = arith.extui %33 : i1 to i32
    %c0_i32_25 = arith.constant 0 : i32
    %35 = arith.cmpi ne, %34, %c0_i32_25 : i32
    scf.if %35 {
      %c0_26 = arith.constant 0 : index
      %c0_27 = arith.constant 0 : index
      %36 = vector.load %arg10[%c0_26, %c0_27] : memref<256x1xf32, #tpu.memory_space<vmem>>, vector<256x1xf32>
      %37 = tpu.reciprocal %36 : vector<256x1xf32> -> vector<256x1xf32>
      %c0_28 = arith.constant 0 : index
      %c0_29 = arith.constant 0 : index
      %38 = vector.load %arg11[%c0_28, %c0_29] : memref<256x64xf32, #tpu.memory_space<vmem>>, vector<256x64xf32>
      %39 = vector.broadcast %37 : vector<256x1xf32> to vector<256x64xf32>
      %40 = arith.mulf %38, %39 : vector<256x64xf32>
      %c0_30 = arith.constant 0 : index
      %41 = memref.load %arg3[%c0_30] : memref<1xf32, #tpu.memory_space<smem>>
      %42 = tpu.transpose %40, [1, 0] : vector<256x64xf32> -> vector<64x256xf32>
      %43 = vector.broadcast %41 : f32 to vector<64x256xf32>
      %44 = arith.mulf %43, %42 : vector<64x256xf32>
      %c0_31 = arith.constant 0 : index
      %c0_32 = arith.constant 0 : index
      %c0_33 = arith.constant 0 : index
      %45 = vector.load %arg7[%c0_31, %c0_32, %c0_33] : memref<1x64x256xf32, #tpu.memory_space<vmem>>, vector<1x64x256xf32>
      %46 = vector.shape_cast %45 : vector<1x64x256xf32> to vector<64x256xf32>
      %47 = arith.addf %44, %46 : vector<64x256xf32>
      %c0_34 = arith.constant 0 : index
      %c0_35 = arith.constant 0 : index
      %c0_36 = arith.constant 0 : index
      %48 = vector.load %arg8[%c0_34, %c0_35, %c0_36] : memref<1x64x256xf32, #tpu.memory_space<vmem>>, vector<1x64x256xf32>
      %49 = vector.shape_cast %48 : vector<1x64x256xf32> to vector<64x256xf32>
      %50 = vector.shape_cast %47 : vector<64x256xf32> to vector<1x64x256xf32>
      tpu.vector_store %arg8[%c0_34, %c0_35, %c0_36], %50 {strides = array<i32>} : memref<1x64x256xf32, #tpu.memory_space<vmem>>, vector<1x64x256xf32>,
    } else {
    }
    return
  }
  func.func @transform_0(%arg0: i32, %arg1: i32, %arg2: i32) -> i32 {
    %c0_i32 = arith.constant 0 : i32
    %c0_i32_0 = arith.constant 0 : i32
    return %c0_i32 : i32
  }
  func.func @transform_1(%arg0: i32, %arg1: i32, %arg2: i32) -> (i32, i32, i32) {
    %c0_i32 = arith.constant 0 : i32
    %c0_i32_0 = arith.constant 0 : i32
    return %arg0, %arg1, %c0_i32 : i32, i32, i32
  }
  func.func @transform_2(%arg0: i32, %arg1: i32, %arg2: i32) -> (i32, i32, i32) {
    %c0_i32 = arith.constant 0 : i32
    %c0_i32_0 = arith.constant 0 : i32
    return %arg0, %c0_i32, %arg2 : i32, i32, i32
  }
  func.func @transform_3(%arg0: i32, %arg1: i32, %arg2: i32) -> (i32, i32, i32) {
    %c0_i32 = arith.constant 0 : i32
    %c0_i32_0 = arith.constant 0 : i32
    return %arg0, %c0_i32, %arg2 : i32, i32, i32
  }
  func.func @transform_4(%arg0: i32, %arg1: i32, %arg2: i32) -> (i32, i32, i32) {
    %c0_i32 = arith.constant 0 : i32
    %c0_i32_0 = arith.constant 0 : i32
    return %arg0, %c0_i32, %arg1 : i32, i32, i32
  }
  func.func @transform_5(%arg0: i32, %arg1: i32, %arg2: i32) -> (i32, i32, i32) {
    %c0_i32 = arith.constant 0 : i32
    %c0_i32_0 = arith.constant 0 : i32
    return %arg0, %c0_i32, %arg1 : i32, i32, i32
  }
}

module attributes {stable_mosaic.version = 11 : i64} {
  func.func @_qkv_proj_kernel(%arg0: i32, %arg1: i32, %arg2: memref<1x64x256xf32, #tpu.memory_space<vmem>>, %arg3: memref<80x64xbf16, #tpu.memory_space<vmem>>, %arg4: memref<80x1xf32, #tpu.memory_space<vmem>>, %arg5: memref<1x256x8xbf16, #tpu.memory_space<vmem>>, %arg6: memref<1x8x256xbf16, #tpu.memory_space<vmem>>, %arg7: memref<1x64x256xbf16, #tpu.memory_space<vmem>>) attributes {dimension_semantics = [#tpu.dimension_semantics<parallel>, #tpu.dimension_semantics<parallel>], iteration_bounds = array<i64: 2, 1>, scalar_prefetch = 0 : i64, scratch_operands = 0 : i64, tpu.core_type = #tpu.core_type<tc>, window_params = [{transform_indices = @transform_0, window_bounds = array<i64: 1, 64, 256>}, {pipeline_mode = #tpu.pipeline_mode<synchronous>, transform_indices = @transform_1, window_bounds = array<i64: 80, 64>}, {pipeline_mode = #tpu.pipeline_mode<synchronous>, transform_indices = @transform_2, window_bounds = array<i64: 80, 1>}, {transform_indices = @transform_3, window_bounds = array<i64: 1, 256, 8>}, {transform_indices = @transform_4, window_bounds = array<i64: 1, 8, 256>}, {transform_indices = @transform_5, window_bounds = array<i64: 1, 64, 256>}]} {
    %c0 = arith.constant 0 : index
    %c0_0 = arith.constant 0 : index
    %c0_1 = arith.constant 0 : index
    %0 = vector.load %arg2[%c0, %c0_0, %c0_1] : memref<1x64x256xf32, #tpu.memory_space<vmem>>, vector<1x64x256xf32>
    %1 = vector.shape_cast %0 : vector<1x64x256xf32> to vector<64x256xf32>
    %2 = arith.truncf %1 : vector<64x256xf32> to vector<64x256xbf16>
    %c0_2 = arith.constant 0 : index
    %c0_3 = arith.constant 0 : index
    %3 = vector.load %arg3[%c0_2, %c0_3] : memref<80x64xbf16, #tpu.memory_space<vmem>>, vector<80x64xbf16>
    %cst = arith.constant dense<0.000000e+00> : vector<80x256xf32>
    %4 = tpu.matmul %3, %2, %cst {dimension_numbers = #tpu.dot_dimension_numbers<[1], [0], [0], [1], [0, 0, 1, 1], [], []>} : vector<80x64xbf16>, vector<64x256xbf16>, vector<80x256xf32> -> vector<80x256xf32>
    %c0_4 = arith.constant 0 : index
    %c0_5 = arith.constant 0 : index
    %5 = vector.load %arg4[%c0_4, %c0_5] : memref<80x1xf32, #tpu.memory_space<vmem>>, vector<80x1xf32>
    %6 = vector.broadcast %5 : vector<80x1xf32> to vector<80x256xf32>
    %7 = arith.addf %4, %6 : vector<80x256xf32>
    %8 = vector.extract_strided_slice %7 {offsets = [0, 0], sizes = [8, 256], strides = [1, 1]} : vector<80x256xf32> to vector<8x256xf32>
    %9 = tpu.transpose %8, [1, 0] : vector<8x256xf32> -> vector<256x8xf32>
    %10 = arith.truncf %9 : vector<256x8xf32> to vector<256x8xbf16>
    %c0_6 = arith.constant 0 : index
    %c0_7 = arith.constant 0 : index
    %c0_8 = arith.constant 0 : index
    %11 = vector.load %arg5[%c0_6, %c0_7, %c0_8] : memref<1x256x8xbf16, #tpu.memory_space<vmem>>, vector<1x256x8xbf16>
    %12 = vector.shape_cast %11 : vector<1x256x8xbf16> to vector<256x8xbf16>
    %13 = vector.shape_cast %10 : vector<256x8xbf16> to vector<1x256x8xbf16>
    tpu.vector_store %arg5[%c0_6, %c0_7, %c0_8], %13 {strides = array<i32>} : memref<1x256x8xbf16, #tpu.memory_space<vmem>>, vector<1x256x8xbf16>,
    %14 = vector.extract_strided_slice %7 {offsets = [8, 0], sizes = [8, 256], strides = [1, 1]} : vector<80x256xf32> to vector<8x256xf32>
    %15 = arith.truncf %14 : vector<8x256xf32> to vector<8x256xbf16>
    %c0_9 = arith.constant 0 : index
    %c0_10 = arith.constant 0 : index
    %c0_11 = arith.constant 0 : index
    %16 = vector.load %arg6[%c0_9, %c0_10, %c0_11] : memref<1x8x256xbf16, #tpu.memory_space<vmem>>, vector<1x8x256xbf16>
    %17 = vector.shape_cast %16 : vector<1x8x256xbf16> to vector<8x256xbf16>
    %18 = vector.shape_cast %15 : vector<8x256xbf16> to vector<1x8x256xbf16>
    tpu.vector_store %arg6[%c0_9, %c0_10, %c0_11], %18 {strides = array<i32>} : memref<1x8x256xbf16, #tpu.memory_space<vmem>>, vector<1x8x256xbf16>,
    %19 = vector.extract_strided_slice %7 {offsets = [16, 0], sizes = [64, 256], strides = [1, 1]} : vector<80x256xf32> to vector<64x256xf32>
    %20 = arith.truncf %19 : vector<64x256xf32> to vector<64x256xbf16>
    %c0_12 = arith.constant 0 : index
    %c0_13 = arith.constant 0 : index
    %c0_14 = arith.constant 0 : index
    %21 = vector.load %arg7[%c0_12, %c0_13, %c0_14] : memref<1x64x256xbf16, #tpu.memory_space<vmem>>, vector<1x64x256xbf16>
    %22 = vector.shape_cast %21 : vector<1x64x256xbf16> to vector<64x256xbf16>
    %23 = vector.shape_cast %20 : vector<64x256xbf16> to vector<1x64x256xbf16>
    tpu.vector_store %arg7[%c0_12, %c0_13, %c0_14], %23 {strides = array<i32>} : memref<1x64x256xbf16, #tpu.memory_space<vmem>>, vector<1x64x256xbf16>,
    return
  }
  func.func @transform_0(%arg0: i32, %arg1: i32) -> (i32, i32, i32) {
    %c0_i32 = arith.constant 0 : i32
    %c0_i32_0 = arith.constant 0 : i32
    return %arg0, %c0_i32, %arg1 : i32, i32, i32
  }
  func.func @transform_1(%arg0: i32, %arg1: i32) -> (i32, i32) {
    %c0_i32 = arith.constant 0 : i32
    %c0_i32_0 = arith.constant 0 : i32
    %c0_i32_1 = arith.constant 0 : i32
    return %c0_i32, %c0_i32_0 : i32, i32
  }
  func.func @transform_2(%arg0: i32, %arg1: i32) -> (i32, i32) {
    %c0_i32 = arith.constant 0 : i32
    %c0_i32_0 = arith.constant 0 : i32
    %c0_i32_1 = arith.constant 0 : i32
    return %c0_i32, %c0_i32_0 : i32, i32
  }
  func.func @transform_3(%arg0: i32, %arg1: i32) -> (i32, i32, i32) {
    %c0_i32 = arith.constant 0 : i32
    %c0_i32_0 = arith.constant 0 : i32
    return %arg0, %arg1, %c0_i32 : i32, i32, i32
  }
  func.func @transform_4(%arg0: i32, %arg1: i32) -> (i32, i32, i32) {
    %c0_i32 = arith.constant 0 : i32
    %c0_i32_0 = arith.constant 0 : i32
    return %arg0, %c0_i32, %arg1 : i32, i32, i32
  }
  func.func @transform_5(%arg0: i32, %arg1: i32) -> (i32, i32, i32) {
    %c0_i32 = arith.constant 0 : i32
    %c0_i32_0 = arith.constant 0 : i32
    return %arg0, %c0_i32, %arg1 : i32, i32, i32
  }
}

</mosaic_0001>

<bundles_post_ra>
// kernel: _lambda_.2
= control target key start
LH: loop header
LB: loop body
LE: loop exit
PB: predicated region body
PF: predicated region fallthrough
CT: control target
= control target key end

     0   :  { %s1296_s18 = smov 0   ;;  %s1298_s19 = smov 0   ;;  %s1490_s0 = inlined_call_operand.vmem [shape: f32[2,64,256], index: 0, kind: input, shape index: {}]   ;;  %s1491_s1 = inlined_call_operand.vmem [shape: bf16[80,64], index: 1, kind: input, shape index: {}]   ;;  %s1492_s2 = inlined_call_operand.vmem [shape: f32[80,1], index: 2, kind: input, shape index: {}]   ;;  %s1493_s3 = inlined_call_operand.vmem [shape: bf16[2,256,8], index: 3, kind: output, shape index: {0}]   ;;  %s1494_s4 = inlined_call_operand.vmem [shape: bf16[2,8,256], index: 4, kind: output, shape index: {1}]   ;;  %s1495_s5 = inlined_call_operand.vmem [shape: bf16[2,64,256], index: 5, kind: output, shape index: {2}]  }
   0x1   :  { %s1300_s20 = smov 0  }
   0x2 LB: > { %s28_s21 = sadd.s32 1, %s1259_s19  ;;  %p1011_p0 = scmp.ge.s32.totalorder %s1263_s20, 1  ;;  %s1263_s20 = sphi %s1300_s20, %s16_s20   ;;  %s1259_s19 = sphi %s1298_s19, %s1497_s19   ;;  %s1255_s18 = sphi %s1296_s18, %s1496_s18  }
   0x3   : > { %p30_p1 = scmp.ge.s32.totalorder %s28_s21, 2  ;;  %p217_p2 = scmp.lt.s32.totalorder %s1263_s20, 3 }
   0x5   : > { %s1499_s21 = smov (%p30_p1, %s28_s21), 0  ;;  %p218_p3 = pnand %p1011_p0, %p217_p2 }
   0x6   : > { %p272_p4 = scmp.lt.s32.totalorder (!%p218_p3), %s1255_s18, 1  ;;  %v1265_v0 = vmov (!%p218_p3), 0   ;;  %v346_v1 = vld [vmem:[%s1492_s2] sm:$0xff] (!%p218_p3)  ;;  %v347_v15 = vld [vmem:[%s1492_s2 + $0x8] sm:$0xff] (!%p218_p3)  ;;  %v352_v27 = vld [vmem:[%s1492_s2 + $0x30] sm:$0xff] (!%p218_p3)  ;;  %vm431_vm0 = vcmask (!%p218_p3), 523264  }
   0x7   : > { %221 = sbr.rel (%p218_p3) target bundleno = 447 (0x1bf), region = 32  ;;  %479 = vmatprep.mubr.bf16.mxu0 (!%p218_p3), %v1265_v0  ;;  %509 = vmatprep.mubr.bf16.mxu1 (!%p218_p3), %v1265_v0  ;;  %v350_v22 = vld [vmem:[%s1492_s2 + $0x20] sm:$0xff] (!%p218_p3)  ;;  %v1237_v30 = vld [vmem:[%s1491_s1 + $0x18] sm:$0xff] (!%p218_p3)   ;;  %v1238_v32 = vld [vmem:[%s1491_s1 + $0x8] sm:$0xff] (!%p218_p3)   ;;  %vm722_vm1 = vcmask (!%p218_p3), 60416  }
   0x8   : > { %1152 = vset.pattern.permute.xlu0 (!%p218_p3), %v1265_v0  ;;  %1153 = vset.pattern.permute.xlu1 (!%p218_p3), %v1265_v0  ;;  %v1236_v29 = vld [vmem:[%s1491_s1] sm:$0xff] (!%p218_p3)   ;;  %v1240_v34 = vld [vmem:[%s1491_s1 + $0x10] sm:$0xff] (!%p218_p3)   ;;  %v349_v36 = vld [vmem:[%s1492_s2 + $0x18] sm:$0xff] (!%p218_p3) }
   0x9   : > { %358 = vperm.xlu0 (!%p218_p3), %1152, %v346_v1   ;;  %v354_v31 = vld [vmem:[%s1492_s2 + $0x40] sm:$0xff] (!%p218_p3)  ;;  %v348_v35 = vld [vmem:[%s1492_s2 + $0x10] sm:$0xff] (!%p218_p3)  ;;  %v351_v37 = vld [vmem:[%s1492_s2 + $0x28] sm:$0xff] (!%p218_p3) }
   0xa   : > { %v1239_v33 = vld [vmem:[%s1491_s1 + $0x20] sm:$0xff] (!%p218_p3)   ;;  %368 = vperm.xlu1 (!%p218_p3), %1153, %v348_v35   ;;  %v353_v38 = vld [vmem:[%s1492_s2 + $0x38] sm:$0xff] (!%p218_p3)  ;;  %v355_v39 = vld [vmem:[%s1492_s2 + $0x48] sm:$0xff] (!%p218_p3) }
   0xd   : > { %363 = vperm.xlu0 (!%p218_p3), %1152, %v347_v15  }
   0xe   : > { %s1501_s18 = smov (!%p272_p4, %s1255_s18), 1  ;;  %373 = vperm.xlu1 %1153, %v349_v36  }
   0xf   : > { %s1073_s22 = sshll.u32 %s1501_s18, 7  ;;  %s1076_s11 = sshll.u32 %s1501_s18, 6 }
  0x10   : > { %s1326_s25 = scalar_lea.vmem %s1490_s0, %s1073_s22  ;;  %s1075_s12 = sshll.u32 %s1501_s18, 3 }
  0x11   : > { %v313_v2 = vld [vmem:[%s1326_s25 + $0x8] sm:$0xff]  ;;  %v315_v3 = vld [vmem:[%s1326_s25 + $0x18] sm:$0xff]  ;;  %v312_v4 = vld [vmem:[%s1326_s25] sm:$0xff]  ;;  %378 = vperm.xlu0 %1152, %v350_v22   ;;  %s1397_s15 = scalar_lea.vmem %s1495_s5, %s1076_s11  ;;  %s299_s23 = scalar_lea.vmem %s1494_s4, %s1075_s12 }
  0x12   : > { %v329_v5 = vpack.c.bf16 %v315_v3, %v313_v2  ;;  %v314_v6 = vld [vmem:[%s1326_s25 + $0x10] sm:$0xff]  ;;  %v317_v7 = vld [vmem:[%s1326_s25 + $0x28] sm:$0xff]  ;;  %v319_v8 = vld [vmem:[%s1326_s25 + $0x38] sm:$0xff]  ;;  %383 = vperm.xlu1 %1153, %v351_v37   ;;  %s1415_s26 = scalar_lea.vmem %s1493_s3, %s1073_s22 }
  0x13   : > { %v328_v9 = vpack.c.bf16 %v314_v6, %v312_v4  ;;  %v331_v10 = vpack.c.bf16 %v319_v8, %v317_v7  ;;  %v316_v11 = vld [vmem:[%s1326_s25 + $0x20] sm:$0xff]  ;;  %v318_v12 = vld [vmem:[%s1326_s25 + $0x30] sm:$0xff]  ;;  %v321_v13 = vld [vmem:[%s1326_s25 + $0x48] sm:$0xff] }
  0x14   : > { %447 = vmatprep.subr.bf16.mxu0 %v329_v5  ;;  %1118 = vmatprep.subr.bf16.mxu1 %v329_v5  ;;  %v323_v14 = vld [vmem:[%s1326_s25 + $0x58] sm:$0xff]  ;;  %v330_v16 = vpack.c.bf16 %v318_v12, %v316_v11  ;;  %v320_v18 = vld [vmem:[%s1326_s25 + $0x40] sm:$0xff]  ;;  %v322_v19 = vld [vmem:[%s1326_s25 + $0x50] sm:$0xff] }
  0x15   : > { %448 = vmatpush1.bf16.msra.mxu0 %v328_v9  ;;  %1122 = vmatpush1.bf16.msra.mxu1 %v328_v9  ;;  %v333_v17 = vpack.c.bf16 %v323_v14, %v321_v13  ;;  %v325_v20 = vld [vmem:[%s1326_s25 + $0x68] sm:$0xff]  ;;  %v327_v21 = vld [vmem:[%s1326_s25 + $0x78] sm:$0xff]  ;;  %v332_v23 = vpack.c.bf16 %v322_v19, %v320_v18  ;;  %v324_v25 = vld [vmem:[%s1326_s25 + $0x60] sm:$0xff] }
  0x16   : > { %449 = vmatprep.subr.bf16.mxu0 %v331_v10  ;;  %1119 = vmatprep.subr.bf16.mxu1 %v331_v10  ;;  %v335_v24 = vpack.c.bf16 %v327_v21, %v325_v20  ;;  %v326_v26 = vld [vmem:[%s1326_s25 + $0x70] sm:$0xff] }
  0x17   : > { %v334_v28 = vpack.c.bf16 %v326_v26, %v324_v25  ;;  %388 = vperm.xlu0 %1152, %v352_v27   ;;  %393 = vperm.xlu1 %1153, %v353_v38  }
  0x19   : > { %450 = vmatpush1.bf16.msra.mxu0 %v330_v16  ;;  %1123 = vmatpush1.bf16.msra.mxu1 %v330_v16 }
  0x1a   : > { %451 = vmatprep.subr.bf16.mxu0 %v333_v17  ;;  %1120 = vmatprep.subr.bf16.mxu1 %v333_v17 }
  0x1b   : > { %398 = vperm.xlu0 %1152, %v354_v31   ;;  %403 = vperm.xlu1 %1153, %v355_v39  }
  0x1d   : > { %452 = vmatpush1.bf16.msra.mxu0 %v332_v23  ;;  %1124 = vmatpush1.bf16.msra.mxu1 %v332_v23 }
  0x1e   : > { %453 = vmatprep.subr.bf16.mxu0 %v335_v24  ;;  %1121 = vmatprep.subr.bf16.mxu1 %v335_v24 }
  0x21   : > { %454 = vmatpush1.bf16.msra.mxu0 %v334_v28  ;;  %1125 = vmatpush1.bf16.msra.mxu1 %v334_v28 }
  0x24   : > { %1025 = vmatmul.mubr.msk.bf16.vlgmr.msra.gmra.mrb[0].mxu0 %vm431_vm0, %v1236_v29  ;;  %1028 = vmatmul.mubr.msk.bf16.vlgmr.msra.gmra.mrb[0].mxu1 %vm431_vm0, %v1237_v30 }
  0x25   : > { %489 = vmatprep.mubr.bf16.mxu0 %v1265_v0  ;;  %519 = vmatprep.mubr.bf16.mxu1 %v1265_v0 }
  0x2c   : > { %1026 = vmatmul.mubr.msk.bf16.gmra.mrb[4].mxu0 %vm431_vm0, %v1238_v32  ;;  %1029 = vmatmul.mubr.msk.bf16.gmra.mrb[4].mxu1 %vm431_vm0, %v1239_v33 }
  0x2d   : > { %499 = vmatprep.mubr.bf16.mxu0 %v1265_v0 }
  0x34   : > { %1027 = vmatmul.mubr.msk.bf16.gmra.mrb[8].mxu0 %vm431_vm0, %v1240_v34 }
  0x88   : > { %v359_v40 = vpop.permute.xlu0 %358 }
  0x89   : > { %v369_v12 = vpop.permute.xlu1 %368 }
  0x8c   : > { %v364_v41 = vpop.permute.xlu0 %363 }
  0x8d   : > { %v374_v16 = vpop.permute.xlu1 %373 }
  0x90   : > { %v379_v42 = vpop.permute.xlu0 %378 }
  0x91   : > { %v384_v20 = vpop.permute.xlu1 %383 }
  0x96   : > { %v389_v43 = vpop.permute.xlu0 %388  ;;  %v394_v21 = vpop.permute.xlu1 %393 }
  0x9a   : > { %v399_v61 = vpop.permute.xlu0 %398  ;;  %v404_v27 = vpop.permute.xlu1 %403 }
  0xf7   : > { %v481_v44 = vpop.f32.mrb[0].mxu0  ;;  %v511_v45 = vpop.f32.mrb[0].mxu1 }
  0xf8   : > { %v482_v46 = vadd.f32 %v481_v44, %v359_v40  ;;  %v512_v47 = vadd.f32 %v511_v45, %v389_v43  ;;  %v483_v48 = vpop.f32.mrb[1].mxu0  ;;  %v513_v49 = vpop.f32.mrb[1].mxu1 }
  0xf9   : > { %v484_v50 = vadd.f32 %v483_v48, %v359_v40  ;;  %v514_v51 = vadd.f32 %v513_v49, %v389_v43  ;;  %v485_v52 = vpop.f32.mrb[2].mxu0  ;;  %v515_v53 = vpop.f32.mrb[2].mxu1 }
  0xfa   : > { %v486_v54 = vadd.f32 %v485_v52, %v364_v41  ;;  %v487_v55 = vpop.f32.mrb[3].mxu0  ;;  %v517_v56 = vpop.f32.mrb[3].mxu1  ;;  %v516_v22 = vadd.f32 %v515_v53, %v394_v21 }
  0xfb   : > { %v1154_v57 = vpack.i.bf16 %v484_v50, %v482_v46  ;;  %v1114_v58 = vpack.c.bf16 %v514_v51, %v512_v47  ;;  %v488_v59 = vadd.f32 %v487_v55, %v364_v41  ;;  %v518_v23 = vadd.f32 %v517_v56, %v394_v21 }
  0xfd   : > { %816 = vst [vmem:[%s1397_s15 + $0x20] sm:$0xff] %v1114_v58  ;;  %v1109_v60 = vpack.c.bf16 %v488_v59, %v486_v54  ;;  %1155 = vxpose.xlu0.b32.start.end [1/1] (short) %v1154_v57, 128  ;;  %v1115_v24 = vpack.c.bf16 %v518_v23, %v516_v22 }
  0xff   : > { %763 = vst [vmem:[%s299_s23] sm:$0xff] %v1109_v60  ;;  %v521_v62 = vpop.f32.mrb[4].mxu1  ;;  %v491_v63 = vpop.f32.mrb[4].mxu0  ;;  %817 = vst [vmem:[%s1397_s15 + $0x28] sm:$0xff] %v1115_v24 }
 0x100   : > { %v522_v0 = vadd.f32 %v521_v62, %v399_v61  ;;  %v523_v1 = vpop.f32.mrb[5].mxu1  ;;  %v493_v2 = vpop.f32.mrb[5].mxu0  ;;  %v492_v13 = vadd.f32 %v491_v63, %v369_v12 }
 0x101   : > { %v524_v3 = vadd.f32 %v523_v1, %v399_v61  ;;  %v495_v4 = vpop.f32.mrb[6].mxu0  ;;  %v494_v14 = vadd.f32 %v493_v2, %v369_v12  ;;  %v525_v26 = vpop.f32.mrb[6].mxu1 }
 0x102   : > { %v497_v5 = vpop.f32.mrb[7].mxu0  ;;  %v496_v17 = vadd.f32 %v495_v4, %v374_v16  ;;  %v526_v30 = vadd.f32 %v525_v26, %v404_v27  ;;  %v527_v32 = vpop.f32.mrb[7].mxu1 }
 0x103   : > { %v1116_v6 = vpack.c.bf16 %v524_v3, %v522_v0  ;;  %v1110_v15 = vpack.c.bf16 %v494_v14, %v492_v13  ;;  %v498_v18 = vadd.f32 %v497_v5, %v374_v16  ;;  %v528_v33 = vadd.f32 %v527_v32, %v404_v27 }
 0x105   : > { %818 = vst [vmem:[%s1397_s15 + $0x30] sm:$0xff] %v1116_v6  ;;  %812 = vst [vmem:[%s1397_s15] sm:$0xff] %v1110_v15  ;;  %v1111_v19 = vpack.c.bf16 %v498_v18, %v496_v17  ;;  %v1117_v35 = vpack.c.bf16 %v528_v33, %v526_v30 }
 0x107   : > { %v501_v7 = vpop.f32.mrb[8].mxu0  ;;  %813 = vst [vmem:[%s1397_s15 + $0x8] sm:$0xff] %v1111_v19  ;;  %819 = vst [vmem:[%s1397_s15 + $0x38] sm:$0xff] %v1117_v35 }
 0x108   : > { %v502_v8 = vadd.f32 %v501_v7, %v379_v42  ;;  %v503_v9 = vpop.f32.mrb[9].mxu0 }
 0x109   : > { %v504_v10 = vadd.f32 %v503_v9, %v379_v42  ;;  %v505_v25 = vpop.f32.mrb[10].mxu0 }
 0x10a   : > { %v507_v28 = vpop.f32.mrb[11].mxu0  ;;  %v506_v29 = vadd.f32 %v505_v25, %v384_v20 }
 0x10b   : > { %v1112_v11 = vpack.c.bf16 %v504_v10, %v502_v8  ;;  %v508_v31 = vadd.f32 %v507_v28, %v384_v20 }
 0x10d   : > { %814 = vst [vmem:[%s1397_s15 + $0x10] sm:$0xff] %v1112_v11  ;;  %v1113_v34 = vpack.c.bf16 %v508_v31, %v506_v29 }
 0x10f   : > { %815 = vst [vmem:[%s1397_s15 + $0x18] sm:$0xff] %v1113_v34 }
 0x17d   : > { %v1156_v36 = vpop.trf.xlu0 }
 0x17e   : > { %v1160_v37 = vunpack.i.h.bf16 %v1156_v36  ;;  %v1157_v38 = vunpack.i.l.bf16 %v1156_v36 }
 0x180   : > { %v1093_v39 = vpack.c.bf16 %v1160_v37, %v1160_v37  ;;  %v1077_v40 = vpack.c.bf16 %v1157_v38, %v1157_v38 }
 0x181   : > { %v1161_v41 = vpop.trf.xlu0 }
 0x182   : > { %739 = vst.msk [vmem:[%s1415_s26 + $0x40] sm:$0xf] %vm722_vm1, %v1093_v39  ;;  %723 = vst.msk [vmem:[%s1415_s26] sm:$0xf] %vm722_vm1, %v1077_v40  ;;  %v1165_v42 = vunpack.i.h.bf16 %v1161_v41  ;;  %v1162_v43 = vunpack.i.l.bf16 %v1161_v41 }
 0x184   : > { %v1094_v44 = vpack.c.bf16 %v1165_v42, %v1165_v42  ;;  %v1078_v45 = vpack.c.bf16 %v1162_v43, %v1162_v43 }
 0x185   : > { %v1166_v46 = vpop.trf.xlu0 }
 0x186   : > { %740 = vst.msk [vmem:[%s1415_s26 + $0x44] sm:$0xf] %vm722_vm1, %v1094_v44  ;;  %724 = vst.msk [vmem:[%s1415_s26 + $0x4] sm:$0xf] %vm722_vm1, %v1078_v45  ;;  %v1170_v47 = vunpack.i.h.bf16 %v1166_v46  ;;  %v1167_v48 = vunpack.i.l.bf16 %v1166_v46 }
 0x188   : > { %v1095_v49 = vpack.c.bf16 %v1170_v47, %v1170_v47  ;;  %v1079_v50 = vpack.c.bf16 %v1167_v48, %v1167_v48 }
 0x189   : > { %v1171_v51 = vpop.trf.xlu0 }
 0x18a   : > { %741 = vst.msk [vmem:[%s1415_s26 + $0x48] sm:$0xf] %vm722_vm1, %v1095_v49  ;;  %725 = vst.msk [vmem:[%s1415_s26 + $0x8] sm:$0xf] %vm722_vm1, %v1079_v50  ;;  %v1175_v52 = vunpack.i.h.bf16 %v1171_v51  ;;  %v1172_v53 = vunpack.i.l.bf16 %v1171_v51 }
 0x18c   : > { %v1096_v54 = vpack.c.bf16 %v1175_v52, %v1175_v52  ;;  %v1080_v55 = vpack.c.bf16 %v1172_v53, %v1172_v53 }
 0x18d   : > { %v1176_v56 = vpop.trf.xlu0 }
 0x18e   : > { %742 = vst.msk [vmem:[%s1415_s26 + $0x4c] sm:$0xf] %vm722_vm1, %v1096_v54  ;;  %726 = vst.msk [vmem:[%s1415_s26 + $0xc] sm:$0xf] %vm722_vm1, %v1080_v55  ;;  %v1180_v57 = vunpack.i.h.bf16 %v1176_v56  ;;  %v1177_v58 = vunpack.i.l.bf16 %v1176_v56 }
 0x190   : > { %v1097_v59 = vpack.c.bf16 %v1180_v57, %v1180_v57  ;;  %v1081_v60 = vpack.c.bf16 %v1177_v58, %v1177_v58 }
 0x191   : > { %v1181_v61 = vpop.trf.xlu0 }
 0x192   : > { %743 = vst.msk [vmem:[%s1415_s26 + $0x50] sm:$0xf] %vm722_vm1, %v1097_v59  ;;  %727 = vst.msk [vmem:[%s1415_s26 + $0x10] sm:$0xf] %vm722_vm1, %v1081_v60  ;;  %v1185_v62 = vunpack.i.h.bf16 %v1181_v61  ;;  %v1182_v63 = vunpack.i.l.bf16 %v1181_v61 }
 0x194   : > { %v1098_v0 = vpack.c.bf16 %v1185_v62, %v1185_v62  ;;  %v1082_v1 = vpack.c.bf16 %v1182_v63, %v1182_v63 }
 0x195   : > { %v1186_v2 = vpop.trf.xlu0 }
 0x196   : > { %744 = vst.msk [vmem:[%s1415_s26 + $0x54] sm:$0xf] %vm722_vm1, %v1098_v0  ;;  %728 = vst.msk [vmem:[%s1415_s26 + $0x14] sm:$0xf] %vm722_vm1, %v1082_v1  ;;  %v1190_v3 = vunpack.i.h.bf16 %v1186_v2  ;;  %v1187_v4 = vunpack.i.l.bf16 %v1186_v2 }
 0x198   : > { %v1099_v5 = vpack.c.bf16 %v1190_v3, %v1190_v3  ;;  %v1083_v6 = vpack.c.bf16 %v1187_v4, %v1187_v4 }
 0x199   : > { %v1191_v7 = vpop.trf.xlu0 }
 0x19a   : > { %745 = vst.msk [vmem:[%s1415_s26 + $0x58] sm:$0xf] %vm722_vm1, %v1099_v5  ;;  %729 = vst.msk [vmem:[%s1415_s26 + $0x18] sm:$0xf] %vm722_vm1, %v1083_v6  ;;  %v1195_v8 = vunpack.i.h.bf16 %v1191_v7  ;;  %v1192_v9 = vunpack.i.l.bf16 %v1191_v7 }
 0x19c   : > { %v1100_v10 = vpack.c.bf16 %v1195_v8, %v1195_v8  ;;  %v1084_v11 = vpack.c.bf16 %v1192_v9, %v1192_v9 }
 0x19d   : > { %v1196_v12 = vpop.trf.xlu0 }
 0x19e   : > { %746 = vst.msk [vmem:[%s1415_s26 + $0x5c] sm:$0xf] %vm722_vm1, %v1100_v10  ;;  %730 = vst.msk [vmem:[%s1415_s26 + $0x1c] sm:$0xf] %vm722_vm1, %v1084_v11  ;;  %v1200_v13 = vunpack.i.h.bf16 %v1196_v12  ;;  %v1197_v14 = vunpack.i.l.bf16 %v1196_v12 }
 0x1a0   : > { %v1101_v15 = vpack.c.bf16 %v1200_v13, %v1200_v13  ;;  %v1085_v16 = vpack.c.bf16 %v1197_v14, %v1197_v14 }
 0x1a1   : > { %v1201_v17 = vpop.trf.xlu0 }
 0x1a2   : > { %747 = vst.msk [vmem:[%s1415_s26 + $0x60] sm:$0xf] %vm722_vm1, %v1101_v15  ;;  %731 = vst.msk [vmem:[%s1415_s26 + $0x20] sm:$0xf] %vm722_vm1, %v1085_v16  ;;  %v1205_v18 = vunpack.i.h.bf16 %v1201_v17  ;;  %v1202_v19 = vunpack.i.l.bf16 %v1201_v17 }
 0x1a4   : > { %v1102_v20 = vpack.c.bf16 %v1205_v18, %v1205_v18  ;;  %v1086_v21 = vpack.c.bf16 %v1202_v19, %v1202_v19 }
 0x1a5   : > { %v1206_v22 = vpop.trf.xlu0 }
 0x1a6   : > { %748 = vst.msk [vmem:[%s1415_s26 + $0x64] sm:$0xf] %vm722_vm1, %v1102_v20  ;;  %732 = vst.msk [vmem:[%s1415_s26 + $0x24] sm:$0xf] %vm722_vm1, %v1086_v21  ;;  %v1210_v23 = vunpack.i.h.bf16 %v1206_v22  ;;  %v1207_v24 = vunpack.i.l.bf16 %v1206_v22 }
 0x1a8   : > { %v1103_v25 = vpack.c.bf16 %v1210_v23, %v1210_v23  ;;  %v1087_v26 = vpack.c.bf16 %v1207_v24, %v1207_v24 }
 0x1a9   : > { %v1211_v27 = vpop.trf.xlu0 }
 0x1aa   : > { %749 = vst.msk [vmem:[%s1415_s26 + $0x68] sm:$0xf] %vm722_vm1, %v1103_v25  ;;  %733 = vst.msk [vmem:[%s1415_s26 + $0x28] sm:$0xf] %vm722_vm1, %v1087_v26  ;;  %v1215_v28 = vunpack.i.h.bf16 %v1211_v27  ;;  %v1212_v29 = vunpack.i.l.bf16 %v1211_v27 }
 0x1ac   : > { %v1104_v30 = vpack.c.bf16 %v1215_v28, %v1215_v28  ;;  %v1088_v31 = vpack.c.bf16 %v1212_v29, %v1212_v29 }
 0x1ad   : > { %v1216_v32 = vpop.trf.xlu0 }
 0x1ae   : > { %750 = vst.msk [vmem:[%s1415_s26 + $0x6c] sm:$0xf] %vm722_vm1, %v1104_v30  ;;  %734 = vst.msk [vmem:[%s1415_s26 + $0x2c] sm:$0xf] %vm722_vm1, %v1088_v31  ;;  %v1220_v33 = vunpack.i.h.bf16 %v1216_v32  ;;  %v1217_v34 = vunpack.i.l.bf16 %v1216_v32 }
 0x1b0   : > { %v1105_v35 = vpack.c.bf16 %v1220_v33, %v1220_v33  ;;  %v1089_v36 = vpack.c.bf16 %v1217_v34, %v1217_v34 }
 0x1b1   : > { %v1221_v37 = vpop.trf.xlu0 }
 0x1b2   : > { %751 = vst.msk [vmem:[%s1415_s26 + $0x70] sm:$0xf] %vm722_vm1, %v1105_v35  ;;  %735 = vst.msk [vmem:[%s1415_s26 + $0x30] sm:$0xf] %vm722_vm1, %v1089_v36  ;;  %v1225_v38 = vunpack.i.h.bf16 %v1221_v37  ;;  %v1222_v39 = vunpack.i.l.bf16 %v1221_v37 }
 0x1b4   : > { %v1106_v40 = vpack.c.bf16 %v1225_v38, %v1225_v38  ;;  %v1090_v41 = vpack.c.bf16 %v1222_v39, %v1222_v39 }
 0x1b5   : > { %v1226_v42 = vpop.trf.xlu0 }
 0x1b6   : > { %752 = vst.msk [vmem:[%s1415_s26 + $0x74] sm:$0xf] %vm722_vm1, %v1106_v40  ;;  %736 = vst.msk [vmem:[%s1415_s26 + $0x34] sm:$0xf] %vm722_vm1, %v1090_v41  ;;  %v1230_v43 = vunpack.i.h.bf16 %v1226_v42  ;;  %v1227_v44 = vunpack.i.l.bf16 %v1226_v42 }
 0x1b8   : > { %v1107_v45 = vpack.c.bf16 %v1230_v43, %v1230_v43  ;;  %v1091_v46 = vpack.c.bf16 %v1227_v44, %v1227_v44 }
 0x1b9   : > { %v1231_v47 = vpop.trf.xlu0 }
 0x1ba   : > { %753 = vst.msk [vmem:[%s1415_s26 + $0x78] sm:$0xf] %vm722_vm1, %v1107_v45  ;;  %737 = vst.msk [vmem:[%s1415_s26 + $0x38] sm:$0xf] %vm722_vm1, %v1091_v46  ;;  %v1235_v48 = vunpack.i.h.bf16 %v1231_v47  ;;  %v1232_v49 = vunpack.i.l.bf16 %v1231_v47 }
 0x1bc   : > { %v1108_v50 = vpack.c.bf16 %v1235_v48, %v1235_v48  ;;  %v1092_v51 = vpack.c.bf16 %v1232_v49, %v1232_v49 }
 0x1be   : > { %754 = vst.msk [vmem:[%s1415_s26 + $0x7c] sm:$0xf] %vm722_vm1, %v1108_v50  ;;  %738 = vst.msk [vmem:[%s1415_s26 + $0x3c] sm:$0xf] %vm722_vm1, %v1092_v51 }
 0x1bf PF: > { %s16_s20 = sadd.s32 1, %s1263_s20   ;;  %s1496_s18 = smov %s1259_s19 }
 0x1c0   : > { %p13_p5 = scmp.ge.s32.totalorder %s16_s20, 4   ;;  %s1497_s19 = smov %s1499_s21 }
 0x1c2   :  { %15 = sbr.rel (!%p13_p5) target bundleno = 2 (0x2), region = 86 }

// kernel: _lambda_.3
= control target key start
LH: loop header
LB: loop body
LE: loop exit
PB: predicated region body
PF: predicated region fallthrough
CT: control target
= control target key end

     0   :  { %s3258_s20 = smov 0   ;;  %s3260_s21 = smov 0   ;;  %s4556_s0 = inlined_call_operand.<no memory space> [shape: f32[1], index: 0, kind: input, shape index: {}]   ;;  %s4557_s1 = inlined_call_operand.vmem [shape: bf16[2,256,8], index: 1, kind: input, shape index: {}]   ;;  %s4558_s2 = inlined_call_operand.vmem [shape: bf16[2,8,256], index: 2, kind: input, shape index: {}]   ;;  %s4559_s3 = inlined_call_operand.vmem [shape: bf16[2,64,256], index: 3, kind: input, shape index: {}]   ;;  %s4560_s4 = inlined_call_operand.vmem [shape: f32[2,64,256], index: 4, kind: input, shape index: {}]   ;;  %s4561_s5 = inlined_call_operand.vmem [shape: f32[2,64,256], index: 5, kind: output, shape index: {}]  }
   0x1   :  { %10 = sst [smem:[#allocation5]] %s4556_s0  ;;  %s3262_s22 = smov 0  }
   0x2 LB: > { %s35_s0 = sadd.s32 1, %s3216_s21  ;;  %p2814_p0 = scmp.ge.s32.totalorder %s3220_s22, 1  ;;  %s3220_s22 = sphi %s3262_s22, %s16_s22   ;;  %s3216_s21 = sphi %s3260_s21, %s4773_s21   ;;  %s3212_s20 = sphi %s3258_s20, %s4772_s20  }
   0x3   : > { %p37_p1 = scmp.ge.s32.totalorder %s35_s0, 2  ;;  %p267_p2 = scmp.lt.s32.totalorder %s3220_s22, 3 }
   0x5   : > { %s4775_s0 = smov (%p37_p1, %s35_s0), 0  ;;  %p268_p3 = pnand %p2814_p0, %p267_p2 }
   0x7   : > { %271 = sbr.rel (%p268_p3) target bundleno = 1080 (0x438), region = 40 }
   0xe   : > { %p331_p4 = scmp.lt.s32.totalorder %s3212_s20, 1  ;;  %v3222_v0 = vmov 0   ;;  %vm650_vm0 = vcmask 1043456   ;;  %vm601_vm1 = vcmask 64512   ;;  %vm385_vm2 = vcmask 7168   ;;  %s2536_s10 = sld [smem:[#allocation5]] }
   0xf   : > { %689 = vmatprep.mubr.bf16.mxu0 %v3222_v0  ;;  %2910 = vset.pattern.permute.xlu0 %v3222_v0  ;;  %v3223_v21 = vmov -inf   ;;  %v4562_v46 = vmov 0.0   ;;  %vm450_vm3 = vcmask 523264  }
  0x10   : > { %s4777_s20 = smov (!%p331_p4, %s3212_s20), 1  ;;  %2911 = vset.pattern.permute.xlu1 %v3222_v0  ;;  %386 = vst.msk [vmem:[#allocation2] sm:$0xff] %vm385_vm2, %v3223_v21  ;;  %387 = vst.msk [vmem:[#allocation2 + $0x8] sm:$0xff] %vm385_vm2, %v3223_v21 }
  0x11   : > { %s3279_s23 = sshll.u32 %s4777_s20, 7  ;;  %s2871_s24 = sshll.u32 %s4777_s20, 3  ;;  %388 = vst.msk [vmem:[#allocation2 + $0x10] sm:$0xff] %vm385_vm2, %v3223_v21  ;;  %389 = vst.msk [vmem:[#allocation2 + $0x18] sm:$0xff] %vm385_vm2, %v3223_v21 }
  0x12   : > { %s3285_s27 = scalar_lea.vmem %s4557_s1, %s3279_s23  ;;  %s348_s30 = scalar_lea.vmem %s4558_s2, %s2871_s24  ;;  %390 = vst.msk [vmem:[#allocation2 + $0x20] sm:$0xff] %vm385_vm2, %v3223_v21  ;;  %391 = vst.msk [vmem:[#allocation2 + $0x28] sm:$0xff] %vm385_vm2, %v3223_v21 }
  0x13   : > { %v515_v1 = vld [vmem:[%s348_s30] sm:$0xff]  ;;  %v2915_v6 = vld [vmem:[%s3285_s27 + $0x8] sm:$0xff]   ;;  %s2872_s6 = sshll.u32 %s4777_s20, 6  ;;  %v2916_v7 = vld [vmem:[%s3285_s27 + $0x10] sm:$0xff]   ;;  %392 = vst.msk [vmem:[#allocation2 + $0x30] sm:$0xff] %vm385_vm2, %v3223_v21  ;;  %s4489_s13 = scalar_lea.vmem %s4560_s4, %s3279_s23 }
  0x14   : > { %v2842_v2 = vcombine.high %v515_v1, %v515_v1  ;;  %v2841_v3 = vcombine.low %v515_v1, %v515_v1  ;;  %v2914_v5 = vld [vmem:[%s3285_s27] sm:$0xff]   ;;  %s3297_s9 = scalar_lea.vmem %s4559_s3, %s2872_s6  ;;  %v2917_v8 = vld [vmem:[%s3285_s27 + $0x18] sm:$0xff]   ;;  %v2919_v10 = vld [vmem:[%s3285_s27 + $0x28] sm:$0xff]   ;;  %393 = vst.msk [vmem:[#allocation2 + $0x38] sm:$0xff] %vm385_vm2, %v3223_v21  ;;  %s4499_s16 = scalar_lea.vmem %s4561_s5, %s3279_s23 }
  0x15   : > { %v2918_v9 = vld [vmem:[%s3285_s27 + $0x20] sm:$0xff]   ;;  %v2920_v11 = vld [vmem:[%s3285_s27 + $0x30] sm:$0xff]   ;;  %v2921_v12 = vld [vmem:[%s3285_s27 + $0x38] sm:$0xff]   ;;  %394 = vst.msk [vmem:[#allocation2 + $0x40] sm:$0xff] %vm385_vm2, %v3223_v21 }
  0x16   : > { %2843 = vmatprep.subr.msk.bf16.mxu0 %vm650_vm0, %v2842_v2  ;;  %v652_v4 = vsel %vm650_vm0, %v2841_v3, 0  ;;  %v2922_v13 = vld [vmem:[%s3285_s27 + $0x40] sm:$0xff]   ;;  %v2923_v14 = vld [vmem:[%s3285_s27 + $0x48] sm:$0xff]   ;;  %v2924_v15 = vld [vmem:[%s3285_s27 + $0x50] sm:$0xff]   ;;  %395 = vst.msk [vmem:[#allocation2 + $0x48] sm:$0xff] %vm385_vm2, %v3223_v21 }
  0x17   : > { %658 = vmatpush1.bf16.msra.mxu0 %v652_v4  ;;  %v2925_v16 = vld [vmem:[%s3285_s27 + $0x58] sm:$0xff]   ;;  %v2926_v17 = vld [vmem:[%s3285_s27 + $0x60] sm:$0xff]   ;;  %v2927_v18 = vld [vmem:[%s3285_s27 + $0x68] sm:$0xff]   ;;  %396 = vst.msk [vmem:[#allocation2 + $0x50] sm:$0xff] %vm385_vm2, %v3223_v21 }
  0x18   : > { %v2928_v19 = vld [vmem:[%s3285_s27 + $0x70] sm:$0xff]   ;;  %v2929_v20 = vld [vmem:[%s3285_s27 + $0x78] sm:$0xff]   ;;  %397 = vst.msk [vmem:[#allocation2 + $0x58] sm:$0xff] %vm385_vm2, %v3223_v21  ;;  %398 = vst.msk [vmem:[#allocation2 + $0x60] sm:$0xff] %vm385_vm2, %v3223_v21 }
  0x19   : > { %399 = vst.msk [vmem:[#allocation2 + $0x68] sm:$0xff] %vm385_vm2, %v3223_v21  ;;  %400 = vst.msk [vmem:[#allocation2 + $0x70] sm:$0xff] %vm385_vm2, %v3223_v21 }
  0x1a   : > { %2844 = vmatmul.mubr.msk.bf16.vlgmr.msra.gmra.mrb[0].mxu0 %vm601_vm1, %v2914_v5  ;;  %401 = vst.msk [vmem:[#allocation2 + $0x78] sm:$0xff] %vm385_vm2, %v3223_v21  ;;  %402 = vst.msk [vmem:[#allocation2 + $0x80] sm:$0xff] %vm385_vm2, %v3223_v21 }
  0x1b   : > { %699 = vmatprep.mubr.bf16.mxu0 %v3222_v0  ;;  %403 = vst.msk [vmem:[#allocation2 + $0x88] sm:$0xff] %vm385_vm2, %v3223_v21  ;;  %404 = vst.msk [vmem:[#allocation2 + $0x90] sm:$0xff] %vm385_vm2, %v3223_v21 }
  0x1c   : > { %405 = vst.msk [vmem:[#allocation2 + $0x98] sm:$0xff] %vm385_vm2, %v3223_v21  ;;  %406 = vst.msk [vmem:[#allocation2 + $0xa0] sm:$0xff] %vm385_vm2, %v3223_v21 }
  0x1d   : > { %407 = vst.msk [vmem:[#allocation2 + $0xa8] sm:$0xff] %vm385_vm2, %v3223_v21  ;;  %408 = vst.msk [vmem:[#allocation2 + $0xb0] sm:$0xff] %vm385_vm2, %v3223_v21 }
  0x1e   : > { %409 = vst.msk [vmem:[#allocation2 + $0xb8] sm:$0xff] %vm385_vm2, %v3223_v21  ;;  %410 = vst.msk [vmem:[#allocation2 + $0xc0] sm:$0xff] %vm385_vm2, %v3223_v21 }
  0x1f   : > { %411 = vst.msk [vmem:[#allocation2 + $0xc8] sm:$0xff] %vm385_vm2, %v3223_v21  ;;  %412 = vst.msk [vmem:[#allocation2 + $0xd0] sm:$0xff] %vm385_vm2, %v3223_v21 }
  0x20   : > { %413 = vst.msk [vmem:[#allocation2 + $0xd8] sm:$0xff] %vm385_vm2, %v3223_v21  ;;  %414 = vst.msk [vmem:[#allocation2 + $0xe0] sm:$0xff] %vm385_vm2, %v3223_v21 }
  0x21   : > { %415 = vst.msk [vmem:[#allocation2 + $0xe8] sm:$0xff] %vm385_vm2, %v3223_v21  ;;  %416 = vst.msk [vmem:[#allocation2 + $0xf0] sm:$0xff] %vm385_vm2, %v3223_v21 }
  0x22   : > { %2845 = vmatmul.mubr.msk.bf16.gmra.mrb[4].mxu0 %vm601_vm1, %v2915_v6  ;;  %417 = vst.msk [vmem:[#allocation2 + $0xf8] sm:$0xff] %vm385_vm2, %v3223_v21  ;;  %418 = vst.msk [vmem:[#allocation3] sm:$0xff] %vm385_vm2, %v4562_v46 }
  0x23   : > { %709 = vmatprep.mubr.bf16.mxu0 %v3222_v0  ;;  %419 = vst.msk [vmem:[#allocation3 + $0x8] sm:$0xff] %vm385_vm2, %v4562_v46  ;;  %420 = vst.msk [vmem:[#allocation3 + $0x10] sm:$0xff] %vm385_vm2, %v4562_v46 }
  0x24   : > { %421 = vst.msk [vmem:[#allocation3 + $0x18] sm:$0xff] %vm385_vm2, %v4562_v46  ;;  %422 = vst.msk [vmem:[#allocation3 + $0x20] sm:$0xff] %vm385_vm2, %v4562_v46 }
  0x25   : > { %423 = vst.msk [vmem:[#allocation3 + $0x28] sm:$0xff] %vm385_vm2, %v4562_v46  ;;  %424 = vst.msk [vmem:[#allocation3 + $0x30] sm:$0xff] %vm385_vm2, %v4562_v46 }
  0x26   : > { %425 = vst.msk [vmem:[#allocation3 + $0x38] sm:$0xff] %vm385_vm2, %v4562_v46  ;;  %426 = vst.msk [vmem:[#allocation3 + $0x40] sm:$0xff] %vm385_vm2, %v4562_v46 }
  0x27   : > { %427 = vst.msk [vmem:[#allocation3 + $0x48] sm:$0xff] %vm385_vm2, %v4562_v46  ;;  %428 = vst.msk [vmem:[#allocation3 + $0x50] sm:$0xff] %vm385_vm2, %v4562_v46 }
  0x28   : > { %429 = vst.msk [vmem:[#allocation3 + $0x58] sm:$0xff] %vm385_vm2, %v4562_v46  ;;  %430 = vst.msk [vmem:[#allocation3 + $0x60] sm:$0xff] %vm385_vm2, %v4562_v46 }
  0x29   : > { %431 = vst.msk [vmem:[#allocation3 + $0x68] sm:$0xff] %vm385_vm2, %v4562_v46  ;;  %432 = vst.msk [vmem:[#allocation3 + $0x70] sm:$0xff] %vm385_vm2, %v4562_v46 }
  0x2a   : > { %2846 = vmatmul.mubr.msk.bf16.gmra.mrb[8].mxu0 %vm601_vm1, %v2916_v7  ;;  %433 = vst.msk [vmem:[#allocation3 + $0x78] sm:$0xff] %vm385_vm2, %v4562_v46  ;;  %434 = vst.msk [vmem:[#allocation3 + $0x80] sm:$0xff] %vm385_vm2, %v4562_v46 }
  0x2b   : > { %719 = vmatprep.mubr.bf16.mxu0 %v3222_v0  ;;  %435 = vst.msk [vmem:[#allocation3 + $0x88] sm:$0xff] %vm385_vm2, %v4562_v46  ;;  %436 = vst.msk [vmem:[#allocation3 + $0x90] sm:$0xff] %vm385_vm2, %v4562_v46 }
  0x2c   : > { %437 = vst.msk [vmem:[#allocation3 + $0x98] sm:$0xff] %vm385_vm2, %v4562_v46  ;;  %438 = vst.msk [vmem:[#allocation3 + $0xa0] sm:$0xff] %vm385_vm2, %v4562_v46 }
  0x2d   : > { %439 = vst.msk [vmem:[#allocation3 + $0xa8] sm:$0xff] %vm385_vm2, %v4562_v46  ;;  %440 = vst.msk [vmem:[#allocation3 + $0xb0] sm:$0xff] %vm385_vm2, %v4562_v46 }
  0x2e   : > { %441 = vst.msk [vmem:[#allocation3 + $0xb8] sm:$0xff] %vm385_vm2, %v4562_v46  ;;  %442 = vst.msk [vmem:[#allocation3 + $0xc0] sm:$0xff] %vm385_vm2, %v4562_v46 }
  0x2f   : > { %443 = vst.msk [vmem:[#allocation3 + $0xc8] sm:$0xff] %vm385_vm2, %v4562_v46  ;;  %444 = vst.msk [vmem:[#allocation3 + $0xd0] sm:$0xff] %vm385_vm2, %v4562_v46 }
  0x30   : > { %445 = vst.msk [vmem:[#allocation3 + $0xd8] sm:$0xff] %vm385_vm2, %v4562_v46  ;;  %446 = vst.msk [vmem:[#allocation3 + $0xe0] sm:$0xff] %vm385_vm2, %v4562_v46 }
  0x31   : > { %447 = vst.msk [vmem:[#allocation3 + $0xe8] sm:$0xff] %vm385_vm2, %v4562_v46  ;;  %448 = vst.msk [vmem:[#allocation3 + $0xf0] sm:$0xff] %vm385_vm2, %v4562_v46 }
  0x32   : > { %2847 = vmatmul.mubr.msk.bf16.gmra.mrb[12].mxu0 %vm601_vm1, %v2917_v8  ;;  %449 = vst.msk [vmem:[#allocation3 + $0xf8] sm:$0xff] %vm385_vm2, %v4562_v46 }
  0x33   : > { %729 = vmatprep.mubr.bf16.mxu0 %v3222_v0 }
  0x3a   : > { %2848 = vmatmul.mubr.msk.bf16.gmra.mrb[16].mxu0 %vm601_vm1, %v2918_v9 }
  0x3b   : > { %739 = vmatprep.mubr.bf16.mxu0 %v3222_v0 }
  0x42   : > { %2849 = vmatmul.mubr.msk.bf16.gmra.mrb[20].mxu0 %vm601_vm1, %v2919_v10 }
  0x43   : > { %749 = vmatprep.mubr.bf16.mxu0 %v3222_v0 }
  0x4a   : > { %2850 = vmatmul.mubr.msk.bf16.gmra.mrb[24].mxu0 %vm601_vm1, %v2920_v11 }
  0x4b   : > { %759 = vmatprep.mubr.bf16.mxu0 %v3222_v0 }
  0x52   : > { %2851 = vmatmul.mubr.msk.bf16.gmra.mrb[28].mxu0 %vm601_vm1, %v2921_v12 }
  0x53   : > { %769 = vmatprep.mubr.bf16.mxu0 %v3222_v0 }
  0x5a   : > { %2852 = vmatmul.mubr.msk.bf16.gmra.mrb[32].mxu0 %vm601_vm1, %v2922_v13 }
  0x5b   : > { %779 = vmatprep.mubr.bf16.mxu0 %v3222_v0 }
  0x62   : > { %2853 = vmatmul.mubr.msk.bf16.gmra.mrb[36].mxu0 %vm601_vm1, %v2923_v14 }
  0x63   : > { %789 = vmatprep.mubr.bf16.mxu0 %v3222_v0 }
  0x6a   : > { %2854 = vmatmul.mubr.msk.bf16.gmra.mrb[40].mxu0 %vm601_vm1, %v2924_v15 }
  0x6b   : > { %799 = vmatprep.mubr.bf16.mxu0 %v3222_v0 }
  0x72   : > { %2855 = vmatmul.mubr.msk.bf16.gmra.mrb[44].mxu0 %vm601_vm1, %v2925_v16 }
  0x73   : > { %809 = vmatprep.mubr.bf16.mxu0 %v3222_v0 }
  0x7a   : > { %2856 = vmatmul.mubr.msk.bf16.gmra.mrb[48].mxu0 %vm601_vm1, %v2926_v17 }
  0x7b   : > { %819 = vmatprep.mubr.bf16.mxu0 %v3222_v0 }
  0x82   : > { %2857 = vmatmul.mubr.msk.bf16.gmra.mrb[52].mxu0 %vm601_vm1, %v2927_v18 }
  0x83   : > { %829 = vmatprep.mubr.bf16.mxu0 %v3222_v0 }
  0x8a   : > { %2858 = vmatmul.mubr.msk.bf16.gmra.mrb[56].mxu0 %vm601_vm1, %v2928_v19 }
  0x8b   : > { %839 = vmatprep.mubr.bf16.mxu0 %v3222_v0 }
  0x92   : > { %2859 = vmatmul.mubr.msk.bf16.gmra.mrb[60].mxu0 %vm601_vm1, %v2929_v20 }
  0xed   : > { %v3374_v22 = vpop.f32.mrb[0].mxu0 }
  0xee   : > { %v3376_v23 = vpop.f32.mrb[1].mxu0 }
  0xef   : > { %v3378_v24 = vpop.f32.mrb[2].mxu0  ;;  %v882_v25 = vmax.f32 %v3374_v22, %v3376_v23 }
  0xf0   : > { %v3382_v26 = vpop.f32.mrb[3].mxu0 }
  0xf1   : > { %883 = vmax.xlane.f32.xlu0 %v882_v25  ;;  %v885_v27 = vmax.f32 %v3378_v24, %v3382_v26 }
  0xf5   : > { %886 = vmax.xlane.f32.xlu0 %v885_v27  ;;  %v3386_v28 = vpop.f32.mrb[4].mxu0 }
  0xf6   : > { %v3388_v29 = vpop.f32.mrb[5].mxu0 }
  0xf7   : > { %v3390_v30 = vpop.f32.mrb[6].mxu0  ;;  %v888_v31 = vmax.f32 %v3386_v28, %v3388_v29 }
  0xf8   : > { %v3394_v32 = vpop.f32.mrb[7].mxu0 }
  0xf9   : > { %889 = vmax.xlane.f32.xlu1 %v888_v31  ;;  %v891_v33 = vmax.f32 %v3390_v30, %v3394_v32 }
  0xfd   : > { %892 = vmax.xlane.f32.xlu1 %v891_v33  ;;  %v3398_v34 = vpop.f32.mrb[8].mxu0 }
  0xfe   : > { %v3400_v35 = vpop.f32.mrb[9].mxu0 }
  0xff   : > { %v3402_v36 = vpop.f32.mrb[10].mxu0  ;;  %v894_v37 = vmax.f32 %v3398_v34, %v3400_v35 }
 0x100   : > { %v3406_v38 = vpop.f32.mrb[11].mxu0 }
 0x101   : > { %895 = vmax.xlane.f32.xlu0 %v894_v37  ;;  %v897_v39 = vmax.f32 %v3402_v36, %v3406_v38 }
 0x103   : > { %898 = vmax.xlane.f32.xlu1 %v897_v39 }
 0x105   : > { %v3410_v40 = vpop.f32.mrb[12].mxu0 }
 0x106   : > { %v3412_v41 = vpop.f32.mrb[13].mxu0 }
 0x107   : > { %v3414_v42 = vpop.f32.mrb[14].mxu0  ;;  %v900_v43 = vmax.f32 %v3410_v40, %v3412_v41 }
 0x108   : > { %4619 = vst [vmem:[#allocation6_spill] sm:$0xff] %v3414_v42  ;;  %v3418_v44 = vpop.f32.mrb[15].mxu0 }
 0x109   : > { %4620 = vst [vmem:[#allocation7_spill] sm:$0xff] %v3418_v44  ;;  %901 = vmax.xlane.f32.xlu0 %v900_v43  ;;  %v903_v45 = vmax.f32 %v3414_v42, %v3418_v44 }
 0x10b   : > { %904 = vmax.xlane.f32.xlu1 %v903_v45 }
 0x10d   : > { %v3486_v47 = vpop.f32.mrb[16].mxu0 }
 0x10e   : > { %4621 = vst [vmem:[#allocation8_spill] sm:$0xff] %v3486_v47  ;;  %v3488_v48 = vpop.f32.mrb[17].mxu0 }
 0x10f   : > { %4622 = vst [vmem:[#allocation9_spill] sm:$0xff] %v3488_v48  ;;  %v3490_v49 = vpop.f32.mrb[18].mxu0  ;;  %v906_v50 = vmax.f32 %v3486_v47, %v3488_v48 }
 0x110   : > { %4623 = vst [vmem:[#allocation10_spill] sm:$0xff] %v3490_v49  ;;  %v3494_v51 = vpop.f32.mrb[19].mxu0 }
 0x111   : > { %4624 = vst [vmem:[#allocation11_spill] sm:$0xff] %v3494_v51  ;;  %907 = vmax.xlane.f32.xlu0 %v906_v50  ;;  %v909_v52 = vmax.f32 %v3490_v49, %v3494_v51  ;;  %v3835_v49 = vld [vmem:[#allocation2 + $0xa8] sm:$0xff] }
 0x113   : > { %910 = vmax.xlane.f32.xlu1 %v909_v52 }
 0x115   : > { %v3498_v53 = vpop.f32.mrb[20].mxu0 }
 0x116   : > { %4625 = vst [vmem:[#allocation12_spill] sm:$0xff] %v3498_v53  ;;  %v3500_v54 = vpop.f32.mrb[21].mxu0 }
 0x117   : > { %4626 = vst [vmem:[#allocation13_spill] sm:$0xff] %v3500_v54  ;;  %v3502_v55 = vpop.f32.mrb[22].mxu0  ;;  %v912_v56 = vmax.f32 %v3498_v53, %v3500_v54  ;;  %v3830_v54 = vld [vmem:[#allocation2 + $0xa0] sm:$0xff] }
 0x118   : > { %4627 = vst [vmem:[#allocation14_spill] sm:$0xff] %v3502_v55  ;;  %v3506_v57 = vpop.f32.mrb[23].mxu0 }
 0x119   : > { %4628 = vst [vmem:[#allocation15_spill] sm:$0xff] %v3506_v57  ;;  %913 = vmax.xlane.f32.xlu0 %v912_v56  ;;  %v915_v58 = vmax.f32 %v3502_v55, %v3506_v57  ;;  %v3816_v57 = vld [vmem:[#allocation2 + $0x98] sm:$0xff] }
 0x11b   : > { %916 = vmax.xlane.f32.xlu1 %v915_v58 }
 0x11d   : > { %v3510_v59 = vpop.f32.mrb[24].mxu0 }
 0x11e   : > { %4629 = vst [vmem:[#allocation16_spill] sm:$0xff] %v3510_v59  ;;  %v3512_v60 = vpop.f32.mrb[25].mxu0 }
 0x11f   : > { %4630 = vst [vmem:[#allocation17_spill] sm:$0xff] %v3512_v60  ;;  %v3514_v61 = vpop.f32.mrb[26].mxu0  ;;  %v918_v62 = vmax.f32 %v3510_v59, %v3512_v60 }
 0x120   : > { %4631 = vst [vmem:[#allocation18_spill] sm:$0xff] %v3514_v61  ;;  %v3518_v63 = vpop.f32.mrb[27].mxu0 }
 0x121   : > { %4632 = vst [vmem:[#allocation19_spill] sm:$0xff] %v3518_v63  ;;  %919 = vmax.xlane.f32.xlu0 %v918_v62  ;;  %v921_v0 = vmax.f32 %v3514_v61, %v3518_v63 }
 0x123   : > { %922 = vmax.xlane.f32.xlu1 %v921_v0 }
 0x125   : > { %v3522_v1 = vpop.f32.mrb[28].mxu0 }
 0x126   : > { %4633 = vst [vmem:[#allocation20_spill] sm:$0xff] %v3522_v1  ;;  %v3524_v2 = vpop.f32.mrb[29].mxu0 }
 0x127   : > { %4634 = vst [vmem:[#allocation21_spill] sm:$0xff] %v3524_v2  ;;  %v3526_v3 = vpop.f32.mrb[30].mxu0  ;;  %v924_v4 = vmax.f32 %v3522_v1, %v3524_v2  ;;  %v3800_v2 = vld [vmem:[#allocation2 + $0x88] sm:$0xff]  ;;  %v3814_v1 = vld [vmem:[#allocation2 + $0x90] sm:$0xff] }
 0x128   : > { %4635 = vst [vmem:[#allocation22_spill] sm:$0xff] %v3526_v3  ;;  %v3530_v5 = vpop.f32.mrb[31].mxu0 }
 0x129   : > { %4636 = vst [vmem:[#allocation23_spill] sm:$0xff] %v3530_v5  ;;  %925 = vmax.xlane.f32.xlu0 %v924_v4  ;;  %v927_v6 = vmax.f32 %v3526_v3, %v3530_v5 }
 0x12b   : > { %928 = vmax.xlane.f32.xlu1 %v927_v6 }
 0x12d   : > { %v3534_v7 = vpop.f32.mrb[32].mxu0 }
 0x12e   : > { %4637 = vst [vmem:[#allocation24_spill] sm:$0xff] %v3534_v7  ;;  %v3536_v8 = vpop.f32.mrb[33].mxu0 }
 0x12f   : > { %4638 = vst [vmem:[#allocation25_spill] sm:$0xff] %v3536_v8  ;;  %v3538_v9 = vpop.f32.mrb[34].mxu0  ;;  %v930_v10 = vmax.f32 %v3534_v7, %v3536_v8  ;;  %v3780_v8 = vld [vmem:[#allocation2 + $0x78] sm:$0xff] }
 0x130   : > { %4639 = vst [vmem:[#allocation26_spill] sm:$0xff] %v3538_v9  ;;  %v3542_v11 = vpop.f32.mrb[35].mxu0 }
 0x131   : > { %4640 = vst [vmem:[#allocation27_spill] sm:$0xff] %v3542_v11  ;;  %931 = vmax.xlane.f32.xlu0 %v930_v10  ;;  %v933_v12 = vmax.f32 %v3538_v9, %v3542_v11 }
 0x133   : > { %934 = vmax.xlane.f32.xlu1 %v933_v12 }
 0x135   : > { %v3546_v13 = vpop.f32.mrb[36].mxu0 }
 0x136   : > { %4641 = vst [vmem:[#allocation28_spill] sm:$0xff] %v3546_v13  ;;  %v3548_v14 = vpop.f32.mrb[37].mxu0 }
 0x137   : > { %4642 = vst [vmem:[#allocation29_spill] sm:$0xff] %v3548_v14  ;;  %v3550_v15 = vpop.f32.mrb[38].mxu0  ;;  %v936_v16 = vmax.f32 %v3546_v13, %v3548_v14  ;;  %v3760_v14 = vld [vmem:[#allocation2 + $0x68] sm:$0xff] }
 0x138   : > { %4643 = vst [vmem:[#allocation30_spill] sm:$0xff] %v3550_v15  ;;  %v3554_v17 = vpop.f32.mrb[39].mxu0 }
 0x139   : > { %4644 = vst [vmem:[#allocation31_spill] sm:$0xff] %v3554_v17  ;;  %937 = vmax.xlane.f32.xlu0 %v936_v16  ;;  %v939_v18 = vmax.f32 %v3550_v15, %v3554_v17 }
 0x13b   : > { %940 = vmax.xlane.f32.xlu1 %v939_v18 }
 0x13d   : > { %v3558_v19 = vpop.f32.mrb[40].mxu0 }
 0x13e   : > { %4645 = vst [vmem:[#allocation32_spill] sm:$0xff] %v3558_v19  ;;  %v3560_v20 = vpop.f32.mrb[41].mxu0 }
 0x13f   : > { %4646 = vst [vmem:[#allocation33_spill] sm:$0xff] %v3560_v20  ;;  %v3562_v21 = vpop.f32.mrb[42].mxu0  ;;  %v942_v25 = vmax.f32 %v3558_v19, %v3560_v20  ;;  %v3740_v20 = vld [vmem:[#allocation2 + $0x58] sm:$0xff] }
 0x140   : > { %4647 = vst [vmem:[#allocation34_spill] sm:$0xff] %v3562_v21  ;;  %v3566_v27 = vpop.f32.mrb[43].mxu0 }
 0x141   : > { %4648 = vst [vmem:[#allocation35_spill] sm:$0xff] %v3566_v27  ;;  %943 = vmax.xlane.f32.xlu0 %v942_v25  ;;  %v945_v31 = vmax.f32 %v3562_v21, %v3566_v27 }
 0x143   : > { %946 = vmax.xlane.f32.xlu1 %v945_v31 }
 0x145   : > { %v3570_v33 = vpop.f32.mrb[44].mxu0 }
 0x146   : > { %4649 = vst [vmem:[#allocation36_spill] sm:$0xff] %v3570_v33  ;;  %v3572_v37 = vpop.f32.mrb[45].mxu0 }
 0x147   : > { %4650 = vst [vmem:[#allocation37_spill] sm:$0xff] %v3572_v37  ;;  %v3574_v39 = vpop.f32.mrb[46].mxu0  ;;  %v948_v43 = vmax.f32 %v3570_v33, %v3572_v37 }
 0x148   : > { %4651 = vst [vmem:[#allocation38_spill] sm:$0xff] %v3574_v39  ;;  %v3578_v45 = vpop.f32.mrb[47].mxu0 }
 0x149   : > { %4652 = vst [vmem:[#allocation39_spill] sm:$0xff] %v3578_v45  ;;  %949 = vmax.xlane.f32.xlu0 %v948_v43  ;;  %v951_v50 = vmax.f32 %v3574_v39, %v3578_v45  ;;  %v3700_v39 = vld [vmem:[#allocation2 + $0x38] sm:$0xff] }
 0x14b   : > { %952 = vmax.xlane.f32.xlu1 %v951_v50 }
 0x14d   : > { %v3582_v52 = vpop.f32.mrb[48].mxu0 }
 0x14e   : > { %4653 = vst [vmem:[#allocation40_spill] sm:$0xff] %v3582_v52  ;;  %v3584_v56 = vpop.f32.mrb[49].mxu0 }
 0x14f   : > { %4654 = vst [vmem:[#allocation41_spill] sm:$0xff] %v3584_v56  ;;  %v3586_v58 = vpop.f32.mrb[50].mxu0  ;;  %v954_v62 = vmax.f32 %v3582_v52, %v3584_v56  ;;  %v3671_v56 = vld [vmem:[#allocation2 + $0x20] sm:$0xff]  ;;  %v3678_v52 = vld [vmem:[#allocation2 + $0x28] sm:$0xff] }
 0x150   : > { %4655 = vst [vmem:[#allocation42_spill] sm:$0xff] %v3586_v58  ;;  %v3590_v0 = vpop.f32.mrb[51].mxu0 }
 0x151   : > { %4656 = vst [vmem:[#allocation43_spill] sm:$0xff] %v3590_v0  ;;  %955 = vmax.xlane.f32.xlu0 %v954_v62  ;;  %v957_v4 = vmax.f32 %v3586_v58, %v3590_v0  ;;  %v2941_v0 = vld [vmem:[%s3297_s9 + $0x34] ss:$8 sps:$4 sm:$0xff]  }
 0x153   : > { %958 = vmax.xlane.f32.xlu1 %v957_v4 }
 0x155   : > { %v3594_v6 = vpop.f32.mrb[52].mxu0 }
 0x156   : > { %4657 = vst [vmem:[#allocation44_spill] sm:$0xff] %v3594_v6  ;;  %v3596_v10 = vpop.f32.mrb[53].mxu0 }
 0x157   : > { %4658 = vst [vmem:[#allocation45_spill] sm:$0xff] %v3596_v10  ;;  %v3598_v12 = vpop.f32.mrb[54].mxu0  ;;  %v960_v16 = vmax.f32 %v3594_v6, %v3596_v10 }
 0x158   : > { %4659 = vst [vmem:[#allocation46_spill] sm:$0xff] %v3598_v12  ;;  %v3602_v18 = vpop.f32.mrb[55].mxu0 }
 0x159   : > { %4660 = vst [vmem:[#allocation47_spill] sm:$0xff] %v3602_v18  ;;  %961 = vmax.xlane.f32.xlu0 %v960_v16  ;;  %v963_v25 = vmax.f32 %v3598_v12, %v3602_v18  ;;  %v2933_v12 = vld [vmem:[%s3297_s9 + $0x10] ss:$8 sps:$4 sm:$0xff]  }
 0x15b   : > { %964 = vmax.xlane.f32.xlu1 %v963_v25 }
 0x15d   : > { %v3606_v31 = vpop.f32.mrb[56].mxu0 }
 0x15e   : > { %4661 = vst [vmem:[#allocation48_spill] sm:$0xff] %v3606_v31  ;;  %v3608_v43 = vpop.f32.mrb[57].mxu0 }
 0x15f   : > { %4662 = vst [vmem:[#allocation49_spill] sm:$0xff] %v3608_v43  ;;  %v3610_v50 = vpop.f32.mrb[58].mxu0  ;;  %v966_v62 = vmax.f32 %v3606_v31, %v3608_v43  ;;  %v2932_v43 = vld [vmem:[%s3297_s9 + $0x4] ss:$8 sps:$4 sm:$0xff]  }
 0x160   : > { %4663 = vst [vmem:[#allocation50_spill] sm:$0xff] %v3610_v50  ;;  %v3614_v4 = vpop.f32.mrb[59].mxu0  ;;  %1763 = vmatprep.subr.bf16.mxu0 %v2932_v43  ;;  %2875 = vmatprep.subr.bf16.mxu1 %v2932_v43  ;;  %v3632_v31 = vld [vmem:[#allocation2] sm:$0xff] }
 0x161   : > { %4664 = vst [vmem:[#allocation51_spill] sm:$0xff] %v3614_v4  ;;  %967 = vmax.xlane.f32.xlu0 %v966_v62  ;;  %v969_v16 = vmax.f32 %v3610_v50, %v3614_v4  ;;  %v2935_v4 = vld [vmem:[%s3297_s9 + $0x14] ss:$8 sps:$4 sm:$0xff]   ;;  %v2938_v43 = vld [vmem:[%s3297_s9 + $0x24] ss:$8 sps:$4 sm:$0xff]  }
 0x163   : > { %970 = vmax.xlane.f32.xlu1 %v969_v16  ;;  %v2930_v16 = vld [vmem:[%s3297_s9] ss:$8 sps:$4 sm:$0xff]  }
 0x164   : > { %1764 = vmatpush1.bf16.xpose.msra.mxu0 %v2930_v16  ;;  %2879 = vmatpush1.bf16.xpose.msra.mxu1 %v2930_v16  ;;  %v3649_v16 = vld [vmem:[#allocation2 + $0x10] sm:$0xff] }
 0x165   : > { %v3618_v25 = vpop.f32.mrb[60].mxu0  ;;  %1765 = vmatprep.subr.bf16.mxu0 %v2935_v4  ;;  %2876 = vmatprep.subr.bf16.mxu1 %v2935_v4 }
 0x166   : > { %4665 = vst [vmem:[#allocation52_spill] sm:$0xff] %v3618_v25  ;;  %v3620_v46 = vpop.f32.mrb[61].mxu0 }
 0x167   : > { %4666 = vst [vmem:[#allocation53_spill] sm:$0xff] %v3620_v46  ;;  %v3622_v10 = vpop.f32.mrb[62].mxu0  ;;  %v972_v6 = vmax.f32 %v3618_v25, %v3620_v46 }
 0x168   : > { %4667 = vst [vmem:[#allocation54_spill] sm:$0xff] %v3622_v10  ;;  %v3626_v18 = vpop.f32.mrb[63].mxu0 }
 0x169   : > { %4668 = vst [vmem:[#allocation55_spill] sm:$0xff] %v3626_v18  ;;  %973 = vmax.xlane.f32.xlu0 %v972_v6  ;;  %v975_v62 = vmax.f32 %v3622_v10, %v3626_v18  ;;  %v3639_v6 = vld [vmem:[#allocation2 + $0x8] sm:$0xff]  ;;  %v3661_v10 = vld [vmem:[#allocation2 + $0x18] sm:$0xff] }
 0x16a   : > { %v2936_v18 = vld [vmem:[%s3297_s9 + $0x20] ss:$8 sps:$4 sm:$0xff]  }
 0x16b   : > { %976 = vmax.xlane.f32.xlu1 %v975_v62 }
 0x16c   : > { %1766 = vmatpush1.bf16.xpose.msra.mxu0 %v2933_v12  ;;  %2880 = vmatpush1.bf16.xpose.msra.mxu1 %v2933_v12 }
 0x16d   : > { %1767 = vmatprep.subr.bf16.mxu0 %v2938_v43  ;;  %2877 = vmatprep.subr.bf16.mxu1 %v2938_v43 }
 0x174   : > { %1768 = vmatpush1.bf16.xpose.msra.mxu0 %v2936_v18  ;;  %2881 = vmatpush1.bf16.xpose.msra.mxu1 %v2936_v18  ;;  %v2939_v18 = vld [vmem:[%s3297_s9 + $0x30] ss:$8 sps:$4 sm:$0xff]  }
 0x175   : > { %1769 = vmatprep.subr.bf16.mxu0 %v2941_v0  ;;  %2878 = vmatprep.subr.bf16.mxu1 %v2941_v0  ;;  %v3697_v0 = vld [vmem:[#allocation2 + $0x30] sm:$0xff] }
 0x17c   : > { %1770 = vmatpush1.bf16.xpose.msra.mxu0 %v2939_v18  ;;  %2882 = vmatpush1.bf16.xpose.msra.mxu1 %v2939_v18  ;;  %v3720_v18 = vld [vmem:[#allocation2 + $0x48] sm:$0xff] }
 0x17e   : > { %v884_v50 = vpop.xlane.xlu0 %883 }
 0x17f   : > { %v3637_v46 = vmax.f32 %v3632_v31, %v884_v50 }
 0x181   : > { %2213 = vst.msk [vmem:[#allocation2] sm:$0xff] %vm385_vm2, %v3637_v46  ;;  %1108 = vperm.xlu0 %2910, %v3637_v46  }
 0x182   : > { %v887_v62 = vpop.xlane.xlu0 %886 }
 0x183   : > { %v3647_v50 = vmax.f32 %v3639_v6, %v887_v62 }
 0x185   : > { %2214 = vst.msk [vmem:[#allocation2 + $0x8] sm:$0xff] %vm385_vm2, %v3647_v50  ;;  %1113 = vperm.xlu1 %2911, %v3647_v50  }
 0x186   : > { %v890_v12 = vpop.xlane.xlu1 %889 }
 0x187   : > { %v3658_v25 = vmax.f32 %v3649_v16, %v890_v12 }
 0x189   : > { %2215 = vst.msk [vmem:[#allocation2 + $0x10] sm:$0xff] %vm385_vm2, %v3658_v25  ;;  %1118 = vperm.xlu1 %2911, %v3658_v25  }
 0x18a   : > { %v893_v4 = vpop.xlane.xlu1 %892 }
 0x18b   : > { %v3669_v12 = vmax.f32 %v3661_v10, %v893_v4 }
 0x18d   : > { %2216 = vst.msk [vmem:[#allocation2 + $0x18] sm:$0xff] %vm385_vm2, %v3669_v12  ;;  %1123 = vperm.xlu1 %2911, %v3669_v12  }
 0x18e   : > { %v896_v62 = vpop.xlane.xlu0 %895 }
 0x18f   : > { %v3682_v58 = vmax.f32 %v3671_v56, %v896_v62 }
 0x190   : > { %v899_v4 = vpop.xlane.xlu1 %898 }
 0x191   : > { %2217 = vst.msk [vmem:[#allocation2 + $0x20] sm:$0xff] %vm385_vm2, %v3682_v58  ;;  %v3690_v43 = vmax.f32 %v3678_v52, %v899_v4  ;;  %1128 = vperm.xlu1 %2911, %v3682_v58  }
 0x193   : > { %2218 = vst.msk [vmem:[#allocation2 + $0x28] sm:$0xff] %vm385_vm2, %v3690_v43 }
 0x195   : > { %1133 = vperm.xlu1 %2911, %v3690_v43  }
 0x196   : > { %v902_v45 = vpop.xlane.xlu0 %901 }
 0x197   : > { %v3703_v4 = vmax.f32 %v3697_v0, %v902_v45  ;;  %v3717_v45 = vld [vmem:[#allocation2 + $0x40] sm:$0xff] }
 0x198   : > { %v905_v37 = vpop.xlane.xlu1 %904 }
 0x199   : > { %2219 = vst.msk [vmem:[#allocation2 + $0x30] sm:$0xff] %vm385_vm2, %v3703_v4  ;;  %v3710_v62 = vmax.f32 %v3700_v39, %v905_v37  ;;  %1138 = vperm.xlu1 %2911, %v3703_v4  }
 0x19b   : > { %2220 = vst.msk [vmem:[#allocation2 + $0x38] sm:$0xff] %vm385_vm2, %v3710_v62 }
 0x19d   : > { %1143 = vperm.xlu1 %2911, %v3710_v62  }
 0x19e   : > { %v908_v27 = vpop.xlane.xlu0 %907 }
 0x19f   : > { %v3723_v21 = vmax.f32 %v3717_v45, %v908_v27  ;;  %v3738_v27 = vld [vmem:[#allocation2 + $0x50] sm:$0xff] }
 0x1a0   : > { %v911_v37 = vpop.xlane.xlu1 %910 }
 0x1a1   : > { %2221 = vst.msk [vmem:[#allocation2 + $0x40] sm:$0xff] %vm385_vm2, %v3723_v21  ;;  %v3730_v33 = vmax.f32 %v3720_v18, %v911_v37  ;;  %1148 = vperm.xlu1 %2911, %v3723_v21  }
 0x1a3   : > { %2222 = vst.msk [vmem:[#allocation2 + $0x48] sm:$0xff] %vm385_vm2, %v3730_v33  ;;  %1153 = vperm.xlu0 %2910, %v3730_v33  }
 0x1a6   : > { %v914_v17 = vpop.xlane.xlu0 %913 }
 0x1a7   : > { %v3743_v15 = vmax.f32 %v3738_v27, %v914_v17  ;;  %v3758_v17 = vld [vmem:[#allocation2 + $0x60] sm:$0xff] }
 0x1a8   : > { %v917_v37 = vpop.xlane.xlu1 %916 }
 0x1a9   : > { %2223 = vst.msk [vmem:[#allocation2 + $0x50] sm:$0xff] %vm385_vm2, %v3743_v15  ;;  %v3750_v19 = vmax.f32 %v3740_v20, %v917_v37  ;;  %1158 = vperm.xlu1 %2911, %v3743_v15  }
 0x1ab   : > { %2224 = vst.msk [vmem:[#allocation2 + $0x58] sm:$0xff] %vm385_vm2, %v3750_v19  ;;  %1163 = vperm.xlu0 %2910, %v3750_v19  }
 0x1ae   : > { %v920_v11 = vpop.xlane.xlu0 %919 }
 0x1af   : > { %v3763_v9 = vmax.f32 %v3758_v17, %v920_v11  ;;  %v3778_v11 = vld [vmem:[#allocation2 + $0x70] sm:$0xff] }
 0x1b0   : > { %v923_v37 = vpop.xlane.xlu1 %922 }
 0x1b1   : > { %2225 = vst.msk [vmem:[#allocation2 + $0x60] sm:$0xff] %vm385_vm2, %v3763_v9  ;;  %v3770_v13 = vmax.f32 %v3760_v14, %v923_v37  ;;  %1168 = vperm.xlu1 %2911, %v3763_v9  }
 0x1b3   : > { %2226 = vst.msk [vmem:[#allocation2 + $0x68] sm:$0xff] %vm385_vm2, %v3770_v13  ;;  %1173 = vperm.xlu0 %2910, %v3770_v13  }
 0x1b6   : > { %v926_v5 = vpop.xlane.xlu0 %925 }
 0x1b7   : > { %v3783_v3 = vmax.f32 %v3778_v11, %v926_v5  ;;  %v3798_v5 = vld [vmem:[#allocation2 + $0x80] sm:$0xff] }
 0x1b8   : > { %v929_v37 = vpop.xlane.xlu1 %928 }
 0x1b9   : > { %2227 = vst.msk [vmem:[#allocation2 + $0x70] sm:$0xff] %vm385_vm2, %v3783_v3  ;;  %v3790_v7 = vmax.f32 %v3780_v8, %v929_v37  ;;  %1178 = vperm.xlu1 %2911, %v3783_v3  }
 0x1bb   : > { %2228 = vst.msk [vmem:[#allocation2 + $0x78] sm:$0xff] %vm385_vm2, %v3790_v7  ;;  %1183 = vperm.xlu0 %2910, %v3790_v7  }
 0x1be   : > { %v932_v63 = vpop.xlane.xlu0 %931 }
 0x1bf   : > { %v3803_v61 = vmax.f32 %v3798_v5, %v932_v63 }
 0x1c0   : > { %v935_v37 = vpop.xlane.xlu1 %934 }
 0x1c1   : > { %2229 = vst.msk [vmem:[#allocation2 + $0x80] sm:$0xff] %vm385_vm2, %v3803_v61  ;;  %v3808_v60 = vmax.f32 %v3800_v2, %v935_v37  ;;  %1188 = vperm.xlu1 %2911, %v3803_v61  }
 0x1c3   : > { %2230 = vst.msk [vmem:[#allocation2 + $0x88] sm:$0xff] %vm385_vm2, %v3808_v60  ;;  %1193 = vperm.xlu0 %2910, %v3808_v60  }
 0x1c6   : > { %v938_v59 = vpop.xlane.xlu0 %937 }
 0x1c7   : > { %v3819_v63 = vmax.f32 %v3814_v1, %v938_v59  ;;  %v4669_v59 = vsub.f32 %v3639_v6, %v3647_v50  ;;  %v4671_v6 = vsub.f32 %v3649_v16, %v3658_v25 }
 0x1c8   : > { %v941_v55 = vpop.xlane.xlu1 %940 }
 0x1c9   : > { %2231 = vst.msk [vmem:[#allocation2 + $0x90] sm:$0xff] %vm385_vm2, %v3819_v63  ;;  %v3824_v37 = vmax.f32 %v3816_v57, %v941_v55  ;;  %1198 = vperm.xlu1 %2911, %v3819_v63   ;;  %v1044_v53 = vmul.f32 1.442695, %v4669_v59  ;;  %v4670_v55 = vsub.f32 %v3632_v31, %v3637_v46  ;;  %v1046_v50 = vmul.f32 1.442695, %v4671_v6  ;;  %v3855_v46 = vld [vmem:[#allocation2 + $0xb0] sm:$0xff] }
 0x1ca   : > { %v3857_v31 = vld [vmem:[#allocation2 + $0xb8] sm:$0xff] }
 0x1cb   : > { %2232 = vst.msk [vmem:[#allocation2 + $0x98] sm:$0xff] %vm385_vm2, %v3824_v37  ;;  %1203 = vperm.xlu0 %2910, %v3824_v37   ;;  %v1042_v47 = vmul.f32 1.442695, %v4670_v55  ;;  %2942 = vpow2.f32 %v1044_v53  ;;  %v4672_v53 = vmov 0.0   ;;  %v4674_v55 = vsub.f32 %v3671_v56, %v3682_v58 }
 0x1cc   : > { %452 = vst.msk [vmem:[#allocation4 + $0x8] sm:$0xff] %vm450_vm3, %v4672_v53  ;;  %451 = vst.msk [vmem:[#allocation4] sm:$0xff] %vm450_vm3, %v4672_v53 }
 0x1cd   : > { %2944 = vpow2.f32 %v1042_v47  ;;  %453 = vst.msk [vmem:[#allocation4 + $0x10] sm:$0xff] %vm450_vm3, %v4672_v53  ;;  %454 = vst.msk [vmem:[#allocation4 + $0x18] sm:$0xff] %vm450_vm3, %v4672_v53  ;;  %v4673_v47 = vsub.f32 %v3661_v10, %v3669_v12  ;;  %v1050_v6 = vmul.f32 1.442695, %v4674_v55  ;;  %v3943_v12 = vld [vmem:[#allocation2 + $0xc0] sm:$0xff] }
 0x1ce   : > { %v944_v51 = vpop.xlane.xlu0 %943  ;;  %2946 = vpow2.f32 %v1046_v50  ;;  %455 = vst.msk [vmem:[#allocation4 + $0x20] sm:$0xff] %vm450_vm3, %v4672_v53  ;;  %456 = vst.msk [vmem:[#allocation4 + $0x28] sm:$0xff] %vm450_vm3, %v4672_v53 }
 0x1cf   : > { %v3838_v48 = vmax.f32 %v3830_v54, %v944_v51  ;;  %457 = vst.msk [vmem:[#allocation4 + $0x30] sm:$0xff] %vm450_vm3, %v4672_v53  ;;  %458 = vst.msk [vmem:[#allocation4 + $0x38] sm:$0xff] %vm450_vm3, %v4672_v53  ;;  %v1048_v25 = vmul.f32 1.442695, %v4673_v47  ;;  %v4676_v47 = vsub.f32 %v3678_v52, %v3690_v43  ;;  %v3971_v52 = vld [vmem:[#allocation2 + $0xd0] sm:$0xff] }
 0x1d0   : > { %v947_v44 = vpop.xlane.xlu1 %946  ;;  %459 = vst.msk [vmem:[#allocation4 + $0x40] sm:$0xff] %vm450_vm3, %v4672_v53  ;;  %460 = vst.msk [vmem:[#allocation4 + $0x48] sm:$0xff] %vm450_vm3, %v4672_v53 }
 0x1d1   : > { %2233 = vst.msk [vmem:[#allocation2 + $0xa0] sm:$0xff] %vm385_vm2, %v3838_v48  ;;  %v3846_v42 = vmax.f32 %v3835_v49, %v947_v44  ;;  %1208 = vperm.xlu1 %2911, %v3838_v48   ;;  %2948 = vpow2.f32 %v1048_v25  ;;  %v1052_v25 = vmul.f32 1.442695, %v4676_v47 }
 0x1d2   : > { %461 = vst.msk [vmem:[#allocation4 + $0x50] sm:$0xff] %vm450_vm3, %v4672_v53  ;;  %462 = vst.msk [vmem:[#allocation4 + $0x58] sm:$0xff] %vm450_vm3, %v4672_v53  ;;  %2950 = vpow2.f32 %v1050_v6  ;;  %v4677_v6 = vsub.f32 %v3697_v0, %v3703_v4 }
 0x1d3   : > { %2234 = vst.msk [vmem:[#allocation2 + $0xa8] sm:$0xff] %vm385_vm2, %v3846_v42  ;;  %1213 = vperm.xlu0 %2910, %v3846_v42   ;;  %2952 = vpow2.f32 %v1052_v25  ;;  %v4680_v25 = vsub.f32 %v3700_v39, %v3710_v62  ;;  %v3999_v39 = vld [vmem:[#allocation2 + $0xe0] sm:$0xff] }
 0x1d4   : > { %463 = vst.msk [vmem:[#allocation4 + $0x60] sm:$0xff] %vm450_vm3, %v4672_v53  ;;  %464 = vst.msk [vmem:[#allocation4 + $0x68] sm:$0xff] %vm450_vm3, %v4672_v53 }
 0x1d5   : > { %465 = vst.msk [vmem:[#allocation4 + $0x70] sm:$0xff] %vm450_vm3, %v4672_v53  ;;  %466 = vst.msk [vmem:[#allocation4 + $0x78] sm:$0xff] %vm450_vm3, %v4672_v53  ;;  %v3941_v10 = vpop.eup %2942 }
 0x1d6   : > { %v950_v51 = vpop.xlane.xlu0 %949  ;;  %467 = vst.msk [vmem:[#allocation4 + $0x80] sm:$0xff] %vm450_vm3, %v4672_v53  ;;  %468 = vst.msk [vmem:[#allocation4 + $0x88] sm:$0xff] %vm450_vm3, %v4672_v53 }
 0x1d7   : > { %v3860_v44 = vmax.f32 %v3855_v46, %v950_v51  ;;  %469 = vst.msk [vmem:[#allocation4 + $0x90] sm:$0xff] %vm450_vm3, %v4672_v53  ;;  %470 = vst.msk [vmem:[#allocation4 + $0x98] sm:$0xff] %vm450_vm3, %v4672_v53  ;;  %v3946_v50 = vpop.eup %2944 }
 0x1d8   : > { %471 = vst.msk [vmem:[#allocation4 + $0xa0] sm:$0xff] %vm450_vm3, %v4672_v53  ;;  %472 = vst.msk [vmem:[#allocation4 + $0xa8] sm:$0xff] %vm450_vm3, %v4672_v53  ;;  %v953_v16 = vpop.xlane.xlu1 %952  ;;  %v3954_v58 = vpop.eup %2946 }
 0x1d9   : > { %473 = vst.msk [vmem:[#allocation4 + $0xb0] sm:$0xff] %vm450_vm3, %v4672_v53  ;;  %474 = vst.msk [vmem:[#allocation4 + $0xb8] sm:$0xff] %vm450_vm3, %v4672_v53  ;;  %v3932_v59 = vmax.f32 %v3857_v31, %v953_v16  ;;  %1218 = vperm.xlu1 %2911, %v3860_v44  }
 0x1da   : > { %475 = vst.msk [vmem:[#allocation4 + $0xc0] sm:$0xff] %vm450_vm3, %v4672_v53  ;;  %476 = vst.msk [vmem:[#allocation4 + $0xc8] sm:$0xff] %vm450_vm3, %v4672_v53 }
 0x1db   : > { %477 = vst.msk [vmem:[#allocation4 + $0xd0] sm:$0xff] %vm450_vm3, %v4672_v53  ;;  %478 = vst.msk [vmem:[#allocation4 + $0xd8] sm:$0xff] %vm450_vm3, %v4672_v53  ;;  %1223 = vperm.xlu0 %2910, %v3932_v59   ;;  %v3974_v43 = vpop.eup %2948 }
 0x1dc   : > { %479 = vst.msk [vmem:[#allocation4 + $0xe0] sm:$0xff] %vm450_vm3, %v4672_v53  ;;  %480 = vst.msk [vmem:[#allocation4 + $0xe8] sm:$0xff] %vm450_vm3, %v4672_v53  ;;  %v3982_v4 = vpop.eup %2950 }
 0x1dd   : > { %481 = vst.msk [vmem:[#allocation4 + $0xf0] sm:$0xff] %vm450_vm3, %v4672_v53  ;;  %482 = vst.msk [vmem:[#allocation4 + $0xf8] sm:$0xff] %vm450_vm3, %v4672_v53  ;;  %1963 = vperm.xlu1 %2911, %v3941_v10   ;;  %v3948_v53 = vld [vmem:[#allocation2 + $0xc8] sm:$0xff]  ;;  %v4002_v62 = vpop.eup %2952 }
 0x1de   : > { %2235 = vst.msk [vmem:[#allocation2 + $0xb0] sm:$0xff] %vm385_vm2, %v3860_v44  ;;  %2236 = vst.msk [vmem:[#allocation2 + $0xb8] sm:$0xff] %vm385_vm2, %v3932_v59  ;;  %v956_v51 = vpop.xlane.xlu0 %955 }
 0x1df   : > { %1958 = vperm.xlu0 %2910, %v3946_v50   ;;  %v3952_v56 = vmax.f32 %v3943_v12, %v956_v51  ;;  %4675 = vst [vmem:[#allocation56_spill] sm:$0xff] %v3954_v58  ;;  %v1054_v51 = vmul.f32 1.442695, %v4677_v6  ;;  %4678 = vst [vmem:[#allocation57_spill] sm:$0xff] %v3974_v43  ;;  %v1056_v6 = vmul.f32 1.442695, %v4680_v25 }
 0x1e0   : > { %v959_v16 = vpop.xlane.xlu1 %958  ;;  %4679 = vst [vmem:[#allocation58_spill] sm:$0xff] %v3982_v4  ;;  %4682 = vst [vmem:[#allocation59_spill] sm:$0xff] %v4002_v62  ;;  %v4004_v25 = vld [vmem:[#allocation2 + $0xe8] sm:$0xff] }
 0x1e1   : > { %2237 = vst.msk [vmem:[#allocation2 + $0xc0] sm:$0xff] %vm385_vm2, %v3952_v56  ;;  %v3962_v55 = vmax.f32 %v3948_v53, %v959_v16  ;;  %1968 = vperm.xlu1 %2911, %v3954_v58   ;;  %2954 = vpow2.f32 %v1054_v51  ;;  %v3976_v16 = vld [vmem:[#allocation2 + $0xd8] sm:$0xff] }
 0x1e2   : > { %2956 = vpow2.f32 %v1056_v6 }
 0x1e3   : > { %2238 = vst.msk [vmem:[#allocation2 + $0xc8] sm:$0xff] %vm385_vm2, %v3962_v55  ;;  %1233 = vperm.xlu0 %2910, %v3962_v55  }
 0x1e5   : > { %1228 = vperm.xlu1 %2911, %v3952_v56  }
 0x1e6   : > { %v962_v47 = vpop.xlane.xlu0 %961 }
 0x1e7   : > { %1973 = vperm.xlu0 %2910, %v3974_v43   ;;  %v3980_v0 = vmax.f32 %v3971_v52, %v962_v47  ;;  %v4681_v43 = vsub.f32 %v3717_v45, %v3723_v21 }
 0x1e8   : > { %v965_v58 = vpop.xlane.xlu1 %964 }
 0x1e9   : > { %2239 = vst.msk [vmem:[#allocation2 + $0xd0] sm:$0xff] %vm385_vm2, %v3980_v0  ;;  %v3990_v51 = vmax.f32 %v3976_v16, %v965_v58  ;;  %1978 = vperm.xlu1 %2911, %v3982_v4   ;;  %v1058_v47 = vmul.f32 1.442695, %v4681_v43  ;;  %v4684_v43 = vsub.f32 %v3720_v18, %v3730_v33  ;;  %v4686_v33 = vsub.f32 %v3740_v20, %v3750_v19 }
 0x1ea   : > { %v4688_v20 = vsub.f32 %v3760_v14, %v3770_v13  ;;  %v4689_v13 = vsub.f32 %v3778_v11, %v3783_v3  ;;  %v1030_v3 = vsub.f32 %v3830_v54, %v3838_v48 }
 0x1eb   : > { %2240 = vst.msk [vmem:[#allocation2 + $0xd8] sm:$0xff] %vm385_vm2, %v3990_v51  ;;  %1243 = vperm.xlu0 %2910, %v3990_v51   ;;  %2958 = vpow2.f32 %v1058_v47  ;;  %v4010_v45 = vpop.eup %2954  ;;  %v1060_v6 = vmul.f32 1.442695, %v4684_v43  ;;  %v1064_v18 = vmul.f32 1.442695, %v4686_v33  ;;  %v4030_v43 = vld [vmem:[#allocation2 + $0xf0] sm:$0xff] }
 0x1ec   : > { %4683 = vst [vmem:[#allocation60_spill] sm:$0xff] %v4010_v45  ;;  %v1068_v33 = vmul.f32 1.442695, %v4688_v20  ;;  %v1070_v14 = vmul.f32 1.442695, %v4689_v13  ;;  %v1032_v20 = vsub.f32 %v3855_v46, %v3860_v44  ;;  %v1034_v13 = vsub.f32 %v3943_v12, %v3952_v56 }
 0x1ed   : > { %1238 = vperm.xlu1 %2911, %v3980_v0   ;;  %2960 = vpow2.f32 %v1060_v6 }
 0x1ee   : > { %v968_v58 = vpop.xlane.xlu0 %967  ;;  %v1086_v44 = vmul.f32 1.442695, %v1032_v20 }
 0x1ef   : > { %1983 = vperm.xlu0 %2910, %v4002_v62   ;;  %v4008_v21 = vmax.f32 %v3999_v39, %v968_v58  ;;  %v4685_v62 = vsub.f32 %v3738_v27, %v3743_v15  ;;  %v4687_v15 = vsub.f32 %v3758_v17, %v3763_v9  ;;  %v1027_v17 = vsub.f32 %v3800_v2, %v3808_v60 }
 0x1f0   : > { %v971_v4 = vpop.xlane.xlu1 %970  ;;  %v1029_v2 = vsub.f32 %v3816_v57, %v3824_v37  ;;  %v1031_v37 = vsub.f32 %v3835_v49, %v3846_v42 }
 0x1f1   : > { %2241 = vst.msk [vmem:[#allocation2 + $0xe0] sm:$0xff] %vm385_vm2, %v4008_v21  ;;  %v4018_v47 = vmax.f32 %v4004_v25, %v971_v4  ;;  %1988 = vperm.xlu1 %2911, %v4010_v45   ;;  %v1062_v58 = vmul.f32 1.442695, %v4685_v62  ;;  %v4033_v4 = vpop.eup %2956  ;;  %v1066_v27 = vmul.f32 1.442695, %v4687_v15  ;;  %v4038_v45 = vld [vmem:[#allocation2 + $0xf8] sm:$0xff] }
 0x1f2   : > { %v1076_v11 = vmul.f32 1.442695, %v1027_v17  ;;  %v1084_v49 = vmul.f32 1.442695, %v1031_v37 }
 0x1f3   : > { %2242 = vst.msk [vmem:[#allocation2 + $0xe8] sm:$0xff] %vm385_vm2, %v4018_v47  ;;  %1253 = vperm.xlu0 %2910, %v4018_v47   ;;  %2962 = vpow2.f32 %v1062_v58  ;;  %v1026_v58 = vsub.f32 %v3798_v5, %v3803_v61  ;;  %v1028_v61 = vsub.f32 %v3814_v1, %v3819_v63  ;;  %v4690_v5 = vsub.f32 %v3780_v8, %v3790_v7 }
 0x1f4   : > { %2964 = vpow2.f32 %v1064_v18  ;;  %v1080_v8 = vmul.f32 1.442695, %v1029_v2  ;;  %v1082_v63 = vmul.f32 1.442695, %v1030_v3 }
 0x1f5   : > { %1248 = vperm.xlu1 %2911, %v4008_v21   ;;  %v4044_v19 = vpop.eup %2958  ;;  %2966 = vpow2.f32 %v1066_v27  ;;  %v1072_v60 = vmul.f32 1.442695, %v4690_v5  ;;  %v1074_v18 = vmul.f32 1.442695, %v1026_v58  ;;  %v1078_v7 = vmul.f32 1.442695, %v1028_v61 }
 0x1f6   : > { %v974_v62 = vpop.xlane.xlu0 %973  ;;  %2968 = vpow2.f32 %v1068_v33 }
 0x1f7   : > { %1993 = vperm.xlu0 %2910, %v4033_v4   ;;  %v4042_v6 = vmax.f32 %v4030_v43, %v974_v62  ;;  %v4075_v1 = vpop.eup %2960  ;;  %2970 = vpow2.f32 %v1070_v14 }
 0x1f8   : > { %v977_v9 = vpop.xlane.xlu1 %976  ;;  %2972 = vpow2.f32 %v1072_v60 }
 0x1f9   : > { %2243 = vst.msk [vmem:[#allocation2 + $0xf0] sm:$0xff] %vm385_vm2, %v4042_v6  ;;  %v4056_v15 = vmax.f32 %v4038_v45, %v977_v9  ;;  %1998 = vperm.xlu1 %2911, %v4044_v19   ;;  %2974 = vpow2.f32 %v1074_v18  ;;  %v1090_v18 = vmul.f32 1.442695, %v1034_v13 }
 0x1fa   : > { %2976 = vpow2.f32 %v1076_v11 }
 0x1fb   : > { %2244 = vst.msk [vmem:[#allocation2 + $0xf8] sm:$0xff] %vm385_vm2, %v4056_v15  ;;  %1263 = vperm.xlu0 %2910, %v4056_v15   ;;  %2978 = vpow2.f32 %v1078_v7 }
 0x1fc   : > { %2980 = vpow2.f32 %v1080_v8 }
 0x1fd   : > { %1258 = vperm.xlu1 %2911, %v4042_v6   ;;  %v4078_v57 = vpop.eup %2962  ;;  %2982 = vpow2.f32 %v1082_v63 }
 0x1fe   : > { %v4085_v62 = vpop.eup %2964 }
 0x1ff   : > { %2003 = vperm.xlu0 %2910, %v4075_v1   ;;  %v4090_v42 = vpop.eup %2966 }
 0x200   : > { %v1109_v27 = vpop.permute.xlu0 %1108  ;;  %v4097_v46 = vpop.eup %2968 }
 0x201   : > { %v1266_v48 = vsub.f32 %v3374_v22, %v1109_v27  ;;  %v1267_v54 = vsub.f32 %v3376_v23, %v1109_v27  ;;  %2008 = vperm.xlu1 %2911, %v4078_v57   ;;  %v1033_v22 = vsub.f32 %v3857_v31, %v3932_v59  ;;  %v4102_v31 = vpop.eup %2970 }
 0x202   : > { %v4106_v5 = vpop.eup %2972 }
 0x203   : > { %v1330_v33 = vmul.f32 1.442695, %v1266_v48  ;;  %v1332_v58 = vmul.f32 1.442695, %v1267_v54  ;;  %2013 = vperm.xlu0 %2910, %v4085_v62   ;;  %v1088_v59 = vmul.f32 1.442695, %v1033_v22  ;;  %v4111_v12 = vpop.eup %2974  ;;  %v1037_v48 = vsub.f32 %v3976_v16, %v3990_v51 }
 0x204   : > { %v1114_v23 = vpop.permute.xlu1 %1113  ;;  %v4113_v56 = vpop.eup %2976 }
 0x205   : > { %2984 = vpow2.f32 %v1330_v33  ;;  %v1268_v9 = vsub.f32 %v3378_v24, %v1114_v23  ;;  %v1269_v17 = vsub.f32 %v3382_v26, %v1114_v23  ;;  %2018 = vperm.xlu1 %2911, %v4090_v42   ;;  %v1035_v24 = vsub.f32 %v3948_v53, %v3962_v55  ;;  %v4116_v53 = vpop.eup %2978 }
 0x206   : > { %2986 = vpow2.f32 %v1332_v58  ;;  %v4120_v7 = vpop.eup %2980  ;;  %v1096_v22 = vmul.f32 1.442695, %v1037_v48  ;;  %v1039_v23 = vsub.f32 %v4004_v25, %v4018_v47 }
 0x207   : > { %v1334_v14 = vmul.f32 1.442695, %v1268_v9  ;;  %v1336_v61 = vmul.f32 1.442695, %v1269_v17  ;;  %2023 = vperm.xlu0 %2910, %v4097_v46   ;;  %2988 = vpow2.f32 %v1084_v49  ;;  %v1092_v55 = vmul.f32 1.442695, %v1035_v24  ;;  %v4125_v37 = vpop.eup %2982 }
 0x208   : > { %v1119_v26 = vpop.permute.xlu1 %1118 }
 0x209   : > { %2990 = vpow2.f32 %v1334_v14  ;;  %v1270_v60 = vsub.f32 %v3386_v28, %v1119_v26  ;;  %v1271_v2 = vsub.f32 %v3388_v29, %v1119_v26  ;;  %2028 = vperm.xlu1 %2911, %v4102_v31   ;;  %v1036_v28 = vsub.f32 %v3971_v52, %v3980_v0 }
 0x20a   : > { %2992 = vpow2.f32 %v1336_v61 }
 0x20b   : > { %2994 = vpow2.f32 %v1086_v44  ;;  %v1338_v3 = vmul.f32 1.442695, %v1270_v60  ;;  %v1340_v11 = vmul.f32 1.442695, %v1271_v2  ;;  %2033 = vperm.xlu0 %2910, %v4106_v5   ;;  %v1094_v20 = vmul.f32 1.442695, %v1036_v28 }
 0x20c   : > { %2996 = vpow2.f32 %v1088_v59  ;;  %v1124_v29 = vpop.permute.xlu1 %1123 }
 0x20d   : > { %2998 = vpow2.f32 %v1338_v3  ;;  %v1272_v8 = vsub.f32 %v3390_v30, %v1124_v29  ;;  %v1273_v63 = vsub.f32 %v3394_v32, %v1124_v29  ;;  %2038 = vperm.xlu1 %2911, %v4111_v12   ;;  %v1038_v30 = vsub.f32 %v3999_v39, %v4008_v21 }
 0x20e   : > { %3000 = vpow2.f32 %v1340_v11 }
 0x20f   : > { %v2985_v27 = vpop.eup %2984  ;;  %3002 = vpow2.f32 %v1090_v18  ;;  %v1342_v54 = vmul.f32 1.442695, %v1272_v8  ;;  %v1344_v52 = vmul.f32 1.442695, %v1273_v63  ;;  %2043 = vperm.xlu0 %2910, %v4113_v56  }
 0x210   : > { %v2987_v0 = vpop.eup %2986  ;;  %3004 = vpow2.f32 %v1092_v55  ;;  %v1129_v32 = vpop.permute.xlu1 %1128 }
 0x211   : > { %3006 = vpow2.f32 %v1342_v54  ;;  %v1274_v33 = vsub.f32 %v3398_v34, %v1129_v32  ;;  %v1275_v58 = vsub.f32 %v3400_v35, %v1129_v32  ;;  %2048 = vperm.xlu1 %2911, %v4116_v53   ;;  %v4135_v49 = vadd.f32 %v2987_v0, %v2985_v27  ;;  %v4137_v16 = vpop.eup %2988  ;;  %v4692_v54 = vld [vmem:[#allocation7_spill] sm:$0xff] }
 0x212   : > { %3008 = vpow2.f32 %v1344_v52  ;;  %v1098_v34 = vmul.f32 1.442695, %v1038_v30  ;;  %v1040_v35 = vsub.f32 %v4030_v43, %v4042_v6  ;;  %v1100_v43 = vmul.f32 1.442695, %v1039_v23 }
 0x213   : > { %v2991_v51 = vpop.eup %2990  ;;  %v1346_v9 = vmul.f32 1.442695, %v1274_v33  ;;  %v1348_v39 = vmul.f32 1.442695, %v1275_v58  ;;  %2053 = vperm.xlu0 %2910, %v4120_v7   ;;  %3010 = vpow2.f32 %v1094_v20 }
 0x214   : > { %v2993_v21 = vpop.eup %2992  ;;  %v1134_v17 = vpop.permute.xlu1 %1133  ;;  %v1691_v44 = vpack.c.bf16 %v2991_v51, %v2985_v27 }
 0x215   : > { %v4144_v13 = vpop.eup %2994  ;;  %3012 = vpow2.f32 %v1346_v9  ;;  %v1276_v14 = vsub.f32 %v3402_v36, %v1134_v17  ;;  %v1277_v61 = vsub.f32 %v3406_v38, %v1134_v17  ;;  %2058 = vperm.xlu1 %2911, %v4125_v37   ;;  %v1692_v25 = vpack.c.bf16 %v2993_v21, %v2987_v0  ;;  %v4693_v9 = vld [vmem:[#allocation8_spill] sm:$0xff] }
 0x216   : > { %v4149_v47 = vpop.eup %2996  ;;  %3014 = vpow2.f32 %v1348_v39  ;;  %v4151_v59 = vadd.f32 %v2993_v21, %v2991_v51  ;;  %v1102_v36 = vmul.f32 1.442695, %v1040_v35  ;;  %v1041_v38 = vsub.f32 %v4038_v45, %v4056_v15  ;;  %v4694_v21 = vld [vmem:[#allocation9_spill] sm:$0xff] }
 0x217   : > { %v2999_v24 = vpop.eup %2998  ;;  %3016 = vpow2.f32 %v1096_v22  ;;  %v1350_v6 = vmul.f32 1.442695, %v1276_v14  ;;  %v1352_v26 = vmul.f32 1.442695, %v1277_v61  ;;  %1795 = vmatprep.mubr.bf16.mxu0 %v1692_v25  ;;  %2063 = vperm.xlu0 %2910, %v4137_v16  }
 0x218   : > { %v3001_v60 = vpop.eup %3000  ;;  %3018 = vpow2.f32 %v1098_v34  ;;  %1796 = vmatmul.mubr.bf16.vlgmr.msra.gmra.mrb[64].mxu0 %v1691_v44  ;;  %v1139_v2 = vpop.permute.xlu1 %1138  ;;  %v1104_v63 = vmul.f32 1.442695, %v1041_v38 }
 0x219   : > { %v4156_v18 = vpop.eup %3002  ;;  %3020 = vpow2.f32 %v1350_v6  ;;  %v1278_v3 = vsub.f32 %v3410_v40, %v1139_v2  ;;  %v1279_v11 = vsub.f32 %v3412_v41, %v1139_v2  ;;  %2068 = vperm.xlu1 %2911, %v4144_v13   ;;  %v4161_v55 = vadd.f32 %v3001_v60, %v2999_v24  ;;  %v4691_v41 = vld [vmem:[#allocation6_spill] sm:$0xff]  ;;  %v4696_v6 = vld [vmem:[#allocation11_spill] sm:$0xff] }
 0x21a   : > { %v4163_v28 = vpop.eup %3004  ;;  %3022 = vpow2.f32 %v1352_v26 }
 0x21b   : > { %v3007_v29 = vpop.eup %3006  ;;  %3024 = vpow2.f32 %v1100_v43  ;;  %v1354_v8 = vmul.f32 1.442695, %v1278_v3  ;;  %v1356_v45 = vmul.f32 1.442695, %v1279_v11  ;;  %2073 = vperm.xlu0 %2910, %v4149_v47  }
 0x21c   : > { %v3009_v15 = vpop.eup %3008  ;;  %3026 = vpow2.f32 %v1102_v36  ;;  %v1144_v27 = vpop.permute.xlu1 %1143  ;;  %v1693_v40 = vpack.c.bf16 %v3007_v29, %v2999_v24  ;;  %v4695_v24 = vld [vmem:[#allocation10_spill] sm:$0xff] }
 0x21d   : > { %3028 = vpow2.f32 %v1354_v8  ;;  %v1280_v48 = vsub.f32 %v4691_v41, %v1144_v27  ;;  %v1281_v52 = vsub.f32 %v4692_v54, %v1144_v27  ;;  %2078 = vperm.xlu1 %2911, %v4156_v18   ;;  %v1694_v0 = vpack.c.bf16 %v3009_v15, %v3001_v60  ;;  %v4169_v20 = vpop.eup %3010  ;;  %v4697_v27 = vld [vmem:[#allocation12_spill] sm:$0xff]  ;;  %v4698_v41 = vld [vmem:[#allocation13_spill] sm:$0xff] }
 0x21e   : > { %3030 = vpow2.f32 %v1356_v45  ;;  %v4171_v30 = vadd.f32 %v3009_v15, %v3007_v29 }
 0x21f   : > { %v3013_v32 = vpop.eup %3012  ;;  %v1358_v33 = vmul.f32 1.442695, %v1280_v48  ;;  %v1360_v58 = vmul.f32 1.442695, %v1281_v52  ;;  %1803 = vmatprep.mubr.bf16.mxu1 %v1694_v0  ;;  %2083 = vperm.xlu0 %2910, %v4163_v28   ;;  %3032 = vpow2.f32 %v1104_v63 }
 0x220   : > { %v3015_v51 = vpop.eup %3014  ;;  %1804 = vmatmul.mubr.bf16.vlgmr.msra.gmra.mrb[0].mxu1 %v1693_v40  ;;  %v1149_v22 = vpop.permute.xlu1 %1148 }
 0x221   : > { %v4174_v23 = vpop.eup %3016  ;;  %3034 = vpow2.f32 %v1358_v33  ;;  %v1282_v39 = vsub.f32 %v4693_v9, %v1149_v22  ;;  %v1283_v34 = vsub.f32 %v4694_v21, %v1149_v22  ;;  %2088 = vperm.xlu1 %2911, %v4169_v20   ;;  %v4179_v35 = vadd.f32 %v3015_v51, %v3013_v32  ;;  %v4700_v9 = vld [vmem:[#allocation15_spill] sm:$0xff] }
 0x222   : > { %v4181_v17 = vpop.eup %3018  ;;  %3036 = vpow2.f32 %v1360_v58  ;;  %v1154_v44 = vpop.permute.xlu0 %1153 }
 0x223   : > { %v3021_v14 = vpop.eup %3020  ;;  %v1362_v61 = vmul.f32 1.442695, %v1282_v39  ;;  %v1364_v25 = vmul.f32 1.442695, %v1283_v34  ;;  %v1284_v43 = vsub.f32 %v4695_v24, %v1154_v44  ;;  %v1285_v26 = vsub.f32 %v4696_v6, %v1154_v44  ;;  %2093 = vperm.xlu0 %2910, %v4174_v23  }
 0x224   : > { %v3023_v60 = vpop.eup %3022  ;;  %v1695_v36 = vpack.c.bf16 %v3021_v14, %v3013_v32 }
 0x225   : > { %v4186_v38 = vpop.eup %3024  ;;  %3038 = vpow2.f32 %v1362_v61  ;;  %v1366_v2 = vmul.f32 1.442695, %v1284_v43  ;;  %v1368_v3 = vmul.f32 1.442695, %v1285_v26  ;;  %2098 = vperm.xlu1 %2911, %v4181_v17   ;;  %v1696_v11 = vpack.c.bf16 %v3023_v60, %v3015_v51  ;;  %v4699_v51 = vld [vmem:[#allocation14_spill] sm:$0xff] }
 0x226   : > { %v4189_v29 = vpop.eup %3026  ;;  %3040 = vpow2.f32 %v1364_v25  ;;  %v4191_v8 = vadd.f32 %v3023_v60, %v3021_v14  ;;  %v4701_v60 = vld [vmem:[#allocation16_spill] sm:$0xff] }
 0x227   : > { %v3029_v45 = vpop.eup %3028  ;;  %3042 = vpow2.f32 %v1366_v2  ;;  %1811 = vmatprep.mubr.bf16.mxu1 %v1696_v11  ;;  %2103 = vperm.xlu0 %2910, %v4186_v38   ;;  %v4702_v2 = vld [vmem:[#allocation17_spill] sm:$0xff] }
 0x228   : > { %v3031_v15 = vpop.eup %3030  ;;  %3044 = vpow2.f32 %v1368_v3  ;;  %1812 = vmatmul.mubr.bf16.gmra.mrb[4].mxu1 %v1695_v36  ;;  %v1159_v63 = vpop.permute.xlu1 %1158 }
 0x229   : > { %v1286_v40 = vsub.f32 %v4697_v27, %v1159_v63  ;;  %v1287_v48 = vsub.f32 %v4698_v41, %v1159_v63  ;;  %2108 = vperm.xlu1 %2911, %v4189_v29   ;;  %v4197_v54 = vadd.f32 %v3031_v15, %v3029_v45  ;;  %v4199_v52 = vpop.eup %3032  ;;  %v4703_v41 = vld [vmem:[#allocation18_spill] sm:$0xff] }
 0x22a   : > { %v1164_v0 = vpop.permute.xlu0 %1163 }
 0x22b   : > { %v3035_v32 = vpop.eup %3034  ;;  %v1370_v33 = vmul.f32 1.442695, %v1286_v40  ;;  %v1372_v58 = vmul.f32 1.442695, %v1287_v48  ;;  %v1288_v22 = vsub.f32 %v4699_v51, %v1164_v0  ;;  %v1289_v39 = vsub.f32 %v4700_v9, %v1164_v0  ;;  %2113 = vperm.xlu0 %2910, %v4199_v52   ;;  %v4704_v0 = vld [vmem:[#allocation19_spill] sm:$0xff] }
 0x22c   : > { %v3037_v21 = vpop.eup %3036  ;;  %v1697_v34 = vpack.c.bf16 %v3035_v32, %v3029_v45 }
 0x22d   : > { %3046 = vpow2.f32 %v1370_v33  ;;  %v1374_v44 = vmul.f32 1.442695, %v1288_v22  ;;  %v1376_v14 = vmul.f32 1.442695, %v1289_v39  ;;  %v1698_v61 = vpack.c.bf16 %v3037_v21, %v3031_v15 }
 0x22e   : > { %3048 = vpow2.f32 %v1372_v58  ;;  %v4204_v25 = vadd.f32 %v3037_v21, %v3035_v32 }
 0x22f   : > { %v3039_v24 = vpop.eup %3038  ;;  %3050 = vpow2.f32 %v1374_v44  ;;  %1819 = vmatprep.mubr.bf16.mxu1 %v1698_v61  ;;  %v4705_v44 = vld [vmem:[#allocation20_spill] sm:$0xff]  ;;  %v4706_v61 = vld [vmem:[#allocation21_spill] sm:$0xff] }
 0x230   : > { %v3041_v43 = vpop.eup %3040  ;;  %3052 = vpow2.f32 %v1376_v14  ;;  %1820 = vmatmul.mubr.bf16.gmra.mrb[8].mxu1 %v1697_v34  ;;  %v1169_v6 = vpop.permute.xlu1 %1168 }
 0x231   : > { %v3043_v26 = vpop.eup %3042  ;;  %v1290_v36 = vsub.f32 %v4701_v60, %v1169_v6  ;;  %v1291_v3 = vsub.f32 %v4702_v2, %v1169_v6  ;;  %v4208_v11 = vadd.f32 %v3041_v43, %v3039_v24 }
 0x232   : > { %v3045_v45 = vpop.eup %3044  ;;  %v1174_v63 = vpop.permute.xlu0 %1173  ;;  %v1699_v15 = vpack.c.bf16 %v3043_v26, %v3039_v24 }
 0x233   : > { %v1378_v27 = vmul.f32 1.442695, %v1290_v36  ;;  %v1380_v40 = vmul.f32 1.442695, %v1291_v3  ;;  %v1292_v48 = vsub.f32 %v4703_v41, %v1174_v63  ;;  %v1293_v32 = vsub.f32 %v4704_v0, %v1174_v63  ;;  %v4707_v3 = vld [vmem:[#allocation22_spill] sm:$0xff]  ;;  %v4708_v63 = vld [vmem:[#allocation23_spill] sm:$0xff] }
 0x234   : > { %v1700_v33 = vpack.c.bf16 %v3045_v45, %v3041_v43  ;;  %v4212_v58 = vadd.f32 %v3045_v45, %v3043_v26 }
 0x235   : > { %3054 = vpow2.f32 %v1378_v27  ;;  %v1382_v51 = vmul.f32 1.442695, %v1292_v48  ;;  %v1384_v22 = vmul.f32 1.442695, %v1293_v32 }
 0x236   : > { %3056 = vpow2.f32 %v1380_v40  ;;  %1827 = vmatprep.mubr.bf16.mxu1 %v1700_v33 }
 0x237   : > { %v3047_v9 = vpop.eup %3046  ;;  %3058 = vpow2.f32 %v1382_v51 }
 0x238   : > { %v3049_v39 = vpop.eup %3048  ;;  %3060 = vpow2.f32 %v1384_v22  ;;  %1828 = vmatmul.mubr.bf16.gmra.mrb[12].mxu1 %v1699_v15  ;;  %v1179_v21 = vpop.permute.xlu1 %1178  ;;  %v4709_v22 = vld [vmem:[#allocation24_spill] sm:$0xff] }
 0x239   : > { %v3051_v34 = vpop.eup %3050  ;;  %v1294_v14 = vsub.f32 %v4705_v44, %v1179_v21  ;;  %v1295_v24 = vsub.f32 %v4706_v61, %v1179_v21  ;;  %v4216_v6 = vadd.f32 %v3049_v39, %v3047_v9  ;;  %v4710_v21 = vld [vmem:[#allocation25_spill] sm:$0xff] }
 0x23a   : > { %v3053_v43 = vpop.eup %3052  ;;  %v1184_v26 = vpop.permute.xlu0 %1183  ;;  %v1701_v60 = vpack.c.bf16 %v3051_v34, %v3047_v9 }
 0x23b   : > { %v1386_v36 = vmul.f32 1.442695, %v1294_v14  ;;  %v1388_v2 = vmul.f32 1.442695, %v1295_v24  ;;  %v1296_v45 = vsub.f32 %v4707_v3, %v1184_v26  ;;  %v1297_v27 = vsub.f32 %v4708_v63, %v1184_v26  ;;  %v4711_v26 = vld [vmem:[#allocation26_spill] sm:$0xff] }
 0x23c   : > { %v1702_v40 = vpack.c.bf16 %v3053_v43, %v3049_v39  ;;  %v4220_v41 = vadd.f32 %v3053_v43, %v3051_v34 }
 0x23d   : > { %3062 = vpow2.f32 %v1386_v36  ;;  %v1390_v15 = vmul.f32 1.442695, %v1296_v45  ;;  %v1392_v48 = vmul.f32 1.442695, %v1297_v27 }
 0x23e   : > { %3064 = vpow2.f32 %v1388_v2  ;;  %1835 = vmatprep.mubr.bf16.mxu1 %v1702_v40  ;;  %v4712_v2 = vld [vmem:[#allocation27_spill] sm:$0xff] }
 0x23f   : > { %v3055_v0 = vpop.eup %3054  ;;  %3066 = vpow2.f32 %v1390_v15 }
 0x240   : > { %v3057_v32 = vpop.eup %3056  ;;  %3068 = vpow2.f32 %v1392_v48  ;;  %1836 = vmatmul.mubr.bf16.gmra.mrb[16].mxu1 %v1701_v60  ;;  %v1189_v33 = vpop.permute.xlu1 %1188 }
 0x241   : > { %v3059_v51 = vpop.eup %3058  ;;  %v1298_v9 = vsub.f32 %v4709_v22, %v1189_v33  ;;  %v1299_v44 = vsub.f32 %v4710_v21, %v1189_v33  ;;  %v4224_v14 = vadd.f32 %v3057_v32, %v3055_v0  ;;  %v4713_v33 = vld [vmem:[#allocation28_spill] sm:$0xff] }
 0x242   : > { %v3061_v39 = vpop.eup %3060  ;;  %v1194_v34 = vpop.permute.xlu0 %1193  ;;  %v1703_v61 = vpack.c.bf16 %v3059_v51, %v3055_v0 }
 0x243   : > { %v1394_v24 = vmul.f32 1.442695, %v1298_v9  ;;  %v1396_v43 = vmul.f32 1.442695, %v1299_v44  ;;  %v1300_v36 = vsub.f32 %v4711_v26, %v1194_v34  ;;  %v1301_v3 = vsub.f32 %v4712_v2, %v1194_v34  ;;  %v4714_v9 = vld [vmem:[#allocation29_spill] sm:$0xff] }
 0x244   : > { %v1704_v45 = vpack.c.bf16 %v3061_v39, %v3057_v32  ;;  %v4228_v63 = vadd.f32 %v3061_v39, %v3059_v51 }
 0x245   : > { %3070 = vpow2.f32 %v1394_v24  ;;  %v1398_v60 = vmul.f32 1.442695, %v1300_v36  ;;  %v1400_v27 = vmul.f32 1.442695, %v1301_v3  ;;  %v4716_v36 = vld [vmem:[#allocation31_spill] sm:$0xff] }
 0x246   : > { %3072 = vpow2.f32 %v1396_v43  ;;  %1843 = vmatprep.mubr.bf16.mxu1 %v1704_v45  ;;  %v4715_v43 = vld [vmem:[#allocation30_spill] sm:$0xff] }
 0x247   : > { %v3063_v40 = vpop.eup %3062  ;;  %3074 = vpow2.f32 %v1398_v60 }
 0x248   : > { %v3065_v15 = vpop.eup %3064  ;;  %3076 = vpow2.f32 %v1400_v27  ;;  %1844 = vmatmul.mubr.bf16.gmra.mrb[20].mxu1 %v1703_v61  ;;  %v1199_v48 = vpop.permute.xlu1 %1198 }
 0x249   : > { %v3067_v0 = vpop.eup %3066  ;;  %v1302_v22 = vsub.f32 %v4713_v33, %v1199_v48  ;;  %v1303_v21 = vsub.f32 %v4714_v9, %v1199_v48  ;;  %v4232_v44 = vadd.f32 %v3065_v15, %v3063_v40  ;;  %v4717_v33 = vld [vmem:[#allocation32_spill] sm:$0xff] }
 0x24a   : > { %v3069_v32 = vpop.eup %3068  ;;  %v1204_v51 = vpop.permute.xlu0 %1203  ;;  %1526 = vadd.xlane.f32.xlu0 %v4151_v59  ;;  %v1705_v39 = vpack.c.bf16 %v3067_v0, %v3063_v40 }
 0x24b   : > { %v1402_v34 = vmul.f32 1.442695, %v1302_v22  ;;  %v1404_v24 = vmul.f32 1.442695, %v1303_v21  ;;  %v1304_v26 = vsub.f32 %v4715_v43, %v1204_v51  ;;  %v1305_v2 = vsub.f32 %v4716_v36, %v1204_v51 }
 0x24c   : > { %v1706_v61 = vpack.c.bf16 %v3069_v32, %v3065_v15  ;;  %v4237_v3 = vadd.f32 %v3069_v32, %v3067_v0  ;;  %v4718_v0 = vld [vmem:[#allocation33_spill] sm:$0xff] }
 0x24d   : > { %3078 = vpow2.f32 %v1402_v34  ;;  %v1406_v45 = vmul.f32 1.442695, %v1304_v26  ;;  %v1408_v60 = vmul.f32 1.442695, %v1305_v2  ;;  %1523 = vadd.xlane.f32.xlu1 %v4135_v49  ;;  %v4719_v34 = vld [vmem:[#allocation34_spill] sm:$0xff] }
 0x24e   : > { %3080 = vpow2.f32 %v1404_v24  ;;  %1851 = vmatprep.mubr.bf16.mxu1 %v1706_v61  ;;  %1529 = vadd.xlane.f32.xlu0 %v4161_v55 }
 0x24f   : > { %v3071_v59 = vpop.eup %3070  ;;  %3082 = vpow2.f32 %v1406_v45 }
 0x250   : > { %v3073_v27 = vpop.eup %3072  ;;  %3084 = vpow2.f32 %v1408_v60  ;;  %1852 = vmatmul.mubr.bf16.gmra.mrb[24].mxu1 %v1705_v39  ;;  %v1209_v40 = vpop.permute.xlu1 %1208  ;;  %v4720_v39 = vld [vmem:[#allocation35_spill] sm:$0xff] }
 0x251   : > { %v3075_v48 = vpop.eup %3074  ;;  %v1306_v15 = vsub.f32 %v4717_v33, %v1209_v40  ;;  %v1307_v22 = vsub.f32 %v4718_v0, %v1209_v40  ;;  %1532 = vadd.xlane.f32.xlu1 %v4171_v30  ;;  %v4244_v9 = vadd.f32 %v3073_v27, %v3071_v59  ;;  %v4722_v40 = vld [vmem:[#allocation37_spill] sm:$0xff] }
 0x252   : > { %v3077_v49 = vpop.eup %3076  ;;  %v1214_v21 = vpop.permute.xlu0 %1213  ;;  %1535 = vadd.xlane.f32.xlu0 %v4179_v35  ;;  %v1707_v55 = vpack.c.bf16 %v3075_v48, %v3071_v59  ;;  %v4721_v59 = vld [vmem:[#allocation36_spill] sm:$0xff] }
 0x253   : > { %v1410_v32 = vmul.f32 1.442695, %v1306_v15  ;;  %v1412_v51 = vmul.f32 1.442695, %v1307_v22  ;;  %v1308_v24 = vsub.f32 %v4719_v34, %v1214_v21  ;;  %v1309_v43 = vsub.f32 %v4720_v39, %v1214_v21 }
 0x254   : > { %v1708_v26 = vpack.c.bf16 %v3077_v49, %v3073_v27  ;;  %v4249_v36 = vadd.f32 %v3077_v49, %v3075_v48  ;;  %v4723_v49 = vld [vmem:[#allocation38_spill] sm:$0xff] }
 0x255   : > { %3086 = vpow2.f32 %v1410_v32  ;;  %v1414_v2 = vmul.f32 1.442695, %v1308_v24  ;;  %v1416_v61 = vmul.f32 1.442695, %v1309_v43  ;;  %1538 = vadd.xlane.f32.xlu1 %v4191_v8 }
 0x256   : > { %3088 = vpow2.f32 %v1412_v51  ;;  %1859 = vmatprep.mubr.bf16.mxu1 %v1708_v26  ;;  %1541 = vadd.xlane.f32.xlu0 %v4197_v54 }
 0x257   : > { %v3079_v30 = vpop.eup %3078  ;;  %3090 = vpow2.f32 %v1414_v2 }
 0x258   : > { %v3081_v35 = vpop.eup %3080  ;;  %3092 = vpow2.f32 %v1416_v61  ;;  %1860 = vmatmul.mubr.bf16.gmra.mrb[28].mxu1 %v1707_v55  ;;  %v1219_v45 = vpop.permute.xlu1 %1218  ;;  %v4724_v55 = vld [vmem:[#allocation39_spill] sm:$0xff] }
 0x259   : > { %v3083_v60 = vpop.eup %3082  ;;  %v1310_v27 = vsub.f32 %v4721_v59, %v1219_v45  ;;  %v1311_v48 = vsub.f32 %v4722_v40, %v1219_v45  ;;  %1544 = vadd.xlane.f32.xlu1 %v4204_v25  ;;  %v4256_v33 = vadd.f32 %v3081_v35, %v3079_v30 }
 0x25a   : > { %v3085_v8 = vpop.eup %3084  ;;  %v1224_v15 = vpop.permute.xlu0 %1223  ;;  %1547 = vadd.xlane.f32.xlu0 %v4208_v11  ;;  %v1709_v54 = vpack.c.bf16 %v3083_v60, %v3079_v30 }
 0x25b   : > { %v1418_v0 = vmul.f32 1.442695, %v1310_v27  ;;  %v1420_v22 = vmul.f32 1.442695, %v1311_v48  ;;  %v1312_v21 = vsub.f32 %v4723_v49, %v1224_v15  ;;  %v1313_v32 = vsub.f32 %v4724_v55, %v1224_v15  ;;  %v4726_v27 = vld [vmem:[#allocation43_spill] sm:$0xff] }
 0x25c   : > { %v1710_v51 = vpack.c.bf16 %v3085_v8, %v3081_v35  ;;  %v4261_v34 = vpop.permute.xlu1 %1963  ;;  %v4263_v24 = vadd.f32 %v3085_v8, %v3083_v60  ;;  %v4725_v60 = vld [vmem:[#allocation42_spill] sm:$0xff] }
 0x25d   : > { %3094 = vpow2.f32 %v1418_v0  ;;  %v1422_v25 = vmul.f32 1.442695, %v1312_v21  ;;  %v1424_v39 = vmul.f32 1.442695, %v1313_v32  ;;  %1550 = vadd.xlane.f32.xlu1 %v4212_v58  ;;  %v4727_v0 = vld [vmem:[#allocation40_spill] sm:$0xff] }
 0x25e   : > { %3096 = vpow2.f32 %v1420_v22  ;;  %1867 = vmatprep.mubr.bf16.mxu1 %v1710_v51  ;;  %v4266_v11 = vpop.permute.xlu0 %1958  ;;  %1553 = vadd.xlane.f32.xlu0 %v4216_v6 }
 0x25f   : > { %v3087_v43 = vpop.eup %3086  ;;  %3098 = vpow2.f32 %v1422_v25 }
 0x260   : > { %v3089_v26 = vpop.eup %3088  ;;  %3100 = vpow2.f32 %v1424_v39  ;;  %1868 = vmatmul.mubr.bf16.gmra.mrb[32].mxu1 %v1709_v54  ;;  %v4269_v2 = vpop.permute.xlu1 %1968 }
 0x261   : > { %v3091_v61 = vpop.eup %3090  ;;  %1556 = vadd.xlane.f32.xlu1 %v4220_v41  ;;  %v1582_v30 = vadd.f32 %v3089_v26, %v3087_v43  ;;  %v4728_v41 = vld [vmem:[#allocation41_spill] sm:$0xff] }
 0x262   : > { %v3093_v35 = vpop.eup %3092  ;;  %v1234_v45 = vpop.permute.xlu0 %1233  ;;  %1559 = vadd.xlane.f32.xlu0 %v4224_v14  ;;  %v1711_v58 = vpack.c.bf16 %v3091_v61, %v3087_v43 }
 0x263   : > { %v1316_v59 = vsub.f32 %v4725_v60, %v1234_v45  ;;  %v1317_v6 = vsub.f32 %v4726_v27, %v1234_v45  ;;  %v1712_v40 = vpack.c.bf16 %v3093_v35, %v3089_v26  ;;  %v4275_v48 = vadd.f32 %v3093_v35, %v3091_v61  ;;  %v4729_v61 = vld [vmem:[#allocation46_spill] sm:$0xff]  ;;  %v4730_v45 = vld [vmem:[#allocation47_spill] sm:$0xff] }
 0x264   : > { %v1229_v8 = vpop.permute.xlu1 %1228 }
 0x265   : > { %v1430_v15 = vmul.f32 1.442695, %v1316_v59  ;;  %v1432_v54 = vmul.f32 1.442695, %v1317_v6  ;;  %1875 = vmatprep.mubr.bf16.mxu1 %v1712_v40  ;;  %v1314_v22 = vsub.f32 %v4727_v0, %v1229_v8  ;;  %v1315_v49 = vsub.f32 %v4728_v41, %v1229_v8  ;;  %1562 = vadd.xlane.f32.xlu1 %v4228_v63  ;;  %v4731_v8 = vld [vmem:[#allocation44_spill] sm:$0xff] }
 0x266   : > { %v4280_v21 = vpop.permute.xlu0 %1973  ;;  %1565 = vadd.xlane.f32.xlu0 %v4232_v44 }
 0x267   : > { %v3095_v14 = vpop.eup %3094  ;;  %3102 = vpow2.f32 %v1430_v15  ;;  %v1426_v55 = vmul.f32 1.442695, %v1314_v22  ;;  %v1428_v32 = vmul.f32 1.442695, %v1315_v49 }
 0x268   : > { %v3097_v51 = vpop.eup %3096  ;;  %3104 = vpow2.f32 %v1432_v54  ;;  %1876 = vmatmul.mubr.bf16.gmra.mrb[36].mxu1 %v1711_v58  ;;  %v4283_v25 = vpop.permute.xlu1 %1978 }
 0x269   : > { %v3099_v39 = vpop.eup %3098  ;;  %3106 = vpow2.f32 %v1426_v55  ;;  %1568 = vadd.xlane.f32.xlu1 %v4237_v3  ;;  %v1588_v43 = vadd.f32 %v3097_v51, %v3095_v14  ;;  %v4732_v3 = vld [vmem:[#allocation45_spill] sm:$0xff] }
 0x26a   : > { %v3101_v26 = vpop.eup %3100  ;;  %3108 = vpow2.f32 %v1428_v32  ;;  %v1244_v63 = vpop.permute.xlu0 %1243  ;;  %1571 = vadd.xlane.f32.xlu0 %v4244_v9  ;;  %v1713_v44 = vpack.c.bf16 %v3099_v39, %v3095_v14  ;;  %v4733_v32 = vld [vmem:[#allocation50_spill] sm:$0xff] }
 0x26b   : > { %v1320_v35 = vsub.f32 %v4729_v61, %v1244_v63  ;;  %v1321_v60 = vsub.f32 %v4730_v45, %v1244_v63  ;;  %v1714_v59 = vpack.c.bf16 %v3101_v26, %v3097_v51  ;;  %v1591_v27 = vadd.f32 %v3101_v26, %v3099_v39  ;;  %v4734_v39 = vld [vmem:[#allocation51_spill] sm:$0xff] }
 0x26c   : > { %v1239_v58 = vpop.permute.xlu1 %1238 }
 0x26d   : > { %v1438_v6 = vmul.f32 1.442695, %v1320_v35  ;;  %v1440_v40 = vmul.f32 1.442695, %v1321_v60  ;;  %1883 = vmatprep.mubr.bf16.mxu1 %v1714_v59  ;;  %v1318_v15 = vsub.f32 %v4731_v8, %v1239_v58  ;;  %v1319_v54 = vsub.f32 %v4732_v3, %v1239_v58  ;;  %1574 = vadd.xlane.f32.xlu1 %v4249_v36  ;;  %v4735_v60 = vld [vmem:[#allocation48_spill] sm:$0xff]  ;;  %v4736_v58 = vld [vmem:[#allocation49_spill] sm:$0xff] }
 0x26e   : > { %v4292_v0 = vpop.permute.xlu0 %1983  ;;  %1577 = vadd.xlane.f32.xlu0 %v4256_v33 }
 0x26f   : > { %3110 = vpow2.f32 %v1438_v6  ;;  %v1434_v9 = vmul.f32 1.442695, %v1318_v15  ;;  %v1436_v22 = vmul.f32 1.442695, %v1319_v54 }
 0x270   : > { %3112 = vpow2.f32 %v1440_v40  ;;  %1884 = vmatmul.mubr.bf16.gmra.mrb[40].mxu1 %v1713_v44  ;;  %v4295_v41 = vpop.permute.xlu1 %1988 }
 0x271   : > { %v3103_v49 = vpop.eup %3102  ;;  %3114 = vpow2.f32 %v1434_v9  ;;  %1580 = vadd.xlane.f32.xlu1 %v4263_v24 }
 0x272   : > { %v3105_v14 = vpop.eup %3104  ;;  %3116 = vpow2.f32 %v1436_v22  ;;  %v1254_v55 = vpop.permute.xlu0 %1253  ;;  %1583 = vadd.xlane.f32.xlu0 %v1582_v30 }
 0x273   : > { %v3107_v36 = vpop.eup %3106  ;;  %v1324_v51 = vsub.f32 %v4733_v32, %v1254_v55  ;;  %v1325_v33 = vsub.f32 %v4734_v39, %v1254_v55  ;;  %v1597_v26 = vadd.f32 %v3105_v14, %v3103_v49 }
 0x274   : > { %v3109_v63 = vpop.eup %3108  ;;  %v1249_v61 = vpop.permute.xlu1 %1248  ;;  %v1715_v35 = vpack.c.bf16 %v3103_v49, %v3107_v36  ;;  %v4737_v49 = vld [vmem:[#allocation54_spill] sm:$0xff] }
 0x275   : > { %v1446_v44 = vmul.f32 1.442695, %v1324_v51  ;;  %v1448_v45 = vmul.f32 1.442695, %v1325_v33  ;;  %v1322_v59 = vsub.f32 %v4735_v60, %v1249_v61  ;;  %v1323_v6 = vsub.f32 %v4736_v58, %v1249_v61  ;;  %1586 = vadd.xlane.f32.xlu1 %v4275_v48  ;;  %v4739_v61 = vld [vmem:[#allocation52_spill] sm:$0xff] }
 0x276   : > { %v4303_v24 = vpop.permute.xlu0 %1993  ;;  %1589 = vadd.xlane.f32.xlu0 %v1588_v43  ;;  %v1716_v30 = vpack.c.bf16 %v3105_v14, %v3109_v63  ;;  %v1594_v40 = vadd.f32 %v3109_v63, %v3107_v36  ;;  %v4738_v14 = vld [vmem:[#allocation55_spill] sm:$0xff] }
 0x277   : > { %3118 = vpow2.f32 %v1446_v44  ;;  %v1442_v8 = vmul.f32 1.442695, %v1322_v59  ;;  %v1444_v15 = vmul.f32 1.442695, %v1323_v6 }
 0x278   : > { %3120 = vpow2.f32 %v1448_v45  ;;  %1891 = vmatprep.mubr.bf16.mxu1 %v1716_v30  ;;  %v4305_v3 = vpop.permute.xlu1 %1998  ;;  %v4740_v45 = vld [vmem:[#allocation53_spill] sm:$0xff] }
 0x279   : > { %v3111_v54 = vpop.eup %3110  ;;  %3122 = vpow2.f32 %v1442_v8  ;;  %1892 = vmatmul.mubr.bf16.gmra.mrb[44].mxu1 %v1715_v35  ;;  %1592 = vadd.xlane.f32.xlu1 %v1591_v27 }
 0x27a   : > { %v3113_v9 = vpop.eup %3112  ;;  %3124 = vpow2.f32 %v1444_v15  ;;  %v1264_v22 = vpop.permute.xlu0 %1263  ;;  %1595 = vadd.xlane.f32.xlu0 %v1594_v40 }
 0x27b   : > { %v3115_v48 = vpop.eup %3114  ;;  %v1328_v43 = vsub.f32 %v4737_v49, %v1264_v22  ;;  %v1329_v55 = vsub.f32 %v4738_v14, %v1264_v22  ;;  %v1603_v36 = vadd.f32 %v3113_v9, %v3111_v54 }
 0x27c   : > { %v3117_v32 = vpop.eup %3116  ;;  %v1259_v51 = vpop.permute.xlu1 %1258  ;;  %v1717_v39 = vpack.c.bf16 %v3111_v54, %v3115_v48 }
 0x27d   : > { %v1454_v33 = vmul.f32 1.442695, %v1328_v43  ;;  %v1456_v63 = vmul.f32 1.442695, %v1329_v55  ;;  %v1326_v44 = vsub.f32 %v4739_v61, %v1259_v51  ;;  %v1327_v35 = vsub.f32 %v4740_v45, %v1259_v51  ;;  %1598 = vadd.xlane.f32.xlu1 %v1597_v26 }
 0x27e   : > { %v1718_v27 = vpack.c.bf16 %v3113_v9, %v3117_v32  ;;  %v1600_v60 = vadd.f32 %v3117_v32, %v3115_v48  ;;  %v4311_v51 = vpop.permute.xlu0 %2003 }
 0x27f   : > { %3126 = vpow2.f32 %v1454_v33  ;;  %v1450_v59 = vmul.f32 1.442695, %v1326_v44  ;;  %v1452_v58 = vmul.f32 1.442695, %v1327_v35 }
 0x280   : > { %3128 = vpow2.f32 %v1456_v63  ;;  %1899 = vmatprep.mubr.bf16.mxu1 %v1718_v27  ;;  %1601 = vadd.xlane.f32.xlu0 %v1600_v60  ;;  %v4315_v33 = vpop.permute.xlu1 %2008 }
 0x281   : > { %v3119_v6 = vpop.eup %3118  ;;  %3130 = vpow2.f32 %v1450_v59  ;;  %1900 = vmatmul.mubr.bf16.gmra.mrb[48].mxu1 %v1717_v39  ;;  %1604 = vadd.xlane.f32.xlu1 %v1603_v36 }
 0x282   : > { %v3121_v30 = vpop.eup %3120  ;;  %3132 = vpow2.f32 %v1452_v58  ;;  %v4313_v39 = vpop.permute.xlu0 %2013 }
 0x283   : > { %v3123_v40 = vpop.eup %3122  ;;  %v1609_v8 = vadd.f32 %v3121_v30, %v3119_v6 }
 0x284   : > { %v3125_v15 = vpop.eup %3124  ;;  %v1719_v54 = vpack.c.bf16 %v3119_v6, %v3123_v40  ;;  %v4319_v61 = vpop.permute.xlu1 %2018 }
 0x285   : > { %1610 = vadd.xlane.f32.xlu1 %v1609_v8  ;;  %v1720_v26 = vpack.c.bf16 %v3121_v30, %v3125_v15  ;;  %v1606_v9 = vadd.f32 %v3125_v15, %v3123_v40 }
 0x286   : > { %v4317_v63 = vpop.permute.xlu0 %2023 }
 0x287   : > { %1907 = vmatprep.mubr.bf16.mxu1 %v1720_v26  ;;  %1607 = vadd.xlane.f32.xlu0 %v1606_v9 }
 0x288   : > { %v4323_v45 = vpop.permute.xlu1 %2028 }
 0x289   : > { %v3127_v22 = vpop.eup %3126  ;;  %1908 = vmatmul.mubr.bf16.gmra.mrb[52].mxu1 %v1719_v54 }
 0x28a   : > { %v3129_v48 = vpop.eup %3128  ;;  %v4321_v44 = vpop.permute.xlu0 %2033 }
 0x28b   : > { %v3131_v49 = vpop.eup %3130  ;;  %v1615_v43 = vadd.f32 %v3129_v48, %v3127_v22 }
 0x28c   : > { %v3133_v14 = vpop.eup %3132  ;;  %v1721_v55 = vpack.c.bf16 %v3127_v22, %v3131_v49  ;;  %v4327_v27 = vpop.permute.xlu1 %2038 }
 0x28d   : > { %1616 = vadd.xlane.f32.xlu1 %v1615_v43  ;;  %v1722_v36 = vpack.c.bf16 %v3129_v48, %v3133_v14  ;;  %v1612_v32 = vadd.f32 %v3133_v14, %v3131_v49  ;;  %v1459_v49 = vld [vmem:[#allocation3 + $0x8] sm:$0xff] }
 0x28e   : > { %v4325_v35 = vpop.permute.xlu0 %2043  ;;  %v1491_v14 = vmul.f32 %v3941_v10, %v1459_v49 }
 0x28f   : > { %1915 = vmatprep.mubr.bf16.mxu1 %v1722_v36  ;;  %1613 = vadd.xlane.f32.xlu0 %v1612_v32  ;;  %v1460_v32 = vld [vmem:[#allocation3 + $0x10] sm:$0xff] }
 0x290   : > { %v4331_v59 = vpop.permute.xlu1 %2048 }
 0x291   : > { %1916 = vmatmul.mubr.bf16.gmra.mrb[56].mxu1 %v1721_v55  ;;  %v1458_v55 = vld [vmem:[#allocation3] sm:$0xff] }
 0x292   : > { %v4329_v60 = vpop.permute.xlu0 %2053 }
 0x293   : > { %4741 = vst [vmem:[#allocation6_spill] sm:$0xff] %v4329_v60 }
 0x294   : > { %v4335_v6 = vpop.permute.xlu1 %2058 }
 0x295   : > { %4743 = vst [vmem:[#allocation8_spill] sm:$0xff] %v4335_v6  ;;  %v1464_v6 = vld [vmem:[#allocation3 + $0x30] sm:$0xff] }
 0x296   : > { %v4333_v58 = vpop.permute.xlu0 %2063 }
 0x297   : > { %4742 = vst [vmem:[#allocation7_spill] sm:$0xff] %v4333_v58 }
 0x298   : > { %v4339_v40 = vpop.permute.xlu1 %2068 }
 0x299   : > { %4745 = vst [vmem:[#allocation10_spill] sm:$0xff] %v4339_v40 }
 0x29a   : > { %v4337_v30 = vpop.permute.xlu0 %2073 }
 0x29b   : > { %4744 = vst [vmem:[#allocation9_spill] sm:$0xff] %v4337_v30  ;;  %v1461_v30 = vld [vmem:[#allocation3 + $0x18] sm:$0xff] }
 0x29c   : > { %v4343_v15 = vpop.permute.xlu1 %2078 }
 0x29d   : > { %4747 = vst [vmem:[#allocation12_spill] sm:$0xff] %v4343_v15  ;;  %v1490_v15 = vmul.f32 %v3946_v50, %v1458_v55  ;;  %v1463_v50 = vld [vmem:[#allocation3 + $0x28] sm:$0xff] }
 0x29e   : > { %v4341_v8 = vpop.permute.xlu0 %2083 }
 0x29f   : > { %4746 = vst [vmem:[#allocation11_spill] sm:$0xff] %v4341_v8 }
 0x2a0   : > { %v4347_v26 = vpop.permute.xlu1 %2088 }
 0x2a1   : > { %4749 = vst [vmem:[#allocation14_spill] sm:$0xff] %v4347_v26  ;;  %v4754_v26 = vld [vmem:[#allocation56_spill] sm:$0xff] }
 0x2a2   : > { %v4345_v54 = vpop.permute.xlu0 %2093 }
 0x2a3   : > { %4748 = vst [vmem:[#allocation13_spill] sm:$0xff] %v4345_v54 }
 0x2a4   : > { %v4351_v22 = vpop.permute.xlu1 %2098 }
 0x2a5   : > { %4751 = vst [vmem:[#allocation16_spill] sm:$0xff] %v4351_v22 }
 0x2a6   : > { %v4349_v9 = vpop.permute.xlu0 %2103 }
 0x2a7   : > { %4750 = vst [vmem:[#allocation15_spill] sm:$0xff] %v4349_v9  ;;  %v1492_v9 = vmul.f32 %v4754_v26, %v1460_v32 }
 0x2a8   : > { %v4355_v43 = vpop.permute.xlu1 %2108 }
 0x2a9   : > { %4753 = vst [vmem:[#allocation18_spill] sm:$0xff] %v4355_v43  ;;  %v4755_v43 = vld [vmem:[#allocation57_spill] sm:$0xff] }
 0x2aa   : > { %v4353_v48 = vpop.permute.xlu0 %2113  ;;  %v1493_v10 = vmul.f32 %v4755_v43, %v1461_v30  ;;  %v4758_v30 = vld [vmem:[#allocation60_spill] sm:$0xff] }
 0x2ab   : > { %4752 = vst [vmem:[#allocation17_spill] sm:$0xff] %v4353_v48  ;;  %v1462_v48 = vld [vmem:[#allocation3 + $0x20] sm:$0xff] }
 0x2d7   : > { %v1527_v36 = vpop.xlane.xlu0 %1526 }
 0x2d8   : > { %v1619_v8 = vadd.f32 %v1527_v36, %v1491_v14  ;;  %v4756_v14 = vld [vmem:[#allocation58_spill] sm:$0xff] }
 0x2d9   : > { %v1494_v36 = vmul.f32 %v4756_v14, %v1462_v48  ;;  %v1466_v48 = vld [vmem:[#allocation3 + $0x40] sm:$0xff] }
 0x2da   : > { %1652 = vst.msk [vmem:[#allocation3 + $0x8] sm:$0xff] %vm385_vm2, %v1619_v8  ;;  %v1524_v54 = vpop.xlane.xlu1 %1523 }
 0x2db   : > { %v1618_v22 = vadd.f32 %v1524_v54, %v1490_v15  ;;  %v1530_v40 = vpop.xlane.xlu0 %1529  ;;  %v4757_v15 = vld [vmem:[#allocation59_spill] sm:$0xff] }
 0x2dc   : > { %v1620_v58 = vadd.f32 %v1530_v40, %v1492_v9  ;;  %v1495_v54 = vmul.f32 %v4757_v15, %v1463_v50  ;;  %v1496_v9 = vmul.f32 %v4758_v30, %v1464_v6  ;;  %v1467_v50 = vld [vmem:[#allocation3 + $0x48] sm:$0xff] }
 0x2dd   : > { %1651 = vst.msk [vmem:[#allocation3] sm:$0xff] %vm385_vm2, %v1618_v22 }
 0x2de   : > { %1653 = vst.msk [vmem:[#allocation3 + $0x10] sm:$0xff] %vm385_vm2, %v1620_v58  ;;  %v1533_v49 = vpop.xlane.xlu1 %1532  ;;  %v1465_v58 = vld [vmem:[#allocation3 + $0x38] sm:$0xff] }
 0x2df   : > { %v1621_v55 = vadd.f32 %v1533_v49, %v1493_v10  ;;  %v1536_v8 = vpop.xlane.xlu0 %1535  ;;  %v1497_v14 = vmul.f32 %v4033_v4, %v1465_v58  ;;  %v1499_v4 = vmul.f32 %v4075_v1, %v1467_v50 }
 0x2e0   : > { %v1622_v60 = vadd.f32 %v1536_v8, %v1494_v36 }
 0x2e1   : > { %v2249_v26 = vld [vmem:[#allocation3 + $0x8] sm:$0xff]  ;;  %1654 = vst.msk [vmem:[#allocation3 + $0x18] sm:$0xff] %vm385_vm2, %v1621_v55  ;;  %v1924_v55 = vld [vmem:[#allocation4] sm:$0xff] }
 0x2e2   : > { %3134 = vrcp.f32 %v2249_v26  ;;  %1655 = vst.msk [vmem:[#allocation3 + $0x20] sm:$0xff] %vm385_vm2, %v1622_v60  ;;  %v1539_v40 = vpop.xlane.xlu1 %1538  ;;  %v1498_v60 = vmul.f32 %v4044_v19, %v1466_v48  ;;  %v1468_v26 = vld [vmem:[#allocation3 + $0x50] sm:$0xff] }
 0x2e3   : > { %v1623_v22 = vadd.f32 %v1539_v40, %v1495_v54  ;;  %v1542_v43 = vpop.xlane.xlu0 %1541  ;;  %v1925_v40 = vld [vmem:[#allocation4 + $0x8] sm:$0xff]  ;;  %v1500_v58 = vmul.f32 %v4078_v57, %v1468_v26 }
 0x2e4   : > { %v2248_v32 = vld [vmem:[#allocation3] sm:$0xff]  ;;  %v1624_v10 = vadd.f32 %v1542_v43, %v1496_v9  ;;  %v2116_v9 = vmul.f32 %v4266_v11, %v1924_v55 }
 0x2e5   : > { %3136 = vrcp.f32 %v2248_v32  ;;  %v2250_v49 = vld [vmem:[#allocation3 + $0x10] sm:$0xff]  ;;  %1656 = vst.msk [vmem:[#allocation3 + $0x28] sm:$0xff] %vm385_vm2, %v1623_v22  ;;  %v1469_v22 = vld [vmem:[#allocation3 + $0x58] sm:$0xff] }
 0x2e6   : > { %1657 = vst.msk [vmem:[#allocation3 + $0x30] sm:$0xff] %vm385_vm2, %v1624_v10  ;;  %v1545_v36 = vpop.xlane.xlu1 %1544  ;;  %3138 = vrcp.f32 %v2250_v49  ;;  %v1470_v10 = vld [vmem:[#allocation3 + $0x60] sm:$0xff]  ;;  %v1501_v57 = vmul.f32 %v4085_v62, %v1469_v22 }
 0x2e7   : > { %v1625_v6 = vadd.f32 %v1545_v36, %v1497_v14  ;;  %v1548_v8 = vpop.xlane.xlu0 %1547  ;;  %v2117_v14 = vmul.f32 %v4261_v34, %v1925_v40  ;;  %v1502_v26 = vmul.f32 %v4090_v42, %v1470_v10  ;;  %v1926_v40 = vld [vmem:[#allocation4 + $0x10] sm:$0xff] }
 0x2e8   : > { %v2251_v15 = vld [vmem:[#allocation3 + $0x18] sm:$0xff]  ;;  %v1626_v54 = vadd.f32 %v1548_v8, %v1498_v60 }
 0x2e9   : > { %3140 = vrcp.f32 %v2251_v15  ;;  %v2252_v30 = vld [vmem:[#allocation3 + $0x20] sm:$0xff]  ;;  %1658 = vst.msk [vmem:[#allocation3 + $0x38] sm:$0xff] %vm385_vm2, %v1625_v6  ;;  %v1471_v15 = vld [vmem:[#allocation3 + $0x68] sm:$0xff] }
 0x2ea   : > { %1659 = vst.msk [vmem:[#allocation3 + $0x40] sm:$0xff] %vm385_vm2, %v1626_v54  ;;  %v1551_v19 = vpop.xlane.xlu1 %1550  ;;  %3142 = vrcp.f32 %v2252_v30 }
 0x2eb   : > { %v1797_v43 = vpop.f32.mrb[64].mxu0  ;;  %v1627_v48 = vadd.f32 %v1551_v19, %v1499_v4  ;;  %v1554_v32 = vpop.xlane.xlu0 %1553 }
 0x2ec   : > { %v3135_v49 = vpop.eup %3134  ;;  %v2253_v36 = vld [vmem:[#allocation3 + $0x28] sm:$0xff]  ;;  %v2148_v60 = vadd.f32 %v2116_v9, %v1797_v43  ;;  %v1799_v6 = vpop.f32.mrb[65].mxu0  ;;  %v1628_v1 = vadd.f32 %v1554_v32, %v1500_v58  ;;  %v1472_v9 = vld [vmem:[#allocation3 + $0x70] sm:$0xff]  ;;  %v1927_v58 = vld [vmem:[#allocation4 + $0x18] sm:$0xff]  ;;  %v1503_v43 = vmul.f32 %v4097_v46, %v1471_v15 }
 0x2ed   : > { %3144 = vrcp.f32 %v2253_v36  ;;  %v2254_v11 = vld [vmem:[#allocation3 + $0x30] sm:$0xff]  ;;  %1660 = vst.msk [vmem:[#allocation3 + $0x48] sm:$0xff] %vm385_vm2, %v1627_v48  ;;  %v1800_v50 = vpop.f32.mrb[66].mxu0  ;;  %2351 = vperm.xlu0 %2910, %v3135_v49   ;;  %v2118_v48 = vmul.f32 %v4269_v2, %v1926_v40  ;;  %v1504_v10 = vmul.f32 %v4102_v31, %v1472_v9  ;;  %v1473_v49 = vld [vmem:[#allocation3 + $0x78] sm:$0xff]  ;;  %v1475_v40 = vld [vmem:[#allocation3 + $0x88] sm:$0xff] }
 0x2ee   : > { %2181 = vst.msk [vmem:[#allocation4] sm:$0xff] %vm450_vm3, %v2148_v60  ;;  %v2149_v55 = vadd.f32 %v2117_v14, %v1800_v50  ;;  %v1802_v8 = vpop.f32.mrb[67].mxu0  ;;  %v1557_v34 = vpop.xlane.xlu1 %1556  ;;  %3146 = vrcp.f32 %v2254_v11  ;;  %v2119_v11 = vmul.f32 %v4280_v21, %v1927_v58 }
 0x2ef   : > { %1661 = vst.msk [vmem:[#allocation3 + $0x50] sm:$0xff] %vm385_vm2, %v1628_v1  ;;  %v3137_v54 = vpop.eup %3136  ;;  %v1629_v30 = vadd.f32 %v1557_v34, %v1501_v57  ;;  %v1560_v4 = vpop.xlane.xlu0 %1559  ;;  %v1474_v1 = vld [vmem:[#allocation3 + $0x80] sm:$0xff]  ;;  %v1505_v8 = vmul.f32 %v4106_v5, %v1473_v49  ;;  %v1477_v49 = vld [vmem:[#allocation3 + $0x98] sm:$0xff] }
 0x2f0   : > { %v2255_v19 = vld [vmem:[#allocation3 + $0x38] sm:$0xff]  ;;  %2182 = vst.msk [vmem:[#allocation4 + $0x8] sm:$0xff] %vm450_vm3, %v2149_v55  ;;  %v1630_v62 = vadd.f32 %v1560_v4, %v1502_v26  ;;  %2346 = vperm.xlu1 %2911, %v3137_v54   ;;  %v3139_v42 = vpop.eup %3138  ;;  %v1506_v54 = vmul.f32 %v4111_v12, %v1474_v1  ;;  %v1928_v4 = vld [vmem:[#allocation4 + $0x20] sm:$0xff]  ;;  %v1507_v12 = vmul.f32 %v4113_v56, %v1475_v40 }
 0x2f1   : > { %3148 = vrcp.f32 %v2255_v19  ;;  %v2256_v22 = vld [vmem:[#allocation3 + $0x40] sm:$0xff]  ;;  %1662 = vst.msk [vmem:[#allocation3 + $0x58] sm:$0xff] %vm385_vm2, %v1629_v30 }
 0x2f2   : > { %1663 = vst.msk [vmem:[#allocation3 + $0x60] sm:$0xff] %vm385_vm2, %v1630_v62  ;;  %v1563_v32 = vpop.xlane.xlu1 %1562  ;;  %3150 = vrcp.f32 %v2256_v22  ;;  %v1476_v62 = vld [vmem:[#allocation3 + $0x90] sm:$0xff]  ;;  %v1929_v22 = vld [vmem:[#allocation4 + $0x28] sm:$0xff]  ;;  %v1478_v1 = vld [vmem:[#allocation3 + $0xa0] sm:$0xff] }
 0x2f3   : > { %v3141_v14 = vpop.eup %3140  ;;  %v1805_v36 = vpop.f32.mrb[0].mxu1  ;;  %v1631_v60 = vadd.f32 %v1563_v32, %v1503_v43 }
 0x2f4   : > { %v1566_v6 = vpop.xlane.xlu0 %1565  ;;  %v2257_v50 = vld [vmem:[#allocation3 + $0x48] sm:$0xff]  ;;  %v2150_v57 = vadd.f32 %v2118_v48, %v1805_v36  ;;  %v1807_v46 = vpop.f32.mrb[1].mxu1  ;;  %2356 = vperm.xlu1 %2911, %v3139_v42   ;;  %2361 = vperm.xlu0 %2910, %v3141_v14   ;;  %v2120_v48 = vmul.f32 %v4283_v25, %v1928_v4  ;;  %v1931_v4 = vld [vmem:[#allocation4 + $0x38] sm:$0xff] }
 0x2f5   : > { %v1632_v55 = vadd.f32 %v1566_v6, %v1504_v10  ;;  %3152 = vrcp.f32 %v2257_v50  ;;  %1664 = vst.msk [vmem:[#allocation3 + $0x68] sm:$0xff] %vm385_vm2, %v1631_v60  ;;  %v1808_v31 = vpop.f32.mrb[2].mxu1  ;;  %v3143_v34 = vpop.eup %3142  ;;  %v1508_v10 = vmul.f32 %v4116_v53, %v1476_v62  ;;  %v1509_v53 = vmul.f32 %v4120_v7, %v1477_v49 }
 0x2f6   : > { %v2258_v2 = vld [vmem:[#allocation3 + $0x50] sm:$0xff]  ;;  %2183 = vst.msk [vmem:[#allocation4 + $0x10] sm:$0xff] %vm450_vm3, %v2150_v57  ;;  %v2151_v21 = vadd.f32 %v2119_v11, %v1808_v31  ;;  %v1810_v26 = vpop.f32.mrb[3].mxu1  ;;  %v1569_v15 = vpop.xlane.xlu1 %1568  ;;  %v2121_v11 = vmul.f32 %v4292_v0, %v1929_v22  ;;  %v1481_v22 = vld [vmem:[#allocation3 + $0xb8] sm:$0xff] }
 0x2f7   : > { %1665 = vst.msk [vmem:[#allocation3 + $0x70] sm:$0xff] %vm385_vm2, %v1632_v55  ;;  %v3145_v30 = vpop.eup %3144  ;;  %v1633_v9 = vadd.f32 %v1569_v15, %v1505_v8  ;;  %3154 = vrcp.f32 %v2258_v2  ;;  %v1930_v15 = vld [vmem:[#allocation4 + $0x30] sm:$0xff] }
 0x2f8   : > { %v1572_v19 = vpop.xlane.xlu0 %1571  ;;  %v2259_v58 = vld [vmem:[#allocation3 + $0x58] sm:$0xff]  ;;  %2184 = vst.msk [vmem:[#allocation4 + $0x18] sm:$0xff] %vm450_vm3, %v2151_v21  ;;  %2366 = vperm.xlu1 %2911, %v3143_v34   ;;  %2371 = vperm.xlu0 %2910, %v3145_v30   ;;  %v3147_v42 = vpop.eup %3146  ;;  %v1510_v34 = vmul.f32 %v4125_v37, %v1478_v1  ;;  %v1479_v21 = vld [vmem:[#allocation3 + $0xa8] sm:$0xff]  ;;  %v1480_v30 = vld [vmem:[#allocation3 + $0xb0] sm:$0xff]  ;;  %v2122_v37 = vmul.f32 %v4295_v41, %v1930_v15 }
 0x2f9   : > { %v1634_v5 = vadd.f32 %v1572_v19, %v1506_v54  ;;  %3156 = vrcp.f32 %v2259_v58  ;;  %v2260_v43 = vld [vmem:[#allocation3 + $0x60] sm:$0xff]  ;;  %1666 = vst.msk [vmem:[#allocation3 + $0x78] sm:$0xff] %vm385_vm2, %v1633_v9  ;;  %v1511_v19 = vmul.f32 %v4137_v16, %v1479_v21  ;;  %v1485_v21 = vld [vmem:[#allocation3 + $0xd8] sm:$0xff] }
 0x2fa   : > { %v1575_v32 = vpop.xlane.xlu1 %1574  ;;  %3158 = vrcp.f32 %v2260_v43 }
 0x2fb   : > { %1667 = vst.msk [vmem:[#allocation3 + $0x80] sm:$0xff] %vm385_vm2, %v1634_v5  ;;  %v3149_v14 = vpop.eup %3148  ;;  %v1813_v36 = vpop.f32.mrb[4].mxu1  ;;  %v1635_v60 = vadd.f32 %v1575_v32, %v1507_v12  ;;  %v1512_v5 = vmul.f32 %v4144_v13, %v1480_v30  ;;  %v1482_v32 = vld [vmem:[#allocation3 + $0xc0] sm:$0xff] }
 0x2fc   : > { %v1578_v6 = vpop.xlane.xlu0 %1577  ;;  %v2261_v50 = vld [vmem:[#allocation3 + $0x68] sm:$0xff]  ;;  %v2152_v57 = vadd.f32 %v2120_v48, %v1813_v36  ;;  %v1815_v56 = vpop.f32.mrb[5].mxu1  ;;  %2376 = vperm.xlu1 %2911, %v3147_v42   ;;  %2381 = vperm.xlu0 %2910, %v3149_v14  }
 0x2fd   : > { %v1636_v46 = vadd.f32 %v1578_v6, %v1508_v10  ;;  %3160 = vrcp.f32 %v2261_v50  ;;  %1668 = vst.msk [vmem:[#allocation3 + $0x88] sm:$0xff] %vm385_vm2, %v1635_v60  ;;  %v1816_v25 = vpop.f32.mrb[6].mxu1  ;;  %v3151_v55 = vpop.eup %3150  ;;  %v2123_v10 = vmul.f32 %v4303_v24, %v1931_v4  ;;  %v1513_v60 = vmul.f32 %v4149_v47, %v1481_v22 }
 0x2fe   : > { %v2262_v2 = vld [vmem:[#allocation3 + $0x70] sm:$0xff]  ;;  %2185 = vst.msk [vmem:[#allocation4 + $0x20] sm:$0xff] %vm450_vm3, %v2152_v57  ;;  %v2153_v0 = vadd.f32 %v2121_v11, %v1816_v25  ;;  %v1818_v31 = vpop.f32.mrb[7].mxu1  ;;  %v1581_v8 = vpop.xlane.xlu1 %1580  ;;  %v1514_v50 = vmul.f32 %v4156_v18, %v1482_v32  ;;  %v1483_v57 = vld [vmem:[#allocation3 + $0xc8] sm:$0xff]  ;;  %v1935_v32 = vld [vmem:[#allocation4 + $0x58] sm:$0xff] }
 0x2ff   : > { %1669 = vst.msk [vmem:[#allocation3 + $0x90] sm:$0xff] %vm385_vm2, %v1636_v46  ;;  %v3153_v26 = vpop.eup %3152  ;;  %v1637_v54 = vadd.f32 %v1581_v8, %v1509_v53  ;;  %3162 = vrcp.f32 %v2262_v2  ;;  %v1932_v46 = vld [vmem:[#allocation4 + $0x40] sm:$0xff]  ;;  %v1933_v2 = vld [vmem:[#allocation4 + $0x48] sm:$0xff]  ;;  %v1515_v31 = vmul.f32 %v4163_v28, %v1483_v57  ;;  %v1484_v18 = vld [vmem:[#allocation3 + $0xd0] sm:$0xff] }
 0x300   : > { %v1584_v40 = vpop.xlane.xlu0 %1583  ;;  %2186 = vst.msk [vmem:[#allocation4 + $0x28] sm:$0xff] %vm450_vm3, %v2153_v0  ;;  %2386 = vperm.xlu1 %2911, %v3151_v55   ;;  %2391 = vperm.xlu0 %2910, %v3153_v26   ;;  %v2263_v9 = vld [vmem:[#allocation3 + $0x78] sm:$0xff]  ;;  %v2124_v8 = vmul.f32 %v4305_v3, %v1932_v46 }
 0x301   : > { %v1638_v7 = vadd.f32 %v1584_v40, %v1510_v34  ;;  %1670 = vst.msk [vmem:[#allocation3 + $0x98] sm:$0xff] %vm385_vm2, %v1637_v54  ;;  %v3155_v62 = vpop.eup %3154  ;;  %3164 = vrcp.f32 %v2263_v9  ;;  %v2125_v40 = vmul.f32 %v4311_v51, %v1933_v2  ;;  %v1516_v9 = vmul.f32 %v4169_v20, %v1484_v18  ;;  %v1488_v2 = vld [vmem:[#allocation3 + $0xf0] sm:$0xff] }
 0x302   : > { %v1587_v58 = vpop.xlane.xlu1 %1586  ;;  %v2264_v41 = vld [vmem:[#allocation3 + $0x80] sm:$0xff] }
 0x303   : > { %1671 = vst.msk [vmem:[#allocation3 + $0xa0] sm:$0xff] %vm385_vm2, %v1638_v7  ;;  %v3157_v43 = vpop.eup %3156  ;;  %v1821_v12 = vpop.f32.mrb[8].mxu1  ;;  %v1639_v42 = vadd.f32 %v1587_v58, %v1511_v19 }
 0x304   : > { %v1590_v48 = vpop.xlane.xlu0 %1589  ;;  %v2265_v49 = vld [vmem:[#allocation3 + $0x88] sm:$0xff]  ;;  %v2154_v14 = vadd.f32 %v2122_v37, %v1821_v12  ;;  %v1823_v16 = vpop.f32.mrb[9].mxu1  ;;  %2396 = vperm.xlu1 %2911, %v3155_v62   ;;  %2401 = vperm.xlu0 %2910, %v3157_v43   ;;  %v1517_v62 = vmul.f32 %v4174_v23, %v1485_v21  ;;  %v1486_v23 = vld [vmem:[#allocation3 + $0xe0] sm:$0xff] }
 0x305   : > { %v1640_v36 = vadd.f32 %v1590_v48, %v1512_v5  ;;  %3166 = vrcp.f32 %v2265_v49  ;;  %1672 = vst.msk [vmem:[#allocation3 + $0xa8] sm:$0xff] %vm385_vm2, %v1639_v42  ;;  %v1824_v13 = vpop.f32.mrb[10].mxu1  ;;  %v3159_v6 = vpop.eup %3158  ;;  %v1487_v43 = vld [vmem:[#allocation3 + $0xe8] sm:$0xff]  ;;  %v1934_v42 = vld [vmem:[#allocation4 + $0x50] sm:$0xff] }
 0x306   : > { %2187 = vst.msk [vmem:[#allocation4 + $0x30] sm:$0xff] %vm450_vm3, %v2154_v14  ;;  %v2155_v24 = vadd.f32 %v2123_v10, %v1824_v13  ;;  %v1826_v1 = vpop.f32.mrb[11].mxu1  ;;  %v1593_v11 = vpop.xlane.xlu1 %1592  ;;  %3168 = vrcp.f32 %v2264_v41  ;;  %v2266_v0 = vld [vmem:[#allocation3 + $0x90] sm:$0xff]  ;;  %v1519_v49 = vmul.f32 %v4186_v38, %v1487_v43  ;;  %v2126_v16 = vmul.f32 %v4315_v33, %v1934_v42 }
 0x307   : > { %1673 = vst.msk [vmem:[#allocation3 + $0xb0] sm:$0xff] %vm385_vm2, %v1640_v36  ;;  %v3161_v56 = vpop.eup %3160  ;;  %v1641_v25 = vadd.f32 %v1593_v11, %v1513_v60 }
 0x308   : > { %v1596_v53 = vpop.xlane.xlu0 %1595  ;;  %v2267_v55 = vld [vmem:[#allocation3 + $0x98] sm:$0xff]  ;;  %2188 = vst.msk [vmem:[#allocation4 + $0x38] sm:$0xff] %vm450_vm3, %v2155_v24  ;;  %2406 = vperm.xlu1 %2911, %v3159_v6   ;;  %2411 = vperm.xlu0 %2910, %v3161_v56   ;;  %v1518_v6 = vmul.f32 %v4181_v17, %v1486_v23  ;;  %v2127_v24 = vmul.f32 %v4313_v39, %v1935_v32 }
 0x309   : > { %v1642_v47 = vadd.f32 %v1596_v53, %v1514_v50  ;;  %3170 = vrcp.f32 %v2267_v55  ;;  %1674 = vst.msk [vmem:[#allocation3 + $0xb8] sm:$0xff] %vm385_vm2, %v1641_v25  ;;  %v3163_v26 = vpop.eup %3162  ;;  %v1489_v53 = vld [vmem:[#allocation3 + $0xf8] sm:$0xff]  ;;  %v1936_v55 = vld [vmem:[#allocation4 + $0x60] sm:$0xff] }
 0x30a   : > { %v1599_v34 = vpop.xlane.xlu1 %1598  ;;  %3172 = vrcp.f32 %v2266_v0  ;;  %v2268_v28 = vld [vmem:[#allocation3 + $0xa0] sm:$0xff]  ;;  %v1937_v0 = vld [vmem:[#allocation4 + $0x68] sm:$0xff]  ;;  %v1521_v18 = vmul.f32 %v4199_v52, %v1489_v53 }
 0x30b   : > { %1675 = vst.msk [vmem:[#allocation3 + $0xc0] sm:$0xff] %vm385_vm2, %v1642_v47  ;;  %v1829_v15 = vpop.f32.mrb[12].mxu1  ;;  %v1643_v54 = vadd.f32 %v1599_v34, %v1515_v31  ;;  %v3165_v37 = vpop.eup %3164  ;;  %v2128_v34 = vmul.f32 %v4319_v61, %v1936_v55 }
 0x30c   : > { %v2269_v30 = vld [vmem:[#allocation3 + $0xa8] sm:$0xff]  ;;  %v2156_v7 = vadd.f32 %v2124_v8, %v1829_v15  ;;  %v1831_v4 = vpop.f32.mrb[13].mxu1  ;;  %2416 = vperm.xlu1 %2911, %v3163_v26  }
 0x30d   : > { %3174 = vrcp.f32 %v2269_v30  ;;  %1676 = vst.msk [vmem:[#allocation3 + $0xc8] sm:$0xff] %vm385_vm2, %v1643_v54  ;;  %v1602_v3 = vpop.xlane.xlu0 %1601  ;;  %v1832_v19 = vpop.f32.mrb[14].mxu1  ;;  %v2129_v30 = vmul.f32 %v4317_v63, %v1937_v0  ;;  %v1938_v63 = vld [vmem:[#allocation4 + $0x70] sm:$0xff]  ;;  %v1945_v0 = vld [vmem:[#allocation4 + $0xa8] sm:$0xff] }
 0x30e   : > { %2189 = vst.msk [vmem:[#allocation4 + $0x40] sm:$0xff] %vm450_vm3, %v2156_v7  ;;  %v1644_v58 = vadd.f32 %v1602_v3, %v1516_v9  ;;  %v2157_v51 = vadd.f32 %v2125_v40, %v1832_v19  ;;  %v1834_v5 = vpop.f32.mrb[15].mxu1  ;;  %v1605_v22 = vpop.xlane.xlu1 %1604  ;;  %3176 = vrcp.f32 %v2268_v28  ;;  %v2270_v10 = vld [vmem:[#allocation3 + $0xb0] sm:$0xff]  ;;  %v1520_v40 = vmul.f32 %v4189_v29, %v1488_v2  ;;  %v1944_v2 = vld [vmem:[#allocation4 + $0xa0] sm:$0xff] }
 0x30f   : > { %v3167_v12 = vpop.eup %3166  ;;  %v1645_v20 = vadd.f32 %v1605_v22, %v1517_v62  ;;  %v2130_v5 = vmul.f32 %v4323_v45, %v1938_v63  ;;  %v1948_v63 = vld [vmem:[#allocation4 + $0xc0] sm:$0xff] }
 0x310   : > { %v2271_v48 = vld [vmem:[#allocation3 + $0xb8] sm:$0xff]  ;;  %1677 = vst.msk [vmem:[#allocation3 + $0xd0] sm:$0xff] %vm385_vm2, %v1644_v58  ;;  %2421 = vperm.xlu1 %2911, %v3165_v37   ;;  %2431 = vperm.xlu0 %2910, %v3167_v12   ;;  %v3169_v14 = vpop.eup %3168 }
 0x311   : > { %2190 = vst.msk [vmem:[#allocation4 + $0x48] sm:$0xff] %vm450_vm3, %v2157_v51  ;;  %3178 = vrcp.f32 %v2271_v48  ;;  %v1939_v58 = vld [vmem:[#allocation4 + $0x78] sm:$0xff] }
 0x312   : > { %1678 = vst.msk [vmem:[#allocation3 + $0xd8] sm:$0xff] %vm385_vm2, %v1645_v20  ;;  %v1611_v36 = vpop.xlane.xlu1 %1610  ;;  %3180 = vrcp.f32 %v2270_v10  ;;  %v2272_v56 = vld [vmem:[#allocation3 + $0xc0] sm:$0xff]  ;;  %v2131_v12 = vmul.f32 %v4321_v44, %v1939_v58  ;;  %v1941_v44 = vld [vmem:[#allocation4 + $0x88] sm:$0xff] }
 0x313   : > { %v3171_v41 = vpop.eup %3170  ;;  %v1837_v13 = vpop.f32.mrb[16].mxu1  ;;  %v1647_v60 = vadd.f32 %v1611_v36, %v1519_v49  ;;  %v1949_v58 = vld [vmem:[#allocation4 + $0xc8] sm:$0xff] }
 0x314   : > { %v2273_v1 = vld [vmem:[#allocation3 + $0xc8] sm:$0xff]  ;;  %v2158_v11 = vadd.f32 %v2126_v16, %v1837_v13  ;;  %v1839_v50 = vpop.f32.mrb[17].mxu1  ;;  %v1608_v57 = vpop.xlane.xlu0 %1607  ;;  %2426 = vperm.xlu1 %2911, %v3169_v14   ;;  %2441 = vperm.xlu0 %2910, %v3171_v41   ;;  %v1940_v16 = vld [vmem:[#allocation4 + $0x80] sm:$0xff] }
 0x315   : > { %3182 = vrcp.f32 %v2273_v1  ;;  %1680 = vst.msk [vmem:[#allocation3 + $0xe8] sm:$0xff] %vm385_vm2, %v1647_v60  ;;  %v1646_v38 = vadd.f32 %v1608_v57, %v1518_v6  ;;  %v1840_v33 = vpop.f32.mrb[18].mxu1  ;;  %v3173_v46 = vpop.eup %3172  ;;  %v2132_v45 = vmul.f32 %v4327_v27, %v1940_v16  ;;  %v2133_v60 = vmul.f32 %v4325_v35, %v1941_v44  ;;  %v1942_v57 = vld [vmem:[#allocation4 + $0x90] sm:$0xff]  ;;  %v4767_v44 = vld [vmem:[#allocation13_spill] sm:$0xff] }
 0x316   : > { %2191 = vst.msk [vmem:[#allocation4 + $0x50] sm:$0xff] %vm450_vm3, %v2158_v11  ;;  %v2159_v25 = vadd.f32 %v2127_v24, %v1840_v33  ;;  %v1842_v17 = vpop.f32.mrb[19].mxu1  ;;  %3184 = vrcp.f32 %v2272_v56  ;;  %v2134_v27 = vmul.f32 %v4331_v59, %v1942_v57 }
 0x317   : > { %v3175_v39 = vpop.eup %3174  ;;  %1679 = vst.msk [vmem:[#allocation3 + $0xe0] sm:$0xff] %vm385_vm2, %v1646_v38  ;;  %v2274_v31 = vld [vmem:[#allocation3 + $0xd0] sm:$0xff]  ;;  %v1943_v38 = vld [vmem:[#allocation4 + $0x98] sm:$0xff] }
 0x318   : > { %2192 = vst.msk [vmem:[#allocation4 + $0x58] sm:$0xff] %vm450_vm3, %v2159_v25  ;;  %2436 = vperm.xlu1 %2911, %v3173_v46   ;;  %2451 = vperm.xlu0 %2910, %v3175_v39   ;;  %v3177_v8 = vpop.eup %3176  ;;  %v4759_v46 = vld [vmem:[#allocation6_spill] sm:$0xff] }
 0x319   : > { %v2275_v47 = vld [vmem:[#allocation3 + $0xd8] sm:$0xff]  ;;  %v2135_v25 = vmul.f32 %v4759_v46, %v1943_v38  ;;  %v4769_v38 = vld [vmem:[#allocation15_spill] sm:$0xff] }
 0x31a   : > { %3186 = vrcp.f32 %v2275_v47  ;;  %v1617_v21 = vpop.xlane.xlu1 %1616 }
 0x31b   : > { %v3179_v26 = vpop.eup %3178  ;;  %v1649_v15 = vadd.f32 %v1617_v21, %v1521_v18  ;;  %v1845_v54 = vpop.f32.mrb[20].mxu1  ;;  %3188 = vrcp.f32 %v2274_v31  ;;  %v4760_v31 = vld [vmem:[#allocation8_spill] sm:$0xff] }
 0x31c   : > { %v2277_v7 = vld [vmem:[#allocation3 + $0xe8] sm:$0xff]  ;;  %v2160_v4 = vadd.f32 %v2128_v34, %v1845_v54  ;;  %v1847_v9 = vpop.f32.mrb[21].mxu1  ;;  %v1614_v28 = vpop.xlane.xlu0 %1613  ;;  %2446 = vperm.xlu1 %2911, %v3177_v8   ;;  %2461 = vperm.xlu0 %2910, %v3179_v26   ;;  %v2136_v18 = vmul.f32 %v4760_v31, %v1944_v2 }
 0x31d   : > { %3190 = vrcp.f32 %v2277_v7  ;;  %1682 = vst.msk [vmem:[#allocation3 + $0xf8] sm:$0xff] %vm385_vm2, %v1649_v15  ;;  %v1648_v52 = vadd.f32 %v1614_v28, %v1520_v40  ;;  %v1848_v61 = vpop.f32.mrb[22].mxu1  ;;  %v3181_v3 = vpop.eup %3180  ;;  %v4761_v8 = vld [vmem:[#allocation7_spill] sm:$0xff]  ;;  %v1947_v7 = vld [vmem:[#allocation4 + $0xb8] sm:$0xff] }
 0x31e   : > { %v2276_v19 = vld [vmem:[#allocation3 + $0xe0] sm:$0xff]  ;;  %2193 = vst.msk [vmem:[#allocation4 + $0x60] sm:$0xff] %vm450_vm3, %v2160_v4  ;;  %v2161_v62 = vadd.f32 %v2129_v30, %v1848_v61  ;;  %v1850_v29 = vpop.f32.mrb[23].mxu1  ;;  %v2137_v34 = vmul.f32 %v4761_v8, %v1945_v0  ;;  %v1946_v30 = vld [vmem:[#allocation4 + $0xb0] sm:$0xff]  ;;  %v4771_v0 = vld [vmem:[#allocation17_spill] sm:$0xff] }
 0x31f   : > { %v3183_v37 = vpop.eup %3182  ;;  %1681 = vst.msk [vmem:[#allocation3 + $0xf0] sm:$0xff] %vm385_vm2, %v1648_v52  ;;  %3192 = vrcp.f32 %v2276_v19  ;;  %v4762_v4 = vld [vmem:[#allocation10_spill] sm:$0xff]  ;;  %v4763_v52 = vld [vmem:[#allocation9_spill] sm:$0xff] }
 0x320   : > { %2194 = vst.msk [vmem:[#allocation4 + $0x68] sm:$0xff] %vm450_vm3, %v2161_v62  ;;  %2456 = vperm.xlu1 %2911, %v3181_v3   ;;  %2471 = vperm.xlu0 %2910, %v3183_v37   ;;  %v3185_v51 = vpop.eup %3184  ;;  %v2138_v9 = vmul.f32 %v4762_v4, %v1946_v30  ;;  %v2139_v61 = vmul.f32 %v4763_v52, %v1947_v7  ;;  %v2313_v30 = vld [vmem:[#allocation4 + $0x8] sm:$0xff] }
 0x323   : > { %v1853_v43 = vpop.f32.mrb[24].mxu1 }
 0x324   : > { %v3187_v22 = vpop.eup %3186  ;;  %v2162_v42 = vadd.f32 %v2130_v5, %v1853_v43  ;;  %v1855_v20 = vpop.f32.mrb[25].mxu1  ;;  %2466 = vperm.xlu1 %2911, %v3185_v51   ;;  %v2279_v36 = vld [vmem:[#allocation3 + $0xf8] sm:$0xff]  ;;  %v4764_v51 = vld [vmem:[#allocation12_spill] sm:$0xff]  ;;  %v4765_v43 = vld [vmem:[#allocation11_spill] sm:$0xff] }
 0x325   : > { %2481 = vperm.xlu0 %2910, %v3187_v22   ;;  %v1856_v48 = vpop.f32.mrb[26].mxu1  ;;  %v3189_v23 = vpop.eup %3188  ;;  %v2140_v5 = vmul.f32 %v4764_v51, %v1948_v63 }
 0x326   : > { %v2278_v32 = vld [vmem:[#allocation3 + $0xf0] sm:$0xff]  ;;  %2195 = vst.msk [vmem:[#allocation4 + $0x70] sm:$0xff] %vm450_vm3, %v2162_v42  ;;  %v2163_v10 = vadd.f32 %v2131_v12, %v1856_v48  ;;  %v1858_v49 = vpop.f32.mrb[27].mxu1  ;;  %v2141_v12 = vmul.f32 %v4765_v43, %v1949_v58 }
 0x327   : > { %v3191_v14 = vpop.eup %3190  ;;  %3194 = vrcp.f32 %v2278_v32  ;;  %v1951_v49 = vld [vmem:[#allocation4 + $0xd8] sm:$0xff] }
 0x328   : > { %2196 = vst.msk [vmem:[#allocation4 + $0x78] sm:$0xff] %vm450_vm3, %v2163_v10  ;;  %2476 = vperm.xlu1 %2911, %v3189_v23   ;;  %3196 = vrcp.f32 %v2279_v36  ;;  %v1950_v10 = vld [vmem:[#allocation4 + $0xd0] sm:$0xff] }
 0x329   : > { %2491 = vperm.xlu0 %2910, %v3191_v14   ;;  %v3193_v41 = vpop.eup %3192  ;;  %v4766_v14 = vld [vmem:[#allocation14_spill] sm:$0xff] }
 0x32a   : > { %v2142_v16 = vmul.f32 %v4766_v14, %v1950_v10  ;;  %v2320_v14 = vld [vmem:[#allocation4 + $0x40] sm:$0xff] }
 0x32b   : > { %v1861_v13 = vpop.f32.mrb[28].mxu1 }
 0x32c   : > { %v2164_v6 = vadd.f32 %v2132_v45, %v1861_v13  ;;  %v1863_v24 = vpop.f32.mrb[29].mxu1  ;;  %2486 = vperm.xlu1 %2911, %v3193_v41   ;;  %v2143_v45 = vmul.f32 %v4767_v44, %v1951_v49 }
 0x32d   : > { %v1864_v1 = vpop.f32.mrb[30].mxu1 }
 0x32e   : > { %2197 = vst.msk [vmem:[#allocation4 + $0x80] sm:$0xff] %vm450_vm3, %v2164_v6  ;;  %v2165_v11 = vadd.f32 %v2133_v60, %v1864_v1  ;;  %v1866_v50 = vpop.f32.mrb[31].mxu1  ;;  %v1952_v1 = vld [vmem:[#allocation4 + $0xe0] sm:$0xff] }
 0x32f   : > { %v4768_v50 = vld [vmem:[#allocation16_spill] sm:$0xff] }
 0x330   : > { %2198 = vst.msk [vmem:[#allocation4 + $0x88] sm:$0xff] %vm450_vm3, %v2165_v11  ;;  %v1953_v11 = vld [vmem:[#allocation4 + $0xe8] sm:$0xff]  ;;  %v2144_v57 = vmul.f32 %v4768_v50, %v1952_v1  ;;  %v2322_v1 = vld [vmem:[#allocation4 + $0x50] sm:$0xff] }
 0x331   : > { %v3195_v56 = vpop.eup %3194 }
 0x332   : > { %2496 = vperm.xlu0 %2910, %v3195_v56   ;;  %v3197_v53 = vpop.eup %3196 }
 0x333   : > { %v1869_v33 = vpop.f32.mrb[32].mxu1 }
 0x334   : > { %v2166_v35 = vadd.f32 %v2134_v27, %v1869_v33  ;;  %v1871_v17 = vpop.f32.mrb[33].mxu1  ;;  %v2145_v27 = vmul.f32 %v4769_v38, %v1953_v11  ;;  %v2323_v38 = vld [vmem:[#allocation4 + $0x58] sm:$0xff] }
 0x335   : > { %v1872_v39 = vpop.f32.mrb[34].mxu1 }
 0x336   : > { %2199 = vst.msk [vmem:[#allocation4 + $0x90] sm:$0xff] %vm450_vm3, %v2166_v35  ;;  %v2167_v55 = vadd.f32 %v2135_v25, %v1872_v39  ;;  %v1874_v47 = vpop.f32.mrb[35].mxu1  ;;  %2501 = vperm.xlu0 %2910, %v3197_v53   ;;  %v1954_v53 = vld [vmem:[#allocation4 + $0xf0] sm:$0xff]  ;;  %v1955_v39 = vld [vmem:[#allocation4 + $0xf8] sm:$0xff] }
 0x337   : > { %v2147_v31 = vmul.f32 %v4771_v0, %v1955_v39  ;;  %v2329_v11 = vld [vmem:[#allocation4 + $0x88] sm:$0xff] }
 0x338   : > { %2200 = vst.msk [vmem:[#allocation4 + $0x98] sm:$0xff] %vm450_vm3, %v2167_v55  ;;  %v4770_v55 = vld [vmem:[#allocation18_spill] sm:$0xff] }
 0x339   : > { %v2146_v47 = vmul.f32 %v4770_v55, %v1954_v53 }
 0x33b   : > { %v1877_v59 = vpop.f32.mrb[36].mxu1 }
 0x33c   : > { %v2168_v21 = vadd.f32 %v2136_v18, %v1877_v59  ;;  %v1879_v26 = vpop.f32.mrb[37].mxu1 }
 0x33d   : > { %v1880_v15 = vpop.f32.mrb[38].mxu1 }
 0x33e   : > { %2201 = vst.msk [vmem:[#allocation4 + $0xa0] sm:$0xff] %vm450_vm3, %v2168_v21  ;;  %v2169_v54 = vadd.f32 %v2137_v34, %v1880_v15  ;;  %v1882_v40 = vpop.f32.mrb[39].mxu1  ;;  %v2312_v15 = vld [vmem:[#allocation4] sm:$0xff] }
 0x340   : > { %2202 = vst.msk [vmem:[#allocation4 + $0xa8] sm:$0xff] %vm450_vm3, %v2169_v54 }
 0x343   : > { %v1885_v28 = vpop.f32.mrb[40].mxu1 }
 0x344   : > { %v2170_v3 = vadd.f32 %v2138_v9, %v1885_v28  ;;  %v1887_v19 = vpop.f32.mrb[41].mxu1  ;;  %v2314_v28 = vld [vmem:[#allocation4 + $0x10] sm:$0xff] }
 0x345   : > { %v1888_v62 = vpop.f32.mrb[42].mxu1  ;;  %v2315_v19 = vld [vmem:[#allocation4 + $0x18] sm:$0xff] }
 0x346   : > { %2203 = vst.msk [vmem:[#allocation4 + $0xb0] sm:$0xff] %vm450_vm3, %v2170_v3  ;;  %v2171_v29 = vadd.f32 %v2139_v61, %v1888_v62  ;;  %v1890_v37 = vpop.f32.mrb[43].mxu1 }
 0x347   : > { %v2316_v37 = vld [vmem:[#allocation4 + $0x20] sm:$0xff] }
 0x348   : > { %2204 = vst.msk [vmem:[#allocation4 + $0xb8] sm:$0xff] %vm450_vm3, %v2171_v29 }
 0x34c   : > { %v1893_v22 = vpop.f32.mrb[44].mxu1 }
 0x34d   : > { %v2172_v42 = vadd.f32 %v2140_v5, %v1893_v22  ;;  %v1895_v20 = vpop.f32.mrb[45].mxu1  ;;  %v2317_v5 = vld [vmem:[#allocation4 + $0x28] sm:$0xff] }
 0x34e   : > { %v1896_v48 = vpop.f32.mrb[46].mxu1 }
 0x34f   : > { %2205 = vst.msk [vmem:[#allocation4 + $0xc0] sm:$0xff] %vm450_vm3, %v2172_v42  ;;  %v2173_v23 = vadd.f32 %v2141_v12, %v1896_v48  ;;  %v1898_v32 = vpop.f32.mrb[47].mxu1  ;;  %v2318_v42 = vld [vmem:[#allocation4 + $0x30] sm:$0xff] }
 0x351   : > { %2206 = vst.msk [vmem:[#allocation4 + $0xc8] sm:$0xff] %vm450_vm3, %v2173_v23  ;;  %v2319_v23 = vld [vmem:[#allocation4 + $0x38] sm:$0xff] }
 0x354   : > { %v1901_v36 = vpop.f32.mrb[48].mxu1 }
 0x355   : > { %v2174_v41 = vadd.f32 %v2142_v16, %v1901_v36  ;;  %v1903_v13 = vpop.f32.mrb[49].mxu1 }
 0x356   : > { %v1904_v60 = vpop.f32.mrb[50].mxu1 }
 0x357   : > { %2207 = vst.msk [vmem:[#allocation4 + $0xd0] sm:$0xff] %vm450_vm3, %v2174_v41  ;;  %v2175_v6 = vadd.f32 %v2143_v45, %v1904_v60  ;;  %v1906_v24 = vpop.f32.mrb[51].mxu1  ;;  %v2321_v45 = vld [vmem:[#allocation4 + $0x48] sm:$0xff]  ;;  %v2328_v41 = vld [vmem:[#allocation4 + $0x80] sm:$0xff] }
 0x359   : > { %2208 = vst.msk [vmem:[#allocation4 + $0xd8] sm:$0xff] %vm450_vm3, %v2175_v6 }
 0x35c   : > { %v1909_v56 = vpop.f32.mrb[52].mxu1 }
 0x35d   : > { %v2176_v33 = vadd.f32 %v2144_v57, %v1909_v56  ;;  %v1911_v46 = vpop.f32.mrb[53].mxu1 }
 0x35e   : > { %v1912_v25 = vpop.f32.mrb[54].mxu1 }
 0x35f   : > { %2209 = vst.msk [vmem:[#allocation4 + $0xe0] sm:$0xff] %vm450_vm3, %v2176_v33  ;;  %v2177_v35 = vadd.f32 %v2145_v27, %v1912_v25  ;;  %v1914_v17 = vpop.f32.mrb[55].mxu1  ;;  %v2330_v27 = vld [vmem:[#allocation4 + $0x90] sm:$0xff] }
 0x360   : > { %v2331_v17 = vld [vmem:[#allocation4 + $0x98] sm:$0xff] }
 0x361   : > { %2210 = vst.msk [vmem:[#allocation4 + $0xe8] sm:$0xff] %vm450_vm3, %v2177_v35  ;;  %v2324_v35 = vld [vmem:[#allocation4 + $0x60] sm:$0xff] }
 0x364   : > { %v1917_v2 = vpop.f32.mrb[56].mxu1 }
 0x365   : > { %v2178_v18 = vadd.f32 %v2146_v47, %v1917_v2  ;;  %v1919_v59 = vpop.f32.mrb[57].mxu1  ;;  %v2325_v47 = vld [vmem:[#allocation4 + $0x68] sm:$0xff]  ;;  %v2332_v2 = vld [vmem:[#allocation4 + $0xa0] sm:$0xff] }
 0x366   : > { %v1920_v8 = vpop.f32.mrb[58].mxu1  ;;  %v2326_v59 = vld [vmem:[#allocation4 + $0x70] sm:$0xff] }
 0x367   : > { %2211 = vst.msk [vmem:[#allocation4 + $0xf0] sm:$0xff] %vm450_vm3, %v2178_v18  ;;  %v2179_v34 = vadd.f32 %v2147_v31, %v1920_v8  ;;  %v1922_v21 = vpop.f32.mrb[59].mxu1  ;;  %v2333_v8 = vld [vmem:[#allocation4 + $0xa8] sm:$0xff] }
 0x369   : > { %2212 = vst.msk [vmem:[#allocation4 + $0xf8] sm:$0xff] %vm450_vm3, %v2179_v34 }
 0x36c   : > { %v2352_v26 = vpop.permute.xlu0 %2351 }
 0x36d   : > { %v2505_v9 = vmul.f32 %v2352_v26, %v2313_v30 }
 0x36f   : > { %v2347_v54 = vpop.permute.xlu1 %2346 }
 0x370   : > { %v2504_v40 = vmul.f32 %v2347_v54, %v2312_v15  ;;  %v2327_v15 = vld [vmem:[#allocation4 + $0x78] sm:$0xff]  ;;  %v2334_v54 = vld [vmem:[#allocation4 + $0xb0] sm:$0xff] }
 0x372   : > { %2537 = vxpose.xlu1.b32.start [1/16] (narrow) %v2504_v40, 64 }
 0x373   : > { %v2362_v7 = vpop.permute.xlu0 %2361  ;;  %v2357_v4 = vpop.permute.xlu1 %2356 }
 0x374   : > { %v2506_v61 = vmul.f32 %v2357_v4, %v2314_v28  ;;  %v2507_v29 = vmul.f32 %v2362_v7, %v2315_v19  ;;  %v2335_v4 = vld [vmem:[#allocation4 + $0xb8] sm:$0xff]  ;;  %v2337_v19 = vld [vmem:[#allocation4 + $0xc8] sm:$0xff] }
 0x376   : > { %2538 = vxpose.xlu1.b32.cont [2/16] (narrow) %v2505_v9, 64 }
 0x377   : > { %v2367_v52 = vpop.permute.xlu1 %2366  ;;  %v2372_v3 = vpop.permute.xlu0 %2371 }
 0x378   : > { %v2508_v51 = vmul.f32 %v2367_v52, %v2316_v37  ;;  %v2509_v43 = vmul.f32 %v2372_v3, %v2317_v5  ;;  %v2336_v52 = vld [vmem:[#allocation4 + $0xc0] sm:$0xff]  ;;  %v2338_v37 = vld [vmem:[#allocation4 + $0xd0] sm:$0xff] }
 0x37a   : > { %2539 = vxpose.xlu1.b32.cont [3/16] (narrow) %v2506_v61, 64 }
 0x37b   : > { %v2377_v62 = vpop.permute.xlu1 %2376  ;;  %v2382_v63 = vpop.permute.xlu0 %2381 }
 0x37c   : > { %v2510_v48 = vmul.f32 %v2377_v62, %v2318_v42  ;;  %v2511_v49 = vmul.f32 %v2382_v63, %v2319_v23 }
 0x37e   : > { %2540 = vxpose.xlu1.b32.cont [4/16] (narrow) %v2507_v29, 64 }
 0x37f   : > { %v2387_v58 = vpop.permute.xlu1 %2386  ;;  %v2392_v12 = vpop.permute.xlu0 %2391 }
 0x380   : > { %v2512_v36 = vmul.f32 %v2387_v58, %v2320_v14  ;;  %v2513_v60 = vmul.f32 %v2392_v12, %v2321_v45  ;;  %v2340_v12 = vld [vmem:[#allocation4 + $0xe0] sm:$0xff]  ;;  %v2343_v14 = vld [vmem:[#allocation4 + $0xf8] sm:$0xff] }
 0x382   : > { %2541 = vxpose.xlu1.b32.cont [5/16] (narrow) %v2508_v51, 64  ;;  %v2339_v51 = vld [vmem:[#allocation4 + $0xd8] sm:$0xff] }
 0x383   : > { %v2397_v22 = vpop.permute.xlu1 %2396  ;;  %v2402_v32 = vpop.permute.xlu0 %2401 }
 0x384   : > { %v2514_v50 = vmul.f32 %v2397_v22, %v2322_v1  ;;  %v2515_v33 = vmul.f32 %v2402_v32, %v2323_v38  ;;  %v2342_v32 = vld [vmem:[#allocation4 + $0xf0] sm:$0xff] }
 0x385   : > { %v2624_v38 = vld [vmem:[%s4489_s13 + $0x30] sm:$0xff] }
 0x386   : > { %2542 = vxpose.xlu1.b32.cont [6/16] (narrow) %v2509_v43, 64 }
 0x387   : > { %v2407_v20 = vpop.permute.xlu1 %2406  ;;  %v2412_v44 = vpop.permute.xlu0 %2411 }
 0x388   : > { %v2516_v53 = vmul.f32 %v2407_v20, %v2324_v35  ;;  %v2517_v0 = vmul.f32 %v2412_v44, %v2325_v47  ;;  %v2341_v20 = vld [vmem:[#allocation4 + $0xe8] sm:$0xff]  ;;  %v2618_v44 = vld [vmem:[%s4489_s13] sm:$0xff] }
 0x38a   : > { %2543 = vxpose.xlu1.b32.cont [7/16] (narrow) %v2510_v48, 64 }
 0x38b   : > { %v2417_v10 = vpop.permute.xlu1 %2416 }
 0x38c   : > { %v2518_v34 = vmul.f32 %v2417_v10, %v2326_v59 }
 0x38e   : > { %2544 = vxpose.xlu1.b32.cont [8/16] (narrow) %v2511_v49, 64 }
 0x38f   : > { %v2422_v16 = vpop.permute.xlu1 %2421  ;;  %v2432_v24 = vpop.permute.xlu0 %2431 }
 0x390   : > { %v2521_v57 = vmul.f32 %v2432_v24, %v2329_v11  ;;  %v2519_v40 = vmul.f32 %v2422_v16, %v2327_v15  ;;  %v2622_v11 = vld [vmem:[%s4489_s13 + $0x20] sm:$0xff]  ;;  %v2619_v15 = vld [vmem:[%s4489_s13 + $0x8] sm:$0xff] }
 0x392   : > { %2545 = vxpose.xlu1.b32.cont [9/16] (narrow) %v2512_v36, 64  ;;  %v4491_v36 = vstv %s2536_s10 }
 0x393   : > { %v2427_v13 = vpop.permute.xlu1 %2426  ;;  %v2442_v25 = vpop.permute.xlu0 %2441 }
 0x394   : > { %v2520_v6 = vmul.f32 %v2427_v13, %v2328_v41  ;;  %v2523_v39 = vmul.f32 %v2442_v25, %v2331_v17  ;;  %v2626_v25 = vld [vmem:[%s4489_s13 + $0x40] sm:$0xff] }
 0x396   : > { %2546 = vxpose.xlu1.b32.cont [10/16] (narrow) %v2513_v60, 64  ;;  %2569 = vxpose.xlu0.b32.start [1/16] (narrow) %v2520_v6, 64  ;;  %v2620_v60 = vld [vmem:[%s4489_s13 + $0x10] sm:$0xff] }
 0x397   : > { %v2437_v56 = vpop.permute.xlu1 %2436  ;;  %v2452_v18 = vpop.permute.xlu0 %2451 }
 0x398   : > { %v2522_v46 = vmul.f32 %v2437_v56, %v2330_v27  ;;  %v2525_v21 = vmul.f32 %v2452_v18, %v2333_v8  ;;  %v2632_v8 = vld [vmem:[%s4489_s13 + $0x70] sm:$0xff] }
 0x39a   : > { %2547 = vxpose.xlu1.b32.cont [11/16] (narrow) %v2514_v50, 64  ;;  %2570 = vxpose.xlu0.b32.cont [2/16] (narrow) %v2521_v57, 64 }
 0x39b   : > { %v2447_v55 = vpop.permute.xlu1 %2446  ;;  %v2462_v7 = vpop.permute.xlu0 %2461 }
 0x39c   : > { %v2524_v31 = vmul.f32 %v2447_v55, %v2332_v2  ;;  %v2527_v9 = vmul.f32 %v2462_v7, %v2335_v4  ;;  %v2621_v7 = vld [vmem:[%s4489_s13 + $0x18] sm:$0xff] }
 0x39e   : > { %2548 = vxpose.xlu1.b32.cont [12/16] (narrow) %v2515_v33, 64  ;;  %2571 = vxpose.xlu0.b32.cont [3/16] (narrow) %v2522_v46, 64 }
 0x39f   : > { %v2457_v26 = vpop.permute.xlu1 %2456  ;;  %v2472_v3 = vpop.permute.xlu0 %2471 }
 0x3a0   : > { %v2526_v30 = vmul.f32 %v2457_v26, %v2334_v54  ;;  %v2529_v62 = vmul.f32 %v2472_v3, %v2337_v19 }
 0x3a2   : > { %2549 = vxpose.xlu1.b32.cont [13/16] (narrow) %v2516_v53, 64  ;;  %2572 = vxpose.xlu0.b32.cont [4/16] (narrow) %v2523_v39, 64  ;;  %v2628_v39 = vld [vmem:[%s4489_s13 + $0x50] sm:$0xff] }
 0x3a3   : > { %v2467_v28 = vpop.permute.xlu1 %2466 }
 0x3a4   : > { %v2528_v61 = vmul.f32 %v2467_v28, %v2336_v52  ;;  %v2482_v58 = vpop.permute.xlu0 %2481  ;;  %v2623_v52 = vld [vmem:[%s4489_s13 + $0x28] sm:$0xff] }
 0x3a5   : > { %v2531_v5 = vmul.f32 %v2482_v58, %v2339_v51  ;;  %v2627_v58 = vld [vmem:[%s4489_s13 + $0x48] sm:$0xff] }
 0x3a6   : > { %2550 = vxpose.xlu1.b32.cont [14/16] (narrow) %v2517_v0, 64  ;;  %2573 = vxpose.xlu0.b32.cont [5/16] (narrow) %v2524_v31, 64  ;;  %v2630_v0 = vld [vmem:[%s4489_s13 + $0x60] sm:$0xff] }
 0x3a7   : > { %v2477_v29 = vpop.permute.xlu1 %2476 }
 0x3a8   : > { %v2530_v63 = vmul.f32 %v2477_v29, %v2338_v37  ;;  %v2492_v43 = vpop.permute.xlu0 %2491 }
 0x3a9   : > { %v2533_v23 = vmul.f32 %v2492_v43, %v2341_v20  ;;  %v2629_v43 = vld [vmem:[%s4489_s13 + $0x58] sm:$0xff] }
 0x3aa   : > { %2551 = vxpose.xlu1.b32.cont [15/16] (narrow) %v2518_v34, 64  ;;  %2574 = vxpose.xlu0.b32.cont [6/16] (narrow) %v2525_v21, 64 }
 0x3ab   : > { %v2487_v22 = vpop.permute.xlu1 %2486 }
 0x3ac   : > { %v2532_v42 = vmul.f32 %v2487_v22, %v2340_v12 }
 0x3ae   : > { %2552 = vxpose.xlu1.b32.end [16/16] (narrow) %v2519_v40, 64  ;;  %2575 = vxpose.xlu0.b32.cont [7/16] (narrow) %v2526_v30, 64 }
 0x3b1   : > { %v2497_v48 = vpop.permute.xlu0 %2496 }
 0x3b2   : > { %2576 = vxpose.xlu0.b32.cont [8/16] (narrow) %v2527_v9, 64  ;;  %v2534_v10 = vmul.f32 %v2497_v48, %v2342_v32  ;;  %v2631_v48 = vld [vmem:[%s4489_s13 + $0x68] sm:$0xff] }
 0x3b5   : > { %v2502_v49 = vpop.permute.xlu0 %2501 }
 0x3b6   : > { %2577 = vxpose.xlu0.b32.cont [9/16] (narrow) %v2528_v61, 64  ;;  %v2535_v16 = vmul.f32 %v2502_v49, %v2343_v14  ;;  %v2633_v49 = vld [vmem:[%s4489_s13 + $0x78] sm:$0xff] }
 0x3ba   : > { %2578 = vxpose.xlu0.b32.cont [10/16] (narrow) %v2529_v62, 64  ;;  %v2625_v62 = vld [vmem:[%s4489_s13 + $0x38] sm:$0xff] }
 0x3be   : > { %2579 = vxpose.xlu0.b32.cont [11/16] (narrow) %v2530_v63, 64 }
 0x3c2   : > { %2580 = vxpose.xlu0.b32.cont [12/16] (narrow) %v2531_v5, 64 }
 0x3c6   : > { %2581 = vxpose.xlu0.b32.cont [13/16] (narrow) %v2532_v42, 64 }
 0x3ca   : > { %2582 = vxpose.xlu0.b32.cont [14/16] (narrow) %v2533_v23, 64 }
 0x3ce   : > { %2583 = vxpose.xlu0.b32.cont [15/16] (narrow) %v2534_v10, 64 }
 0x3d2   : > { %2584 = vxpose.xlu0.b32.end [16/16] (narrow) %v2535_v16, 64 }
 0x3f2   : > { %v2553_v45 = vpop.trf.xlu1 }
 0x3f3   : > { %v2602_v41 = vmul.f32 %v4491_v36, %v2553_v45 }
 0x3f5   : > { %v2634_v13 = vadd.f32 %v2618_v44, %v2602_v41 }
 0x3f6   : > { %v2554_v6 = vpop.trf.xlu1 }
 0x3f7   : > { %2650 = vst [vmem:[%s4499_s16] sm:$0xff] %v2634_v13  ;;  %v2604_v24 = vmul.f32 %v4491_v36, %v2554_v6 }
 0x3f9   : > { %v2636_v1 = vadd.f32 %v2620_v60, %v2604_v24 }
 0x3fa   : > { %v2555_v50 = vpop.trf.xlu1 }
 0x3fb   : > { %2652 = vst [vmem:[%s4499_s16 + $0x10] sm:$0xff] %v2636_v1  ;;  %v2606_v57 = vmul.f32 %v4491_v36, %v2555_v50 }
 0x3fd   : > { %v2638_v56 = vadd.f32 %v2622_v11, %v2606_v57 }
 0x3fe   : > { %v2556_v27 = vpop.trf.xlu1 }
 0x3ff   : > { %2654 = vst [vmem:[%s4499_s16 + $0x20] sm:$0xff] %v2638_v56  ;;  %v2608_v33 = vmul.f32 %v4491_v36, %v2556_v27 }
 0x401   : > { %v2640_v46 = vadd.f32 %v2624_v38, %v2608_v33 }
 0x402   : > { %v2557_v35 = vpop.trf.xlu1 }
 0x403   : > { %2656 = vst [vmem:[%s4499_s16 + $0x30] sm:$0xff] %v2640_v46  ;;  %v2610_v17 = vmul.f32 %v4491_v36, %v2557_v35 }
 0x405   : > { %v2642_v53 = vadd.f32 %v2626_v25, %v2610_v17 }
 0x406   : > { %v2558_v55 = vpop.trf.xlu1 }
 0x407   : > { %2658 = vst [vmem:[%s4499_s16 + $0x40] sm:$0xff] %v2642_v53  ;;  %v2612_v47 = vmul.f32 %v4491_v36, %v2558_v55 }
 0x409   : > { %v2644_v2 = vadd.f32 %v2628_v39, %v2612_v47 }
 0x40a   : > { %v2559_v31 = vpop.trf.xlu1 }
 0x40b   : > { %2660 = vst [vmem:[%s4499_s16 + $0x50] sm:$0xff] %v2644_v2  ;;  %v2614_v18 = vmul.f32 %v4491_v36, %v2559_v31 }
 0x40d   : > { %v2646_v59 = vadd.f32 %v2630_v0, %v2614_v18 }
 0x40e   : > { %v2560_v34 = vpop.trf.xlu1 }
 0x40f   : > { %2662 = vst [vmem:[%s4499_s16 + $0x60] sm:$0xff] %v2646_v59  ;;  %v2616_v21 = vmul.f32 %v4491_v36, %v2560_v34 }
 0x411   : > { %v2648_v26 = vadd.f32 %v2632_v8, %v2616_v21 }
 0x413   : > { %2664 = vst [vmem:[%s4499_s16 + $0x70] sm:$0xff] %v2648_v26 }
 0x416   : > { %v2585_v54 = vpop.trf.xlu0 }
 0x417   : > { %v2603_v40 = vmul.f32 %v4491_v36, %v2585_v54 }
 0x419   : > { %v2635_v30 = vadd.f32 %v2619_v15, %v2603_v40 }
 0x41a   : > { %v2586_v4 = vpop.trf.xlu0 }
 0x41b   : > { %2651 = vst [vmem:[%s4499_s16 + $0x8] sm:$0xff] %v2635_v30  ;;  %v2605_v9 = vmul.f32 %v4491_v36, %v2586_v4 }
 0x41d   : > { %v2637_v28 = vadd.f32 %v2621_v7, %v2605_v9 }
 0x41e   : > { %v2587_v61 = vpop.trf.xlu0 }
 0x41f   : > { %2653 = vst [vmem:[%s4499_s16 + $0x18] sm:$0xff] %v2637_v28  ;;  %v2607_v3 = vmul.f32 %v4491_v36, %v2587_v61 }
 0x421   : > { %v2639_v19 = vadd.f32 %v2623_v52, %v2607_v3 }
 0x422   : > { %v2588_v29 = vpop.trf.xlu0 }
 0x423   : > { %2655 = vst [vmem:[%s4499_s16 + $0x28] sm:$0xff] %v2639_v19  ;;  %v2609_v37 = vmul.f32 %v4491_v36, %v2588_v29 }
 0x425   : > { %v2641_v63 = vadd.f32 %v2625_v62, %v2609_v37 }
 0x426   : > { %v2589_v51 = vpop.trf.xlu0 }
 0x427   : > { %2657 = vst [vmem:[%s4499_s16 + $0x38] sm:$0xff] %v2641_v63  ;;  %v2611_v5 = vmul.f32 %v4491_v36, %v2589_v51 }
 0x429   : > { %v2643_v22 = vadd.f32 %v2627_v58, %v2611_v5 }
 0x42a   : > { %v2590_v12 = vpop.trf.xlu0 }
 0x42b   : > { %2659 = vst [vmem:[%s4499_s16 + $0x48] sm:$0xff] %v2643_v22  ;;  %v2613_v42 = vmul.f32 %v4491_v36, %v2590_v12 }
 0x42d   : > { %v2645_v20 = vadd.f32 %v2629_v43, %v2613_v42 }
 0x42e   : > { %v2591_v23 = vpop.trf.xlu0 }
 0x42f   : > { %2661 = vst [vmem:[%s4499_s16 + $0x58] sm:$0xff] %v2645_v20  ;;  %v2615_v32 = vmul.f32 %v4491_v36, %v2591_v23 }
 0x431   : > { %v2647_v10 = vadd.f32 %v2631_v48, %v2615_v32 }
 0x432   : > { %v2592_v14 = vpop.trf.xlu0 }
 0x433   : > { %2663 = vst [vmem:[%s4499_s16 + $0x68] sm:$0xff] %v2647_v10  ;;  %v2617_v16 = vmul.f32 %v4491_v36, %v2592_v14 }
 0x435   : > { %v2649_v44 = vadd.f32 %v2633_v49, %v2617_v16 }
 0x437   : > { %2665 = vst [vmem:[%s4499_s16 + $0x78] sm:$0xff] %v2649_v44 }
 0x438 PF: > { %s16_s22 = sadd.s32 1, %s3220_s22   ;;  %s4772_s20 = smov %s3216_s21 }
 0x439   : > { %p13_p5 = scmp.ge.s32.totalorder %s16_s22, 4   ;;  %s4773_s21 = smov %s4775_s0 }
 0x43b   :  { %15 = sbr.rel (!%p13_p5) target bundleno = 2 (0x2), region = 87 }

</bundles_post_ra>
